<compile_context>
chip_gen: v6e
topology: v6e:2x2x1
jax: 0.10.0
libtpu: 0.0.40
codegen_flags: <defaults>
</compile_context>

<pallas_src>
import math
from functools import partial

import numpy as np
import jax
import jax.numpy as jnp
from jax.experimental import pallas as pl
from jax.experimental.pallas import tpu as pltpu


def _round_up(x, m):
    return ((x + m - 1) // m) * m


# ----------------------------------------------------------------------------
# Bidirectional GRU kernel.
#   grid = (NC,)   -- NC time chunks of C timesteps, run sequentially
#                     ("arbitrary"); hidden state for BOTH directions is
#                     carried in VMEM scratch across grid steps.
#   Per grid step c:
#     fwd chain consumes array chunk c          (timesteps ascending),
#     bwd chain consumes array chunk NC-1-c     (timesteps descending),
#     each direction first runs its chunk's input projection
#     gi = x_chunk @ Wi + bi as one (C*B, Hp)x(Hp, 3Hp) MXU matmul, then the
#     unrolled C-step recurrence (only h @ Wh on the serial path).
#   Timesteps >= T (chunk padding) are masked with pl.when, so the padded
#   sequence length seen by the GRU is exactly T = MAX_atom_len (module
#   semantics preserved).
# ----------------------------------------------------------------------------
def _make_bigru_kernel(T, B, Hp, C, NC):
    def kernel(xf_ref, xb_ref, h0_ref, wi_ref, bi_ref, wh_ref, bhn_ref,
               outf_ref, outb_ref, gif_sc, gib_sc, hf_sc, hb_sc):
        c = pl.program_id(0)

        @pl.when(c == 0)
        def _init():
            hf_sc[...] = h0_ref[0]
            hb_sc[...] = h0_ref[1]

        # Hoisted per-chunk input projections (throughput MXU work; bf16
        # operands when compute_dtype=bf16, f32 accumulate).
        gif_sc[...] = (
            jnp.dot(xf_ref[...], wi_ref[0], preferred_element_type=jnp.float32)
            + bi_ref[0])
        gib_sc[...] = (
            jnp.dot(xb_ref[...], wi_ref[1], preferred_element_type=jnp.float32)
            + bi_ref[1])

        # Hoist the n-gate recurrent-bias broadcast out of the time loop
        # (JAX does not CSE broadcast_in_dim inside loops).
        bhn_f = jnp.broadcast_to(bhn_ref[0], (B, Hp))
        bhn_b = jnp.broadcast_to(bhn_ref[1], (B, Hp))

        def gru_step(gi, h, wh, bhn):
            # bi already contains b_ih (all gates) + b_hh (r, z gates).
            gh = jnp.dot(h, wh, preferred_element_type=jnp.float32)
            r = jax.nn.sigmoid(gi[:, 0:Hp] + gh[:, 0:Hp])
            z = jax.nn.sigmoid(gi[:, Hp:2 * Hp] + gh[:, Hp:2 * Hp])
            n = jnp.tanh(gi[:, 2 * Hp:3 * Hp]
                         + r * (gh[:, 2 * Hp:3 * Hp] + bhn))
            return n + z * (h - n)          # == (1 - z) * n + z * h

        # Fully-unrolled static time loop over the chunk: scheduler can
        # interleave the two independent direction chains and overlap the
        # gi loads / out stores with the dependent h @ Wh matmuls.
        for t in range(C):
            pf = c * C + t                        # fwd global timestep
            pb = (NC - 1 - c) * C + (C - 1 - t)   # bwd global timestep
            rf = t * B                            # fwd row offset in chunk
            rb = (C - 1 - t) * B                  # bwd row offset in chunk

            @pl.when(pf < T)
            def _fwd():
                h_new = gru_step(gif_sc[pl.ds(rf, B), :], hf_sc[...],
                                 wh_ref[0], bhn_f)
                hf_sc[...] = h_new
                outf_ref[pl.ds(rf, B), :] = h_new

            @pl.when(pb < T)
            def _bwd():
                h_new = gru_step(gib_sc[pl.ds(rb, B), :], hb_sc[...],
                                 wh_ref[1], bhn_b)
                hb_sc[...] = h_new
                outb_ref[pl.ds(rb, B), :] = h_new

    return kernel


def _vmem_limit_bytes(CB, B, Hp, x_itemsize, wi_itemsize):
    """Explicit VMEM arithmetic for the pallas_call (feedback item 1)."""
    f32 = 4
    blocks = 2 * (                              # default double-buffering
        2 * CB * Hp * x_itemsize                # x fwd + bwd chunks
        + 2 * B * Hp * f32                      # h0 (both directions)
        + 2 * Hp * 3 * Hp * wi_itemsize         # Wi
        + 2 * 3 * Hp * f32                      # bi
        + 2 * Hp * 3 * Hp * f32                 # Wh
        + 2 * Hp * f32                          # bh (n gate)
        + 2 * CB * Hp * f32)                    # out fwd + bwd chunks
    scratch = 2 * CB * 3 * Hp * f32 + 2 * B * Hp * f32   # gi + hidden carries
    total = blocks + scratch
    # generous headroom for compiler-internal scratch, capped at 128 MiB.
    return min(max(int(1.5 * total) + (4 << 20), 32 << 20), 128 << 20)


def bidirectional_gru_pallas(x_flat, h0, wi, bi, wh, bhn, *, T, B, chunk):
    """x_flat: (T_pad*B, Hp) time-major padded messages.

    Returns (out_fwd, out_bwd), each (T_pad*B, Hp) f32."""
    TBp, Hp = x_flat.shape
    T_pad = TBp // B
    C = chunk
    NC = T_pad // C
    CB = C * B
    kernel = _make_bigru_kernel(T=T, B=B, Hp=Hp, C=C, NC=NC)

    vmem_limit = _vmem_limit_bytes(CB, B, Hp, x_flat.dtype.itemsize,
                                   wi.dtype.itemsize)

    grid_spec = pltpu.PrefetchScalarGridSpec(
        num_scalar_prefetch=0,
        grid=(NC,),                                           # time chunks
        in_specs=[
            pl.BlockSpec((CB, Hp), lambda c: (c, 0)),             # x fwd chunk
            pl.BlockSpec((CB, Hp), lambda c: (NC - 1 - c, 0)),    # x bwd chunk
            pl.BlockSpec((2, B, Hp), lambda c: (0, 0, 0)),        # h0
            pl.BlockSpec((2, Hp, 3 * Hp), lambda c: (0, 0, 0)),   # Wi
            pl.BlockSpec((2, 1, 3 * Hp), lambda c: (0, 0, 0)),    # bi(+bh r,z)
            pl.BlockSpec((2, Hp, 3 * Hp), lambda c: (0, 0, 0)),   # Wh
            pl.BlockSpec((2, 1, Hp), lambda c: (0, 0, 0)),        # bh n-gate
        ],
        out_specs=[
            pl.BlockSpec((CB, Hp), lambda c: (c, 0)),             # fwd out
            pl.BlockSpec((CB, Hp), lambda c: (NC - 1 - c, 0)),    # bwd out
        ],
        scratch_shapes=[
            pltpu.VMEM((CB, 3 * Hp), jnp.float32),   # gi fwd chunk
            pltpu.VMEM((CB, 3 * Hp), jnp.float32),   # gi bwd chunk
            pltpu.VMEM((B, Hp), jnp.float32),        # hidden carry fwd
            pltpu.VMEM((B, Hp), jnp.float32),        # hidden carry bwd
        ],
    )

    return pl.pallas_call(
        kernel,
        out_shape=(jax.ShapeDtypeStruct((TBp, Hp), jnp.float32),
                   jax.ShapeDtypeStruct((TBp, Hp), jnp.float32)),
        grid_spec=grid_spec,
        compiler_params=pltpu.CompilerParams(
            dimension_semantics=("arbitrary",),    # sequential hidden carry
            vmem_limit_bytes=vmem_limit,
        ),
    )(x_flat, x_flat, h0, wi, bi, wh, bhn)


# ----------------------------------------------------------------------------
# Glue: a_scope (static Python metadata) -> gather indices, built once.
# ----------------------------------------------------------------------------
def _build_index_arrays(a_scope, n_rows, T, T_pad, B):
    x_idx = np.full((B, T_pad), n_rows, dtype=np.int32)    # n_rows   -> 0 row
    h_idx = np.full((B, T), n_rows + 1, dtype=np.int32)    # n_rows+1 -> 0 row
    for b, (start, size) in enumerate(a_scope):
        rows = np.arange(start, start + size, dtype=np.int32)
        x_idx[b, :size] = rows
        h_idx[b, :size] = rows
        h_idx[b, size:] = n_rows                            # -inf row (segmax)
    unpad = np.concatenate(
        [np.arange(size, dtype=np.int32) * B + b
         for b, (_, size) in enumerate(a_scope)])
    x_idx_tb = np.ascontiguousarray(x_idx.T).reshape(-1)    # time-major flat
    return x_idx_tb, h_idx, unpad


@partial(jax.jit, static_argnames=("chunk", "compute_dtype"))
def _batch_gru_core(node, bias_pad, wi, bi, wh, bhn,
                    x_idx_tb, h_idx_bt, unpad_idx, *, chunk, compute_dtype):
    n_rows, h_real = node.shape
    hp = bias_pad.shape[0]
    B, T = h_idx_bt.shape

    node_p = jnp.pad(node, ((0, 0), (0, hp - h_real)))
    # message = relu(node + bias): left to XLA fusion (a separate pallas_call
    # costs more than the work at this size).
    msg_p = jnp.maximum(node_p + bias_pad[None, :], 0.0)

    # Pad/stack all molecules with ONE gather into time-major (T_pad*B, Hp);
    # cast to the MXU operand dtype (bf16 in the perf config).
    msg_ext = jnp.concatenate([msg_p, jnp.zeros((1, hp), msg_p.dtype)], axis=0)
    x_flat = msg_ext[x_idx_tb].astype(compute_dtype)

    # Segment max for h0 with ONE gather + max (extra rows: -inf for in-seq
    # padding, 0 for batch padding).  Kept in f32.
    node_ext = jnp.concatenate(
        [node_p,
         jnp.full((1, hp), -jnp.inf, node_p.dtype),
         jnp.zeros((1, hp), node_p.dtype)], axis=0)
    h0 = node_ext[h_idx_bt].max(axis=1)                     # (B, Hp)
    h0 = jnp.stack([h0, h0], axis=0)                        # (2, B, Hp)

    out_f, out_b = bidirectional_gru_pallas(
        x_flat, h0, wi.astype(compute_dtype), bi, wh, bhn,
        T=T, B=B, chunk=chunk)

    unpadded = jnp.concatenate(
        [out_f[unpad_idx][:, :h_real], out_b[unpad_idx][:, :h_real]], axis=1)
    head = msg_p[0:1, :h_real]
    head = jnp.concatenate([head, head], axis=1)
    return jnp.concatenate([head, unpadded], axis=0)


def batch_gru_forward(node, a_scope, params, *, chunk=8,
                      compute_dtype=jnp.float32, min_batch=8):
    T = max(size for _, size in a_scope)
    # TODO(synk): production should bucket molecules so B >= 64-128 (MXU
    # occupancy of the per-step (B, Hp)x(Hp, 3Hp) recurrent matmul).
    B = _round_up(len(a_scope), min_batch)
    C = max(1, chunk)
    T_pad = _round_up(T, C)
    x_idx_tb, h_idx_bt, unpad_idx = _build_index_arrays(
        a_scope, node.shape[0], T, T_pad, B)
    return _batch_gru_core(
        node, params["bias_pad"], params["wi"], params["bi"],
        params["wh"], params["bhn"],
        jnp.asarray(x_idx_tb), jnp.asarray(h_idx_bt), jnp.asarray(unpad_idx),
        chunk=C, compute_dtype=compute_dtype)


# ----------------------------------------------------------------------------
# Pure-JAX reference (PyTorch nn.GRU semantics) for correctness checks.
# ----------------------------------------------------------------------------
def _gru_ref(x_bth, h0, w_ih, w_hh, b_ih, b_hh):
    B, T, H = x_bth.shape
    outs = []
    for d in range(2):
        xs = x_bth if d == 0 else x_bth[:, ::-1]
        h = h0[d]
        hs = []
        for t in range(T):
            xt = xs[:, t]
            gi = xt @ w_ih[d].T + b_ih[d]
            gh = h @ w_hh[d].T + b_hh[d]
            r = jax.nn.sigmoid(gi[:, :H] + gh[:, :H])
            z = jax.nn.sigmoid(gi[:, H:2 * H] + gh[:, H:2 * H])
            n = jnp.tanh(gi[:, 2 * H:] + r * gh[:, 2 * H:])
            h = (1.0 - z) * n + z * h
            hs.append(h)
        hs = jnp.stack(hs, axis=1)
        if d == 1:
            hs = hs[:, ::-1]
        outs.append(hs)
    return jnp.concatenate(outs, axis=-1)


def batch_gru_forward_ref(node, a_scope, params):
    message = jnp.maximum(node + params["bias"][None, :], 0.0)
    T = max(size for _, size in a_scope)
    msgs, h0s = [], []
    for start, size in a_scope:
        cur_m = message[start:start + size]
        cur_h = node[start:start + size]
        h0s.append(jnp.max(cur_h, axis=0))
        msgs.append(jnp.pad(cur_m, ((0, T - size), (0, 0))))
    x_bth = jnp.stack(msgs, axis=0)
    h0 = jnp.stack(h0s, axis=0)
    h0 = jnp.broadcast_to(h0[None], (2,) + h0.shape)
    out = _gru_ref(x_bth, h0, params["w_ih"], params["w_hh"],
                   params["b_ih"], params["b_hh"])
    unpadded = jnp.concatenate(
        [out[i, :size] for i, (_, size) in enumerate(a_scope)], axis=0)
    head = jnp.concatenate([message[0:1], message[0:1]], axis=1)
    return jnp.concatenate([head, unpadded], axis=0)


# ----------------------------------------------------------------------------
# Deterministic parameter init (shapes per BatchGRU.__init__), plus the
# packed / padded kernel-side layout.
# ----------------------------------------------------------------------------
def init_params(key, hidden_size):
    H = hidden_size
    Hp = _round_up(H, 128)
    bound = 1.0 / math.sqrt(H)
    ks = jax.random.split(key, 5)

    def u(k, shape):
        return jax.random.uniform(k, shape, jnp.float32, -bound, bound)

    bias = u(ks[0], (H,))
    w_ih = u(ks[1], (2, 3 * H, H))   # per-direction PyTorch weight_ih_l0
    w_hh = u(ks[2], (2, 3 * H, H))
    b_ih = u(ks[3], (2, 3 * H))
    b_hh = u(ks[4], (2, 3 * H))

    # Kernel packing: per direction, transpose to (Hp, 3Hp) with gate blocks
    # [r | z | n] along columns, zero-padded so padded hidden lanes stay 0.
    # b_hh for the r,z gates is folded into the hoisted bias bi; only the
    # n-gate recurrent bias bhn remains for the loop.
    # TODO(synk): Wh could also be stored bf16 (halves its DMA/VMEM); kept f32
    # because the recurrent matmul is latency-bound at small B and f32 keeps
    # the serial chain drift-free.
    wi = jnp.zeros((2, Hp, 3 * Hp), jnp.float32)
    wh = jnp.zeros((2, Hp, 3 * Hp), jnp.float32)
    bi = jnp.zeros((2, 1, 3 * Hp), jnp.float32)
    bhn = jnp.zeros((2, 1, Hp), jnp.float32)
    for d in range(2):
        for g in range(3):
            wi = wi.at[d, :H, g * Hp:g * Hp + H].set(
                w_ih[d, g * H:(g + 1) * H, :].T)
            wh = wh.at[d, :H, g * Hp:g * Hp + H].set(
                w_hh[d, g * H:(g + 1) * H, :].T)
            bvec = b_ih[d, g * H:(g + 1) * H]
            if g < 2:
                bvec = bvec + b_hh[d, g * H:(g + 1) * H]
            bi = bi.at[d, 0, g * Hp:g * Hp + H].set(bvec)
        bhn = bhn.at[d, 0, :H].set(b_hh[d, 2 * H:3 * H])
    bias_pad = jnp.zeros((Hp,), jnp.float32).at[:H].set(bias)

    return dict(hidden_size=H, hidden_pad=Hp, bias=bias, bias_pad=bias_pad,
                w_ih=w_ih, w_hh=w_hh, b_ih=b_ih, b_hh=b_hh,
                wi=wi, wh=wh, bi=bi, bhn=bhn)


if __name__ == "__main__":
    H = 32
    key = jax.random.PRNGKey(0)
    k_node, k_param = jax.random.split(key)

    # a_scope: (start, size) per molecule; row 0 of `node` is the dummy row.
    # T = 7 with chunk=4 -> 2 time chunks, last one partial (exercises the
    # masked-timestep path in both directions).
    a_scope = [(1, 5), (6, 7), (13, 3)]
    n_atoms = sum(sz for _, sz in a_scope)
    N = 1 + n_atoms

    node = jax.random.normal(k_node, (N, H), jnp.float32)
    params = init_params(k_param, H)

    ref = jax.block_until_ready(batch_gru_forward_ref(node, a_scope, params))

    # f32 operands: tight correctness check.
    out32 = jax.block_until_ready(
        batch_gru_forward(node, a_scope, params, chunk=4,
                          compute_dtype=jnp.float32))
    assert out32.shape == (N, 2 * H), out32.shape
    err32 = float(jnp.max(jnp.abs(out32 - ref)))
    assert err32 < 2e-3, f"f32 max abs err {err32}"

    # bf16 operands for the projection matmuls (perf config), f32 gate math.
    out16 = jax.block_until_ready(
        batch_gru_forward(node, a_scope, params, chunk=4,
                          compute_dtype=jnp.bfloat16))
    err16 = float(jnp.max(jnp.abs(out16 - ref)))
    assert err16 < 5e-2, f"bf16 max abs err {err16}"

    print("KERNEL_OK")
</pallas_src>

<mosaic_0001>
module attributes {stable_mosaic.version = 11 : i64} {
  func.func @kernel(%arg0: i32, %arg1: memref<32x128xf32, #tpu.memory_space<vmem>>, %arg2: memref<32x128xf32, #tpu.memory_space<vmem>>, %arg3: memref<2x8x128xf32, #tpu.memory_space<vmem>>, %arg4: memref<2x128x384xf32, #tpu.memory_space<vmem>>, %arg5: memref<2x1x384xf32, #tpu.memory_space<vmem>>, %arg6: memref<2x128x384xf32, #tpu.memory_space<vmem>>, %arg7: memref<2x1x128xf32, #tpu.memory_space<vmem>>, %arg8: memref<32x128xf32, #tpu.memory_space<vmem>>, %arg9: memref<32x128xf32, #tpu.memory_space<vmem>>, %arg10: memref<32x384xf32, #tpu.memory_space<vmem>>, %arg11: memref<32x384xf32, #tpu.memory_space<vmem>>, %arg12: memref<8x128xf32, #tpu.memory_space<vmem>>, %arg13: memref<8x128xf32, #tpu.memory_space<vmem>>) attributes {dimension_semantics = [#tpu.dimension_semantics<arbitrary>], iteration_bounds = array<i64: 2>, scalar_prefetch = 0 : i64, scratch_operands = 4 : i64, tpu.core_type = #tpu.core_type<tc>, window_params = [{transform_indices = @transform_0, window_bounds = array<i64: 32, 128>}, {transform_indices = @transform_1, window_bounds = array<i64: 32, 128>}, {pipeline_mode = #tpu.pipeline_mode<synchronous>, transform_indices = @transform_2, window_bounds = array<i64: 2, 8, 128>}, {pipeline_mode = #tpu.pipeline_mode<synchronous>, transform_indices = @transform_3, window_bounds = array<i64: 2, 128, 384>}, {pipeline_mode = #tpu.pipeline_mode<synchronous>, transform_indices = @transform_4, window_bounds = array<i64: 2, 1, 384>}, {pipeline_mode = #tpu.pipeline_mode<synchronous>, transform_indices = @transform_5, window_bounds = array<i64: 2, 128, 384>}, {pipeline_mode = #tpu.pipeline_mode<synchronous>, transform_indices = @transform_6, window_bounds = array<i64: 2, 1, 128>}, {transform_indices = @transform_7, window_bounds = array<i64: 32, 128>}, {transform_indices = @transform_8, window_bounds = array<i64: 32, 128>}]} {
    %c0_i32 = arith.constant 0 : i32
    %0 = arith.cmpi eq, %arg0, %c0_i32 : i32
    %1 = arith.extui %0 : i1 to i32
    %c0_i32_0 = arith.constant 0 : i32
    %2 = arith.cmpi ne, %1, %c0_i32_0 : i32
    scf.if %2 {
      %c0_57 = arith.constant 0 : index
      %c0_58 = arith.constant 0 : index
      %c0_59 = arith.constant 0 : index
      %73 = vector.load %arg3[%c0_57, %c0_58, %c0_59] : memref<2x8x128xf32, #tpu.memory_space<vmem>>, vector<1x8x128xf32>
      %74 = vector.shape_cast %73 : vector<1x8x128xf32> to vector<8x128xf32>
      %c0_60 = arith.constant 0 : index
      %c0_61 = arith.constant 0 : index
      %75 = vector.load %arg12[%c0_60, %c0_61] : memref<8x128xf32, #tpu.memory_space<vmem>>, vector<8x128xf32>
      tpu.vector_store %arg12[%c0_60, %c0_61], %74 {strides = array<i32>} : memref<8x128xf32, #tpu.memory_space<vmem>>, vector<8x128xf32>,
      %c1_62 = arith.constant 1 : index
      %c0_63 = arith.constant 0 : index
      %c0_64 = arith.constant 0 : index
      %76 = vector.load %arg3[%c1_62, %c0_63, %c0_64] : memref<2x8x128xf32, #tpu.memory_space<vmem>>, vector<1x8x128xf32>
      %77 = vector.shape_cast %76 : vector<1x8x128xf32> to vector<8x128xf32>
      %c0_65 = arith.constant 0 : index
      %c0_66 = arith.constant 0 : index
      %78 = vector.load %arg13[%c0_65, %c0_66] : memref<8x128xf32, #tpu.memory_space<vmem>>, vector<8x128xf32>
      tpu.vector_store %arg13[%c0_65, %c0_66], %77 {strides = array<i32>} : memref<8x128xf32, #tpu.memory_space<vmem>>, vector<8x128xf32>,
    } else {
    }
    %c0 = arith.constant 0 : index
    %c0_1 = arith.constant 0 : index
    %3 = vector.load %arg1[%c0, %c0_1] : memref<32x128xf32, #tpu.memory_space<vmem>>, vector<32x128xf32>
    %c0_2 = arith.constant 0 : index
    %c0_3 = arith.constant 0 : index
    %c0_4 = arith.constant 0 : index
    %4 = vector.load %arg4[%c0_2, %c0_3, %c0_4] : memref<2x128x384xf32, #tpu.memory_space<vmem>>, vector<1x128x384xf32>
    %5 = vector.shape_cast %4 : vector<1x128x384xf32> to vector<128x384xf32>
    %cst = arith.constant dense<0.000000e+00> : vector<32x384xf32>
    %6 = tpu.matmul %3, %5, %cst {dimension_numbers = #tpu.dot_dimension_numbers<[1], [0], [0], [1], [0, 0, 1, 1], [], []>} : vector<32x128xf32>, vector<128x384xf32>, vector<32x384xf32> -> vector<32x384xf32>
    %c0_5 = arith.constant 0 : index
    %c0_6 = arith.constant 0 : index
    %c0_7 = arith.constant 0 : index
    %7 = vector.load %arg5[%c0_5, %c0_6, %c0_7] : memref<2x1x384xf32, #tpu.memory_space<vmem>>, vector<1x1x384xf32>
    %8 = vector.shape_cast %7 : vector<1x1x384xf32> to vector<1x384xf32>
    %9 = vector.broadcast %8 : vector<1x384xf32> to vector<32x384xf32>
    %10 = arith.addf %6, %9 : vector<32x384xf32>
    %c0_8 = arith.constant 0 : index
    %c0_9 = arith.constant 0 : index
    %11 = vector.load %arg10[%c0_8, %c0_9] : memref<32x384xf32, #tpu.memory_space<vmem>>, vector<32x384xf32>
    tpu.vector_store %arg10[%c0_8, %c0_9], %10 {strides = array<i32>} : memref<32x384xf32, #tpu.memory_space<vmem>>, vector<32x384xf32>,
    %c0_10 = arith.constant 0 : index
    %c0_11 = arith.constant 0 : index
    %12 = vector.load %arg2[%c0_10, %c0_11] : memref<32x128xf32, #tpu.memory_space<vmem>>, vector<32x128xf32>
    %c1 = arith.constant 1 : index
    %c0_12 = arith.constant 0 : index
    %c0_13 = arith.constant 0 : index
    %13 = vector.load %arg4[%c1, %c0_12, %c0_13] : memref<2x128x384xf32, #tpu.memory_space<vmem>>, vector<1x128x384xf32>
    %14 = vector.shape_cast %13 : vector<1x128x384xf32> to vector<128x384xf32>
    %cst_14 = arith.constant dense<0.000000e+00> : vector<32x384xf32>
    %15 = tpu.matmul %12, %14, %cst_14 {dimension_numbers = #tpu.dot_dimension_numbers<[1], [0], [0], [1], [0, 0, 1, 1], [], []>} : vector<32x128xf32>, vector<128x384xf32>, vector<32x384xf32> -> vector<32x384xf32>
    %c1_15 = arith.constant 1 : index
    %c0_16 = arith.constant 0 : index
    %c0_17 = arith.constant 0 : index
    %16 = vector.load %arg5[%c1_15, %c0_16, %c0_17] : memref<2x1x384xf32, #tpu.memory_space<vmem>>, vector<1x1x384xf32>
    %17 = vector.shape_cast %16 : vector<1x1x384xf32> to vector<1x384xf32>
    %18 = vector.broadcast %17 : vector<1x384xf32> to vector<32x384xf32>
    %19 = arith.addf %15, %18 : vector<32x384xf32>
    %c0_18 = arith.constant 0 : index
    %c0_19 = arith.constant 0 : index
    %20 = vector.load %arg11[%c0_18, %c0_19] : memref<32x384xf32, #tpu.memory_space<vmem>>, vector<32x384xf32>
    tpu.vector_store %arg11[%c0_18, %c0_19], %19 {strides = array<i32>} : memref<32x384xf32, #tpu.memory_space<vmem>>, vector<32x384xf32>,
    %c0_20 = arith.constant 0 : index
    %c0_21 = arith.constant 0 : index
    %c0_22 = arith.constant 0 : index
    %21 = vector.load %arg7[%c0_20, %c0_21, %c0_22] : memref<2x1x128xf32, #tpu.memory_space<vmem>>, vector<1x1x128xf32>
    %22 = vector.shape_cast %21 : vector<1x1x128xf32> to vector<1x128xf32>
    %23 = vector.shape_cast %22 : vector<1x128xf32> to vector<1x128xf32>
    %24 = vector.broadcast %23 : vector<1x128xf32> to vector<8x128xf32>
    %c1_23 = arith.constant 1 : index
    %c0_24 = arith.constant 0 : index
    %c0_25 = arith.constant 0 : index
    %25 = vector.load %arg7[%c1_23, %c0_24, %c0_25] : memref<2x1x128xf32, #tpu.memory_space<vmem>>, vector<1x1x128xf32>
    %26 = vector.shape_cast %25 : vector<1x1x128xf32> to vector<1x128xf32>
    %27 = vector.shape_cast %26 : vector<1x128xf32> to vector<1x128xf32>
    %28 = vector.broadcast %27 : vector<1x128xf32> to vector<8x128xf32>
    %c4_i32 = arith.constant 4 : i32
    %29 = arith.muli %arg0, %c4_i32 : i32
    %c0_i32_26 = arith.constant 0 : i32
    %30 = arith.addi %29, %c0_i32_26 : i32
    %c1_i32 = arith.constant 1 : i32
    %31 = arith.subi %c1_i32, %arg0 : i32
    %c4_i32_27 = arith.constant 4 : i32
    %32 = arith.muli %31, %c4_i32_27 : i32
    %c3_i32 = arith.constant 3 : i32
    %33 = arith.addi %32, %c3_i32 : i32
    %c7_i32 = arith.constant 7 : i32
    %34 = arith.cmpi slt, %30, %c7_i32 : i32
    %35 = arith.extui %34 : i1 to i32
    %c0_i32_28 = arith.constant 0 : i32
    %36 = arith.cmpi ne, %35, %c0_i32_28 : i32
    scf.if %36 {
      %c0_57 = arith.constant 0 : index
      %c0_58 = arith.constant 0 : index
      %73 = vector.load %arg10[%c0_57, %c0_58] : memref<32x384xf32, #tpu.memory_space<vmem>>, vector<8x384xf32>
      %c0_59 = arith.constant 0 : index
      %c0_60 = arith.constant 0 : index
      %74 = vector.load %arg12[%c0_59, %c0_60] : memref<8x128xf32, #tpu.memory_space<vmem>>, vector<8x128xf32>
      %c0_61 = arith.constant 0 : index
      %c0_62 = arith.constant 0 : index
      %c0_63 = arith.constant 0 : index
      %75 = vector.load %arg6[%c0_61, %c0_62, %c0_63] : memref<2x128x384xf32, #tpu.memory_space<vmem>>, vector<1x128x384xf32>
      %76 = vector.shape_cast %75 : vector<1x128x384xf32> to vector<128x384xf32>
      %cst_64 = arith.constant dense<0.000000e+00> : vector<8x384xf32>
      %77 = tpu.matmul %74, %76, %cst_64 {dimension_numbers = #tpu.dot_dimension_numbers<[1], [0], [0], [1], [0, 0, 1, 1], [], []>} : vector<8x128xf32>, vector<128x384xf32>, vector<8x384xf32> -> vector<8x384xf32>
      %78 = vector.extract_strided_slice %73 {offsets = [0, 0], sizes = [8, 128], strides = [1, 1]} : vector<8x384xf32> to vector<8x128xf32>
      %79 = vector.extract_strided_slice %77 {offsets = [0, 0], sizes = [8, 128], strides = [1, 1]} : vector<8x384xf32> to vector<8x128xf32>
      %80 = arith.addf %78, %79 : vector<8x128xf32>
      %81 = arith.negf %80 : vector<8x128xf32>
      %82 = math.exp %81 : vector<8x128xf32>
      %cst_65 = arith.constant 1.000000e+00 : f32
      %83 = vector.broadcast %cst_65 : f32 to vector<8x128xf32>
      %84 = arith.addf %83, %82 : vector<8x128xf32>
      %85 = arith.divf %83, %84 : vector<8x128xf32>
      %86 = vector.extract_strided_slice %73 {offsets = [0, 128], sizes = [8, 128], strides = [1, 1]} : vector<8x384xf32> to vector<8x128xf32>
      %87 = vector.extract_strided_slice %77 {offsets = [0, 128], sizes = [8, 128], strides = [1, 1]} : vector<8x384xf32> to vector<8x128xf32>
      %88 = arith.addf %86, %87 : vector<8x128xf32>
      %89 = arith.negf %88 : vector<8x128xf32>
      %90 = math.exp %89 : vector<8x128xf32>
      %cst_66 = arith.constant 1.000000e+00 : f32
      %91 = vector.broadcast %cst_66 : f32 to vector<8x128xf32>
      %92 = arith.addf %91, %90 : vector<8x128xf32>
      %93 = arith.divf %91, %92 : vector<8x128xf32>
      %94 = vector.extract_strided_slice %73 {offsets = [0, 256], sizes = [8, 128], strides = [1, 1]} : vector<8x384xf32> to vector<8x128xf32>
      %95 = vector.extract_strided_slice %77 {offsets = [0, 256], sizes = [8, 128], strides = [1, 1]} : vector<8x384xf32> to vector<8x128xf32>
      %96 = arith.addf %95, %24 : vector<8x128xf32>
      %97 = arith.mulf %85, %96 : vector<8x128xf32>
      %98 = arith.addf %94, %97 : vector<8x128xf32>
      %99 = math.tanh %98 : vector<8x128xf32>
      %100 = arith.subf %74, %99 : vector<8x128xf32>
      %101 = arith.mulf %93, %100 : vector<8x128xf32>
      %102 = arith.addf %99, %101 : vector<8x128xf32>
      %c0_67 = arith.constant 0 : index
      %c0_68 = arith.constant 0 : index
      %103 = vector.load %arg12[%c0_67, %c0_68] : memref<8x128xf32, #tpu.memory_space<vmem>>, vector<8x128xf32>
      tpu.vector_store %arg12[%c0_67, %c0_68], %102 {strides = array<i32>} : memref<8x128xf32, #tpu.memory_space<vmem>>, vector<8x128xf32>,
      %c0_69 = arith.constant 0 : index
      %c0_70 = arith.constant 0 : index
      %104 = vector.load %arg8[%c0_69, %c0_70] : memref<32x128xf32, #tpu.memory_space<vmem>>, vector<8x128xf32>
      tpu.vector_store %arg8[%c0_69, %c0_70], %102 {strides = array<i32>} : memref<32x128xf32, #tpu.memory_space<vmem>>, vector<8x128xf32>,
    } else {
    }
    %c7_i32_29 = arith.constant 7 : i32
    %37 = arith.cmpi slt, %33, %c7_i32_29 : i32
    %38 = arith.extui %37 : i1 to i32
    %c0_i32_30 = arith.constant 0 : i32
    %39 = arith.cmpi ne, %38, %c0_i32_30 : i32
    scf.if %39 {
      %c24 = arith.constant 24 : index
      %c0_57 = arith.constant 0 : index
      %73 = vector.load %arg11[%c24, %c0_57] : memref<32x384xf32, #tpu.memory_space<vmem>>, vector<8x384xf32>
      %c0_58 = arith.constant 0 : index
      %c0_59 = arith.constant 0 : index
      %74 = vector.load %arg13[%c0_58, %c0_59] : memref<8x128xf32, #tpu.memory_space<vmem>>, vector<8x128xf32>
      %c1_60 = arith.constant 1 : index
      %c0_61 = arith.constant 0 : index
      %c0_62 = arith.constant 0 : index
      %75 = vector.load %arg6[%c1_60, %c0_61, %c0_62] : memref<2x128x384xf32, #tpu.memory_space<vmem>>, vector<1x128x384xf32>
      %76 = vector.shape_cast %75 : vector<1x128x384xf32> to vector<128x384xf32>
      %cst_63 = arith.constant dense<0.000000e+00> : vector<8x384xf32>
      %77 = tpu.matmul %74, %76, %cst_63 {dimension_numbers = #tpu.dot_dimension_numbers<[1], [0], [0], [1], [0, 0, 1, 1], [], []>} : vector<8x128xf32>, vector<128x384xf32>, vector<8x384xf32> -> vector<8x384xf32>
      %78 = vector.extract_strided_slice %73 {offsets = [0, 0], sizes = [8, 128], strides = [1, 1]} : vector<8x384xf32> to vector<8x128xf32>
      %79 = vector.extract_strided_slice %77 {offsets = [0, 0], sizes = [8, 128], strides = [1, 1]} : vector<8x384xf32> to vector<8x128xf32>
      %80 = arith.addf %78, %79 : vector<8x128xf32>
      %81 = arith.negf %80 : vector<8x128xf32>
      %82 = math.exp %81 : vector<8x128xf32>
      %cst_64 = arith.constant 1.000000e+00 : f32
      %83 = vector.broadcast %cst_64 : f32 to vector<8x128xf32>
      %84 = arith.addf %83, %82 : vector<8x128xf32>
      %85 = arith.divf %83, %84 : vector<8x128xf32>
      %86 = vector.extract_strided_slice %73 {offsets = [0, 128], sizes = [8, 128], strides = [1, 1]} : vector<8x384xf32> to vector<8x128xf32>
      %87 = vector.extract_strided_slice %77 {offsets = [0, 128], sizes = [8, 128], strides = [1, 1]} : vector<8x384xf32> to vector<8x128xf32>
      %88 = arith.addf %86, %87 : vector<8x128xf32>
      %89 = arith.negf %88 : vector<8x128xf32>
      %90 = math.exp %89 : vector<8x128xf32>
      %cst_65 = arith.constant 1.000000e+00 : f32
      %91 = vector.broadcast %cst_65 : f32 to vector<8x128xf32>
      %92 = arith.addf %91, %90 : vector<8x128xf32>
      %93 = arith.divf %91, %92 : vector<8x128xf32>
      %94 = vector.extract_strided_slice %73 {offsets = [0, 256], sizes = [8, 128], strides = [1, 1]} : vector<8x384xf32> to vector<8x128xf32>
      %95 = vector.extract_strided_slice %77 {offsets = [0, 256], sizes = [8, 128], strides = [1, 1]} : vector<8x384xf32> to vector<8x128xf32>
      %96 = arith.addf %95, %28 : vector<8x128xf32>
      %97 = arith.mulf %85, %96 : vector<8x128xf32>
      %98 = arith.addf %94, %97 : vector<8x128xf32>
      %99 = math.tanh %98 : vector<8x128xf32>
      %100 = arith.subf %74, %99 : vector<8x128xf32>
      %101 = arith.mulf %93, %100 : vector<8x128xf32>
      %102 = arith.addf %99, %101 : vector<8x128xf32>
      %c0_66 = arith.constant 0 : index
      %c0_67 = arith.constant 0 : index
      %103 = vector.load %arg13[%c0_66, %c0_67] : memref<8x128xf32, #tpu.memory_space<vmem>>, vector<8x128xf32>
      tpu.vector_store %arg13[%c0_66, %c0_67], %102 {strides = array<i32>} : memref<8x128xf32, #tpu.memory_space<vmem>>, vector<8x128xf32>,
      %c24_68 = arith.constant 24 : index
      %c0_69 = arith.constant 0 : index
      %104 = vector.load %arg9[%c24_68, %c0_69] : memref<32x128xf32, #tpu.memory_space<vmem>>, vector<8x128xf32>
      tpu.vector_store %arg9[%c24_68, %c0_69], %102 {strides = array<i32>} : memref<32x128xf32, #tpu.memory_space<vmem>>, vector<8x128xf32>,
    } else {
    }
    %c4_i32_31 = arith.constant 4 : i32
    %40 = arith.muli %arg0, %c4_i32_31 : i32
    %c1_i32_32 = arith.constant 1 : i32
    %41 = arith.addi %40, %c1_i32_32 : i32
    %c1_i32_33 = arith.constant 1 : i32
    %42 = arith.subi %c1_i32_33, %arg0 : i32
    %c4_i32_34 = arith.constant 4 : i32
    %43 = arith.muli %42, %c4_i32_34 : i32
    %c2_i32 = arith.constant 2 : i32
    %44 = arith.addi %43, %c2_i32 : i32
    %c7_i32_35 = arith.constant 7 : i32
    %45 = arith.cmpi slt, %41, %c7_i32_35 : i32
    %46 = arith.extui %45 : i1 to i32
    %c0_i32_36 = arith.constant 0 : i32
    %47 = arith.cmpi ne, %46, %c0_i32_36 : i32
    scf.if %47 {
      %c8 = arith.constant 8 : index
      %c0_57 = arith.constant 0 : index
      %73 = vector.load %arg10[%c8, %c0_57] : memref<32x384xf32, #tpu.memory_space<vmem>>, vector<8x384xf32>
      %c0_58 = arith.constant 0 : index
      %c0_59 = arith.constant 0 : index
      %74 = vector.load %arg12[%c0_58, %c0_59] : memref<8x128xf32, #tpu.memory_space<vmem>>, vector<8x128xf32>
      %c0_60 = arith.constant 0 : index
      %c0_61 = arith.constant 0 : index
      %c0_62 = arith.constant 0 : index
      %75 = vector.load %arg6[%c0_60, %c0_61, %c0_62] : memref<2x128x384xf32, #tpu.memory_space<vmem>>, vector<1x128x384xf32>
      %76 = vector.shape_cast %75 : vector<1x128x384xf32> to vector<128x384xf32>
      %cst_63 = arith.constant dense<0.000000e+00> : vector<8x384xf32>
      %77 = tpu.matmul %74, %76, %cst_63 {dimension_numbers = #tpu.dot_dimension_numbers<[1], [0], [0], [1], [0, 0, 1, 1], [], []>} : vector<8x128xf32>, vector<128x384xf32>, vector<8x384xf32> -> vector<8x384xf32>
      %78 = vector.extract_strided_slice %73 {offsets = [0, 0], sizes = [8, 128], strides = [1, 1]} : vector<8x384xf32> to vector<8x128xf32>
      %79 = vector.extract_strided_slice %77 {offsets = [0, 0], sizes = [8, 128], strides = [1, 1]} : vector<8x384xf32> to vector<8x128xf32>
      %80 = arith.addf %78, %79 : vector<8x128xf32>
      %81 = arith.negf %80 : vector<8x128xf32>
      %82 = math.exp %81 : vector<8x128xf32>
      %cst_64 = arith.constant 1.000000e+00 : f32
      %83 = vector.broadcast %cst_64 : f32 to vector<8x128xf32>
      %84 = arith.addf %83, %82 : vector<8x128xf32>
      %85 = arith.divf %83, %84 : vector<8x128xf32>
      %86 = vector.extract_strided_slice %73 {offsets = [0, 128], sizes = [8, 128], strides = [1, 1]} : vector<8x384xf32> to vector<8x128xf32>
      %87 = vector.extract_strided_slice %77 {offsets = [0, 128], sizes = [8, 128], strides = [1, 1]} : vector<8x384xf32> to vector<8x128xf32>
      %88 = arith.addf %86, %87 : vector<8x128xf32>
      %89 = arith.negf %88 : vector<8x128xf32>
      %90 = math.exp %89 : vector<8x128xf32>
      %cst_65 = arith.constant 1.000000e+00 : f32
      %91 = vector.broadcast %cst_65 : f32 to vector<8x128xf32>
      %92 = arith.addf %91, %90 : vector<8x128xf32>
      %93 = arith.divf %91, %92 : vector<8x128xf32>
      %94 = vector.extract_strided_slice %73 {offsets = [0, 256], sizes = [8, 128], strides = [1, 1]} : vector<8x384xf32> to vector<8x128xf32>
      %95 = vector.extract_strided_slice %77 {offsets = [0, 256], sizes = [8, 128], strides = [1, 1]} : vector<8x384xf32> to vector<8x128xf32>
      %96 = arith.addf %95, %24 : vector<8x128xf32>
      %97 = arith.mulf %85, %96 : vector<8x128xf32>
      %98 = arith.addf %94, %97 : vector<8x128xf32>
      %99 = math.tanh %98 : vector<8x128xf32>
      %100 = arith.subf %74, %99 : vector<8x128xf32>
      %101 = arith.mulf %93, %100 : vector<8x128xf32>
      %102 = arith.addf %99, %101 : vector<8x128xf32>
      %c0_66 = arith.constant 0 : index
      %c0_67 = arith.constant 0 : index
      %103 = vector.load %arg12[%c0_66, %c0_67] : memref<8x128xf32, #tpu.memory_space<vmem>>, vector<8x128xf32>
      tpu.vector_store %arg12[%c0_66, %c0_67], %102 {strides = array<i32>} : memref<8x128xf32, #tpu.memory_space<vmem>>, vector<8x128xf32>,
      %c8_68 = arith.constant 8 : index
      %c0_69 = arith.constant 0 : index
      %104 = vector.load %arg8[%c8_68, %c0_69] : memref<32x128xf32, #tpu.memory_space<vmem>>, vector<8x128xf32>
      tpu.vector_store %arg8[%c8_68, %c0_69], %102 {strides = array<i32>} : memref<32x128xf32, #tpu.memory_space<vmem>>, vector<8x128xf32>,
    } else {
    }
    %c7_i32_37 = arith.constant 7 : i32
    %48 = arith.cmpi slt, %44, %c7_i32_37 : i32
    %49 = arith.extui %48 : i1 to i32
    %c0_i32_38 = arith.constant 0 : i32
    %50 = arith.cmpi ne, %49, %c0_i32_38 : i32
    scf.if %50 {
      %c16 = arith.constant 16 : index
      %c0_57 = arith.constant 0 : index
      %73 = vector.load %arg11[%c16, %c0_57] : memref<32x384xf32, #tpu.memory_space<vmem>>, vector<8x384xf32>
      %c0_58 = arith.constant 0 : index
      %c0_59 = arith.constant 0 : index
      %74 = vector.load %arg13[%c0_58, %c0_59] : memref<8x128xf32, #tpu.memory_space<vmem>>, vector<8x128xf32>
      %c1_60 = arith.constant 1 : index
      %c0_61 = arith.constant 0 : index
      %c0_62 = arith.constant 0 : index
      %75 = vector.load %arg6[%c1_60, %c0_61, %c0_62] : memref<2x128x384xf32, #tpu.memory_space<vmem>>, vector<1x128x384xf32>
      %76 = vector.shape_cast %75 : vector<1x128x384xf32> to vector<128x384xf32>
      %cst_63 = arith.constant dense<0.000000e+00> : vector<8x384xf32>
      %77 = tpu.matmul %74, %76, %cst_63 {dimension_numbers = #tpu.dot_dimension_numbers<[1], [0], [0], [1], [0, 0, 1, 1], [], []>} : vector<8x128xf32>, vector<128x384xf32>, vector<8x384xf32> -> vector<8x384xf32>
      %78 = vector.extract_strided_slice %73 {offsets = [0, 0], sizes = [8, 128], strides = [1, 1]} : vector<8x384xf32> to vector<8x128xf32>
      %79 = vector.extract_strided_slice %77 {offsets = [0, 0], sizes = [8, 128], strides = [1, 1]} : vector<8x384xf32> to vector<8x128xf32>
      %80 = arith.addf %78, %79 : vector<8x128xf32>
      %81 = arith.negf %80 : vector<8x128xf32>
      %82 = math.exp %81 : vector<8x128xf32>
      %cst_64 = arith.constant 1.000000e+00 : f32
      %83 = vector.broadcast %cst_64 : f32 to vector<8x128xf32>
      %84 = arith.addf %83, %82 : vector<8x128xf32>
      %85 = arith.divf %83, %84 : vector<8x128xf32>
      %86 = vector.extract_strided_slice %73 {offsets = [0, 128], sizes = [8, 128], strides = [1, 1]} : vector<8x384xf32> to vector<8x128xf32>
      %87 = vector.extract_strided_slice %77 {offsets = [0, 128], sizes = [8, 128], strides = [1, 1]} : vector<8x384xf32> to vector<8x128xf32>
      %88 = arith.addf %86, %87 : vector<8x128xf32>
      %89 = arith.negf %88 : vector<8x128xf32>
      %90 = math.exp %89 : vector<8x128xf32>
      %cst_65 = arith.constant 1.000000e+00 : f32
      %91 = vector.broadcast %cst_65 : f32 to vector<8x128xf32>
      %92 = arith.addf %91, %90 : vector<8x128xf32>
      %93 = arith.divf %91, %92 : vector<8x128xf32>
      %94 = vector.extract_strided_slice %73 {offsets = [0, 256], sizes = [8, 128], strides = [1, 1]} : vector<8x384xf32> to vector<8x128xf32>
      %95 = vector.extract_strided_slice %77 {offsets = [0, 256], sizes = [8, 128], strides = [1, 1]} : vector<8x384xf32> to vector<8x128xf32>
      %96 = arith.addf %95, %28 : vector<8x128xf32>
      %97 = arith.mulf %85, %96 : vector<8x128xf32>
      %98 = arith.addf %94, %97 : vector<8x128xf32>
      %99 = math.tanh %98 : vector<8x128xf32>
      %100 = arith.subf %74, %99 : vector<8x128xf32>
      %101 = arith.mulf %93, %100 : vector<8x128xf32>
      %102 = arith.addf %99, %101 : vector<8x128xf32>
      %c0_66 = arith.constant 0 : index
      %c0_67 = arith.constant 0 : index
      %103 = vector.load %arg13[%c0_66, %c0_67] : memref<8x128xf32, #tpu.memory_space<vmem>>, vector<8x128xf32>
      tpu.vector_store %arg13[%c0_66, %c0_67], %102 {strides = array<i32>} : memref<8x128xf32, #tpu.memory_space<vmem>>, vector<8x128xf32>,
      %c16_68 = arith.constant 16 : index
      %c0_69 = arith.constant 0 : index
      %104 = vector.load %arg9[%c16_68, %c0_69] : memref<32x128xf32, #tpu.memory_space<vmem>>, vector<8x128xf32>
      tpu.vector_store %arg9[%c16_68, %c0_69], %102 {strides = array<i32>} : memref<32x128xf32, #tpu.memory_space<vmem>>, vector<8x128xf32>,
    } else {
    }
    %c4_i32_39 = arith.constant 4 : i32
    %51 = arith.muli %arg0, %c4_i32_39 : i32
    %c2_i32_40 = arith.constant 2 : i32
    %52 = arith.addi %51, %c2_i32_40 : i32
    %c1_i32_41 = arith.constant 1 : i32
    %53 = arith.subi %c1_i32_41, %arg0 : i32
    %c4_i32_42 = arith.constant 4 : i32
    %54 = arith.muli %53, %c4_i32_42 : i32
    %c1_i32_43 = arith.constant 1 : i32
    %55 = arith.addi %54, %c1_i32_43 : i32
    %c7_i32_44 = arith.constant 7 : i32
    %56 = arith.cmpi slt, %52, %c7_i32_44 : i32
    %57 = arith.extui %56 : i1 to i32
    %c0_i32_45 = arith.constant 0 : i32
    %58 = arith.cmpi ne, %57, %c0_i32_45 : i32
    scf.if %58 {
      %c16 = arith.constant 16 : index
      %c0_57 = arith.constant 0 : index
      %73 = vector.load %arg10[%c16, %c0_57] : memref<32x384xf32, #tpu.memory_space<vmem>>, vector<8x384xf32>
      %c0_58 = arith.constant 0 : index
      %c0_59 = arith.constant 0 : index
      %74 = vector.load %arg12[%c0_58, %c0_59] : memref<8x128xf32, #tpu.memory_space<vmem>>, vector<8x128xf32>
      %c0_60 = arith.constant 0 : index
      %c0_61 = arith.constant 0 : index
      %c0_62 = arith.constant 0 : index
      %75 = vector.load %arg6[%c0_60, %c0_61, %c0_62] : memref<2x128x384xf32, #tpu.memory_space<vmem>>, vector<1x128x384xf32>
      %76 = vector.shape_cast %75 : vector<1x128x384xf32> to vector<128x384xf32>
      %cst_63 = arith.constant dense<0.000000e+00> : vector<8x384xf32>
      %77 = tpu.matmul %74, %76, %cst_63 {dimension_numbers = #tpu.dot_dimension_numbers<[1], [0], [0], [1], [0, 0, 1, 1], [], []>} : vector<8x128xf32>, vector<128x384xf32>, vector<8x384xf32> -> vector<8x384xf32>
      %78 = vector.extract_strided_slice %73 {offsets = [0, 0], sizes = [8, 128], strides = [1, 1]} : vector<8x384xf32> to vector<8x128xf32>
      %79 = vector.extract_strided_slice %77 {offsets = [0, 0], sizes = [8, 128], strides = [1, 1]} : vector<8x384xf32> to vector<8x128xf32>
      %80 = arith.addf %78, %79 : vector<8x128xf32>
      %81 = arith.negf %80 : vector<8x128xf32>
      %82 = math.exp %81 : vector<8x128xf32>
      %cst_64 = arith.constant 1.000000e+00 : f32
      %83 = vector.broadcast %cst_64 : f32 to vector<8x128xf32>
      %84 = arith.addf %83, %82 : vector<8x128xf32>
      %85 = arith.divf %83, %84 : vector<8x128xf32>
      %86 = vector.extract_strided_slice %73 {offsets = [0, 128], sizes = [8, 128], strides = [1, 1]} : vector<8x384xf32> to vector<8x128xf32>
      %87 = vector.extract_strided_slice %77 {offsets = [0, 128], sizes = [8, 128], strides = [1, 1]} : vector<8x384xf32> to vector<8x128xf32>
      %88 = arith.addf %86, %87 : vector<8x128xf32>
      %89 = arith.negf %88 : vector<8x128xf32>
      %90 = math.exp %89 : vector<8x128xf32>
      %cst_65 = arith.constant 1.000000e+00 : f32
      %91 = vector.broadcast %cst_65 : f32 to vector<8x128xf32>
      %92 = arith.addf %91, %90 : vector<8x128xf32>
      %93 = arith.divf %91, %92 : vector<8x128xf32>
      %94 = vector.extract_strided_slice %73 {offsets = [0, 256], sizes = [8, 128], strides = [1, 1]} : vector<8x384xf32> to vector<8x128xf32>
      %95 = vector.extract_strided_slice %77 {offsets = [0, 256], sizes = [8, 128], strides = [1, 1]} : vector<8x384xf32> to vector<8x128xf32>
      %96 = arith.addf %95, %24 : vector<8x128xf32>
      %97 = arith.mulf %85, %96 : vector<8x128xf32>
      %98 = arith.addf %94, %97 : vector<8x128xf32>
      %99 = math.tanh %98 : vector<8x128xf32>
      %100 = arith.subf %74, %99 : vector<8x128xf32>
      %101 = arith.mulf %93, %100 : vector<8x128xf32>
      %102 = arith.addf %99, %101 : vector<8x128xf32>
      %c0_66 = arith.constant 0 : index
      %c0_67 = arith.constant 0 : index
      %103 = vector.load %arg12[%c0_66, %c0_67] : memref<8x128xf32, #tpu.memory_space<vmem>>, vector<8x128xf32>
      tpu.vector_store %arg12[%c0_66, %c0_67], %102 {strides = array<i32>} : memref<8x128xf32, #tpu.memory_space<vmem>>, vector<8x128xf32>,
      %c16_68 = arith.constant 16 : index
      %c0_69 = arith.constant 0 : index
      %104 = vector.load %arg8[%c16_68, %c0_69] : memref<32x128xf32, #tpu.memory_space<vmem>>, vector<8x128xf32>
      tpu.vector_store %arg8[%c16_68, %c0_69], %102 {strides = array<i32>} : memref<32x128xf32, #tpu.memory_space<vmem>>, vector<8x128xf32>,
    } else {
    }
    %c7_i32_46 = arith.constant 7 : i32
    %59 = arith.cmpi slt, %55, %c7_i32_46 : i32
    %60 = arith.extui %59 : i1 to i32
    %c0_i32_47 = arith.constant 0 : i32
    %61 = arith.cmpi ne, %60, %c0_i32_47 : i32
    scf.if %61 {
      %c8 = arith.constant 8 : index
      %c0_57 = arith.constant 0 : index
      %73 = vector.load %arg11[%c8, %c0_57] : memref<32x384xf32, #tpu.memory_space<vmem>>, vector<8x384xf32>
      %c0_58 = arith.constant 0 : index
      %c0_59 = arith.constant 0 : index
      %74 = vector.load %arg13[%c0_58, %c0_59] : memref<8x128xf32, #tpu.memory_space<vmem>>, vector<8x128xf32>
      %c1_60 = arith.constant 1 : index
      %c0_61 = arith.constant 0 : index
      %c0_62 = arith.constant 0 : index
      %75 = vector.load %arg6[%c1_60, %c0_61, %c0_62] : memref<2x128x384xf32, #tpu.memory_space<vmem>>, vector<1x128x384xf32>
      %76 = vector.shape_cast %75 : vector<1x128x384xf32> to vector<128x384xf32>
      %cst_63 = arith.constant dense<0.000000e+00> : vector<8x384xf32>
      %77 = tpu.matmul %74, %76, %cst_63 {dimension_numbers = #tpu.dot_dimension_numbers<[1], [0], [0], [1], [0, 0, 1, 1], [], []>} : vector<8x128xf32>, vector<128x384xf32>, vector<8x384xf32> -> vector<8x384xf32>
      %78 = vector.extract_strided_slice %73 {offsets = [0, 0], sizes = [8, 128], strides = [1, 1]} : vector<8x384xf32> to vector<8x128xf32>
      %79 = vector.extract_strided_slice %77 {offsets = [0, 0], sizes = [8, 128], strides = [1, 1]} : vector<8x384xf32> to vector<8x128xf32>
      %80 = arith.addf %78, %79 : vector<8x128xf32>
      %81 = arith.negf %80 : vector<8x128xf32>
      %82 = math.exp %81 : vector<8x128xf32>
      %cst_64 = arith.constant 1.000000e+00 : f32
      %83 = vector.broadcast %cst_64 : f32 to vector<8x128xf32>
      %84 = arith.addf %83, %82 : vector<8x128xf32>
      %85 = arith.divf %83, %84 : vector<8x128xf32>
      %86 = vector.extract_strided_slice %73 {offsets = [0, 128], sizes = [8, 128], strides = [1, 1]} : vector<8x384xf32> to vector<8x128xf32>
      %87 = vector.extract_strided_slice %77 {offsets = [0, 128], sizes = [8, 128], strides = [1, 1]} : vector<8x384xf32> to vector<8x128xf32>
      %88 = arith.addf %86, %87 : vector<8x128xf32>
      %89 = arith.negf %88 : vector<8x128xf32>
      %90 = math.exp %89 : vector<8x128xf32>
      %cst_65 = arith.constant 1.000000e+00 : f32
      %91 = vector.broadcast %cst_65 : f32 to vector<8x128xf32>
      %92 = arith.addf %91, %90 : vector<8x128xf32>
      %93 = arith.divf %91, %92 : vector<8x128xf32>
      %94 = vector.extract_strided_slice %73 {offsets = [0, 256], sizes = [8, 128], strides = [1, 1]} : vector<8x384xf32> to vector<8x128xf32>
      %95 = vector.extract_strided_slice %77 {offsets = [0, 256], sizes = [8, 128], strides = [1, 1]} : vector<8x384xf32> to vector<8x128xf32>
      %96 = arith.addf %95, %28 : vector<8x128xf32>
      %97 = arith.mulf %85, %96 : vector<8x128xf32>
      %98 = arith.addf %94, %97 : vector<8x128xf32>
      %99 = math.tanh %98 : vector<8x128xf32>
      %100 = arith.subf %74, %99 : vector<8x128xf32>
      %101 = arith.mulf %93, %100 : vector<8x128xf32>
      %102 = arith.addf %99, %101 : vector<8x128xf32>
      %c0_66 = arith.constant 0 : index
      %c0_67 = arith.constant 0 : index
      %103 = vector.load %arg13[%c0_66, %c0_67] : memref<8x128xf32, #tpu.memory_space<vmem>>, vector<8x128xf32>
      tpu.vector_store %arg13[%c0_66, %c0_67], %102 {strides = array<i32>} : memref<8x128xf32, #tpu.memory_space<vmem>>, vector<8x128xf32>,
      %c8_68 = arith.constant 8 : index
      %c0_69 = arith.constant 0 : index
      %104 = vector.load %arg9[%c8_68, %c0_69] : memref<32x128xf32, #tpu.memory_space<vmem>>, vector<8x128xf32>
      tpu.vector_store %arg9[%c8_68, %c0_69], %102 {strides = array<i32>} : memref<32x128xf32, #tpu.memory_space<vmem>>, vector<8x128xf32>,
    } else {
    }
    %c4_i32_48 = arith.constant 4 : i32
    %62 = arith.muli %arg0, %c4_i32_48 : i32
    %c3_i32_49 = arith.constant 3 : i32
    %63 = arith.addi %62, %c3_i32_49 : i32
    %c1_i32_50 = arith.constant 1 : i32
    %64 = arith.subi %c1_i32_50, %arg0 : i32
    %c4_i32_51 = arith.constant 4 : i32
    %65 = arith.muli %64, %c4_i32_51 : i32
    %c0_i32_52 = arith.constant 0 : i32
    %66 = arith.addi %65, %c0_i32_52 : i32
    %c7_i32_53 = arith.constant 7 : i32
    %67 = arith.cmpi slt, %63, %c7_i32_53 : i32
    %68 = arith.extui %67 : i1 to i32
    %c0_i32_54 = arith.constant 0 : i32
    %69 = arith.cmpi ne, %68, %c0_i32_54 : i32
    scf.if %69 {
      %c24 = arith.constant 24 : index
      %c0_57 = arith.constant 0 : index
      %73 = vector.load %arg10[%c24, %c0_57] : memref<32x384xf32, #tpu.memory_space<vmem>>, vector<8x384xf32>
      %c0_58 = arith.constant 0 : index
      %c0_59 = arith.constant 0 : index
      %74 = vector.load %arg12[%c0_58, %c0_59] : memref<8x128xf32, #tpu.memory_space<vmem>>, vector<8x128xf32>
      %c0_60 = arith.constant 0 : index
      %c0_61 = arith.constant 0 : index
      %c0_62 = arith.constant 0 : index
      %75 = vector.load %arg6[%c0_60, %c0_61, %c0_62] : memref<2x128x384xf32, #tpu.memory_space<vmem>>, vector<1x128x384xf32>
      %76 = vector.shape_cast %75 : vector<1x128x384xf32> to vector<128x384xf32>
      %cst_63 = arith.constant dense<0.000000e+00> : vector<8x384xf32>
      %77 = tpu.matmul %74, %76, %cst_63 {dimension_numbers = #tpu.dot_dimension_numbers<[1], [0], [0], [1], [0, 0, 1, 1], [], []>} : vector<8x128xf32>, vector<128x384xf32>, vector<8x384xf32> -> vector<8x384xf32>
      %78 = vector.extract_strided_slice %73 {offsets = [0, 0], sizes = [8, 128], strides = [1, 1]} : vector<8x384xf32> to vector<8x128xf32>
      %79 = vector.extract_strided_slice %77 {offsets = [0, 0], sizes = [8, 128], strides = [1, 1]} : vector<8x384xf32> to vector<8x128xf32>
      %80 = arith.addf %78, %79 : vector<8x128xf32>
      %81 = arith.negf %80 : vector<8x128xf32>
      %82 = math.exp %81 : vector<8x128xf32>
      %cst_64 = arith.constant 1.000000e+00 : f32
      %83 = vector.broadcast %cst_64 : f32 to vector<8x128xf32>
      %84 = arith.addf %83, %82 : vector<8x128xf32>
      %85 = arith.divf %83, %84 : vector<8x128xf32>
      %86 = vector.extract_strided_slice %73 {offsets = [0, 128], sizes = [8, 128], strides = [1, 1]} : vector<8x384xf32> to vector<8x128xf32>
      %87 = vector.extract_strided_slice %77 {offsets = [0, 128], sizes = [8, 128], strides = [1, 1]} : vector<8x384xf32> to vector<8x128xf32>
      %88 = arith.addf %86, %87 : vector<8x128xf32>
      %89 = arith.negf %88 : vector<8x128xf32>
      %90 = math.exp %89 : vector<8x128xf32>
      %cst_65 = arith.constant 1.000000e+00 : f32
      %91 = vector.broadcast %cst_65 : f32 to vector<8x128xf32>
      %92 = arith.addf %91, %90 : vector<8x128xf32>
      %93 = arith.divf %91, %92 : vector<8x128xf32>
      %94 = vector.extract_strided_slice %73 {offsets = [0, 256], sizes = [8, 128], strides = [1, 1]} : vector<8x384xf32> to vector<8x128xf32>
      %95 = vector.extract_strided_slice %77 {offsets = [0, 256], sizes = [8, 128], strides = [1, 1]} : vector<8x384xf32> to vector<8x128xf32>
      %96 = arith.addf %95, %24 : vector<8x128xf32>
      %97 = arith.mulf %85, %96 : vector<8x128xf32>
      %98 = arith.addf %94, %97 : vector<8x128xf32>
      %99 = math.tanh %98 : vector<8x128xf32>
      %100 = arith.subf %74, %99 : vector<8x128xf32>
      %101 = arith.mulf %93, %100 : vector<8x128xf32>
      %102 = arith.addf %99, %101 : vector<8x128xf32>
      %c0_66 = arith.constant 0 : index
      %c0_67 = arith.constant 0 : index
      %103 = vector.load %arg12[%c0_66, %c0_67] : memref<8x128xf32, #tpu.memory_space<vmem>>, vector<8x128xf32>
      tpu.vector_store %arg12[%c0_66, %c0_67], %102 {strides = array<i32>} : memref<8x128xf32, #tpu.memory_space<vmem>>, vector<8x128xf32>,
      %c24_68 = arith.constant 24 : index
      %c0_69 = arith.constant 0 : index
      %104 = vector.load %arg8[%c24_68, %c0_69] : memref<32x128xf32, #tpu.memory_space<vmem>>, vector<8x128xf32>
      tpu.vector_store %arg8[%c24_68, %c0_69], %102 {strides = array<i32>} : memref<32x128xf32, #tpu.memory_space<vmem>>, vector<8x128xf32>,
    } else {
    }
    %c7_i32_55 = arith.constant 7 : i32
    %70 = arith.cmpi slt, %66, %c7_i32_55 : i32
    %71 = arith.extui %70 : i1 to i32
    %c0_i32_56 = arith.constant 0 : i32
    %72 = arith.cmpi ne, %71, %c0_i32_56 : i32
    scf.if %72 {
      %c0_57 = arith.constant 0 : index
      %c0_58 = arith.constant 0 : index
      %73 = vector.load %arg11[%c0_57, %c0_58] : memref<32x384xf32, #tpu.memory_space<vmem>>, vector<8x384xf32>
      %c0_59 = arith.constant 0 : index
      %c0_60 = arith.constant 0 : index
      %74 = vector.load %arg13[%c0_59, %c0_60] : memref<8x128xf32, #tpu.memory_space<vmem>>, vector<8x128xf32>
      %c1_61 = arith.constant 1 : index
      %c0_62 = arith.constant 0 : index
      %c0_63 = arith.constant 0 : index
      %75 = vector.load %arg6[%c1_61, %c0_62, %c0_63] : memref<2x128x384xf32, #tpu.memory_space<vmem>>, vector<1x128x384xf32>
      %76 = vector.shape_cast %75 : vector<1x128x384xf32> to vector<128x384xf32>
      %cst_64 = arith.constant dense<0.000000e+00> : vector<8x384xf32>
      %77 = tpu.matmul %74, %76, %cst_64 {dimension_numbers = #tpu.dot_dimension_numbers<[1], [0], [0], [1], [0, 0, 1, 1], [], []>} : vector<8x128xf32>, vector<128x384xf32>, vector<8x384xf32> -> vector<8x384xf32>
      %78 = vector.extract_strided_slice %73 {offsets = [0, 0], sizes = [8, 128], strides = [1, 1]} : vector<8x384xf32> to vector<8x128xf32>
      %79 = vector.extract_strided_slice %77 {offsets = [0, 0], sizes = [8, 128], strides = [1, 1]} : vector<8x384xf32> to vector<8x128xf32>
      %80 = arith.addf %78, %79 : vector<8x128xf32>
      %81 = arith.negf %80 : vector<8x128xf32>
      %82 = math.exp %81 : vector<8x128xf32>
      %cst_65 = arith.constant 1.000000e+00 : f32
      %83 = vector.broadcast %cst_65 : f32 to vector<8x128xf32>
      %84 = arith.addf %83, %82 : vector<8x128xf32>
      %85 = arith.divf %83, %84 : vector<8x128xf32>
      %86 = vector.extract_strided_slice %73 {offsets = [0, 128], sizes = [8, 128], strides = [1, 1]} : vector<8x384xf32> to vector<8x128xf32>
      %87 = vector.extract_strided_slice %77 {offsets = [0, 128], sizes = [8, 128], strides = [1, 1]} : vector<8x384xf32> to vector<8x128xf32>
      %88 = arith.addf %86, %87 : vector<8x128xf32>
      %89 = arith.negf %88 : vector<8x128xf32>
      %90 = math.exp %89 : vector<8x128xf32>
      %cst_66 = arith.constant 1.000000e+00 : f32
      %91 = vector.broadcast %cst_66 : f32 to vector<8x128xf32>
      %92 = arith.addf %91, %90 : vector<8x128xf32>
      %93 = arith.divf %91, %92 : vector<8x128xf32>
      %94 = vector.extract_strided_slice %73 {offsets = [0, 256], sizes = [8, 128], strides = [1, 1]} : vector<8x384xf32> to vector<8x128xf32>
      %95 = vector.extract_strided_slice %77 {offsets = [0, 256], sizes = [8, 128], strides = [1, 1]} : vector<8x384xf32> to vector<8x128xf32>
      %96 = arith.addf %95, %28 : vector<8x128xf32>
      %97 = arith.mulf %85, %96 : vector<8x128xf32>
      %98 = arith.addf %94, %97 : vector<8x128xf32>
      %99 = math.tanh %98 : vector<8x128xf32>
      %100 = arith.subf %74, %99 : vector<8x128xf32>
      %101 = arith.mulf %93, %100 : vector<8x128xf32>
      %102 = arith.addf %99, %101 : vector<8x128xf32>
      %c0_67 = arith.constant 0 : index
      %c0_68 = arith.constant 0 : index
      %103 = vector.load %arg13[%c0_67, %c0_68] : memref<8x128xf32, #tpu.memory_space<vmem>>, vector<8x128xf32>
      tpu.vector_store %arg13[%c0_67, %c0_68], %102 {strides = array<i32>} : memref<8x128xf32, #tpu.memory_space<vmem>>, vector<8x128xf32>,
      %c0_69 = arith.constant 0 : index
      %c0_70 = arith.constant 0 : index
      %104 = vector.load %arg9[%c0_69, %c0_70] : memref<32x128xf32, #tpu.memory_space<vmem>>, vector<8x128xf32>
      tpu.vector_store %arg9[%c0_69, %c0_70], %102 {strides = array<i32>} : memref<32x128xf32, #tpu.memory_space<vmem>>, vector<8x128xf32>,
    } else {
    }
    return
  }
  func.func @transform_0(%arg0: i32) -> (i32, i32) {
    %c0_i32 = arith.constant 0 : i32
    %c0_i32_0 = arith.constant 0 : i32
    return %arg0, %c0_i32 : i32, i32
  }
  func.func @transform_1(%arg0: i32) -> (i32, i32) {
    %c1_i32 = arith.constant 1 : i32
    %0 = arith.subi %c1_i32, %arg0 : i32
    %c0_i32 = arith.constant 0 : i32
    %c0_i32_0 = arith.constant 0 : i32
    return %0, %c0_i32 : i32, i32
  }
  func.func @transform_2(%arg0: i32) -> (i32, i32, i32) {
    %c0_i32 = arith.constant 0 : i32
    %c0_i32_0 = arith.constant 0 : i32
    %c0_i32_1 = arith.constant 0 : i32
    %c0_i32_2 = arith.constant 0 : i32
    return %c0_i32, %c0_i32_0, %c0_i32_1 : i32, i32, i32
  }
  func.func @transform_3(%arg0: i32) -> (i32, i32, i32) {
    %c0_i32 = arith.constant 0 : i32
    %c0_i32_0 = arith.constant 0 : i32
    %c0_i32_1 = arith.constant 0 : i32
    %c0_i32_2 = arith.constant 0 : i32
    return %c0_i32, %c0_i32_0, %c0_i32_1 : i32, i32, i32
  }
  func.func @transform_4(%arg0: i32) -> (i32, i32, i32) {
    %c0_i32 = arith.constant 0 : i32
    %c0_i32_0 = arith.constant 0 : i32
    %c0_i32_1 = arith.constant 0 : i32
    %c0_i32_2 = arith.constant 0 : i32
    return %c0_i32, %c0_i32_0, %c0_i32_1 : i32, i32, i32
  }
  func.func @transform_5(%arg0: i32) -> (i32, i32, i32) {
    %c0_i32 = arith.constant 0 : i32
    %c0_i32_0 = arith.constant 0 : i32
    %c0_i32_1 = arith.constant 0 : i32
    %c0_i32_2 = arith.constant 0 : i32
    return %c0_i32, %c0_i32_0, %c0_i32_1 : i32, i32, i32
  }
  func.func @transform_6(%arg0: i32) -> (i32, i32, i32) {
    %c0_i32 = arith.constant 0 : i32
    %c0_i32_0 = arith.constant 0 : i32
    %c0_i32_1 = arith.constant 0 : i32
    %c0_i32_2 = arith.constant 0 : i32
    return %c0_i32, %c0_i32_0, %c0_i32_1 : i32, i32, i32
  }
  func.func @transform_7(%arg0: i32) -> (i32, i32) {
    %c0_i32 = arith.constant 0 : i32
    %c0_i32_0 = arith.constant 0 : i32
    return %arg0, %c0_i32 : i32, i32
  }
  func.func @transform_8(%arg0: i32) -> (i32, i32) {
    %c1_i32 = arith.constant 1 : i32
    %0 = arith.subi %c1_i32, %arg0 : i32
    %c0_i32 = arith.constant 0 : i32
    %c0_i32_0 = arith.constant 0 : i32
    return %0, %c0_i32 : i32, i32
  }
}

</mosaic_0001>

<bundles_post_ra>
// kernel: _batch_gru_core.1
= control target key start
LH: loop header
LB: loop body
LE: loop exit
PB: predicated region body
PF: predicated region fallthrough
CT: control target
= control target key end

     0   :  { %s3765_s27 = smov 0   ;;  %s5456_s0 = inlined_call_operand.vmem [shape: f32[64,128], index: 0, kind: input, shape index: {}, may-alias: {0,1}]   ;;  %s5457_s1 = inlined_call_operand.vmem [shape: f32[64,128], index: 1, kind: input, shape index: {}, may-alias: {0,1}]   ;;  %s5458_s2 = inlined_call_operand.vmem [shape: f32[2,8,128], index: 2, kind: input, shape index: {}]   ;;  %s5459_s3 = inlined_call_operand.vmem [shape: f32[2,128,384], index: 3, kind: input, shape index: {}]   ;;  %s5460_s4 = inlined_call_operand.vmem [shape: f32[2,1,384], index: 4, kind: input, shape index: {}]   ;;  %s5461_s5 = inlined_call_operand.vmem [shape: f32[2,128,384], index: 5, kind: input, shape index: {}]   ;;  %s5462_s6 = inlined_call_operand.vmem [shape: f32[2,1,128], index: 6, kind: input, shape index: {}]   ;;  %s5463_s7 = inlined_call_operand.vmem [shape: f32[64,128], index: 7, kind: output, shape index: {0}]   ;;  %s5464_s8 = inlined_call_operand.vmem [shape: f32[64,128], index: 8, kind: output, shape index: {1}]  }
   0x1 LB: > { %s2771_s28 = sadd.s32 4294967295, %s3701_s27   ;;  %p2775_p0 = scmp.ge.s32.totalorder %s3701_s27, 1  ;;  %s3701_s27 = sphi %s3765_s27, %s19_s27  }
   0x2   : > { %p283_p1 = scmp.lt.s32.totalorder %s3701_s27, 3 }
   0x4   : > { %p284_p2 = pnand %p2775_p0, %p283_p1 }
   0x5   : > { %s3773_s29 = sshll.u32 (!%p284_p2), %s2771_s28, 2  ;;  %s335_s30 = ssub.s32 (!%p284_p2), 1, %s2771_s28 }
   0x6   : > { %287 = sbr.rel (%p284_p2) target bundleno = 2629 (0xa45), region = 48  ;;  %p330_p3 = scmp.lt.s32.totalorder (!%p284_p2), %s3773_s29, 7 }
   0x7   : > { %s3776_s9 = sshll.u32 (!%p284_p2), %s335_s30, 2  ;;  %p2784_p5 = scmp.ne.s32.totalorder (!%p284_p2), %s2771_s28, 0 }
   0x8   : > { %p337_p4 = scmp.lt.s32.totalorder (!%p284_p2), %s3776_s9, 7 }
   0xb   : > { %s331_s10 = scalar_select %p330_p3, %s3773_s29, 7 }
   0xc   : > { %s338_s11 = scalar_select %p337_p4, %s3776_s9, 7 }
   0xd   : > { %s2777_s12 = sshll.u32 %s331_s10, 3  ;;  %360 = sbr.rel (%p2784_p5) target bundleno = 20 (0x14), region = 52 }
   0xe   : > { %s3784_s15 = scalar_lea.vmem %s5456_s0, %s2777_s12  ;;  %s2779_s16 = sshll.u32 %s338_s11, 3 }
   0xf   : > { %s3789_s19 = scalar_lea.vmem %s5457_s1, %s2779_s16  ;;  %s3794_s22 = scalar_lea.vmem %s5463_s7, %s2777_s12 }
  0x10   : > { %s3799_s25 = scalar_lea.vmem %s5464_s8, %s2779_s16 }
  0x12   : > { %v361_v0 = vld [vmem:[%s5458_s2] sm:$0xff]  ;;  %v2785_v1 = vld [vmem:[%s5458_s2 + $0x8] sm:$0xff] }
  0x13   : > { %362 = vst [vmem:[#allocation4] sm:$0xff] %v361_v0  ;;  %365 = vst [vmem:[#allocation5] sm:$0xff] %v2785_v1 }
  0x14 PF: > { %v416_v2 = vld [vmem:[%s5459_s3 + $0x170] sm:$0xff]  ;;  %v415_v3 = vld [vmem:[%s5459_s3 + $0x168] sm:$0xff]  ;;  %v413_v4 = vld [vmem:[%s5459_s3 + $0x158] sm:$0xff]  ;;  %v3703_v6 = vmov 0.0   ;;  %s896_s11 = sadd.s32 3, %s3776_s9  ;;  %p2840_p6 = scmp.ge.s32.totalorder %s3773_s29, 7 }
  0x15   : > { %435 = vmatprep.subr.mxu0 %v416_v2  ;;  %v412_v5 = vld [vmem:[%s5459_s3 + $0x150] sm:$0xff]  ;;  %499 = vmatprep.mubr.f32.mxu0 %v3703_v6  ;;  %v410_v7 = vld [vmem:[%s5459_s3 + $0x140] sm:$0xff]  ;;  %v417_v8 = vld [vmem:[%s5459_s3 + $0x178] sm:$0xff] }
  0x16   : > { %436 = vmatpush1.msra.mxu0 %v415_v3  ;;  %v409_v9 = vld [vmem:[%s5459_s3 + $0x138] sm:$0xff]  ;;  %3234 = vmatprep.subr.mxu1 %v417_v8  ;;  %v414_v10 = vld [vmem:[%s5459_s3 + $0x160] sm:$0xff]  ;;  %v407_v11 = vld [vmem:[%s5459_s3 + $0x128] sm:$0xff] }
  0x17   : > { %437 = vmatprep.subr.mxu0 %v413_v4  ;;  %3235 = vmatpush3.msra.mxu1 %v417_v8  ;;  %v411_v12 = vld [vmem:[%s5459_s3 + $0x148] sm:$0xff]  ;;  %v406_v13 = vld [vmem:[%s5459_s3 + $0x120] sm:$0xff]  ;;  %v404_v14 = vld [vmem:[%s5459_s3 + $0x110] sm:$0xff] }
  0x18   : > { %438 = vmatpush1.msra.mxu0 %v412_v5  ;;  %3236 = vmatprep.subr.mxu1 %v414_v10  ;;  %v408_v15 = vld [vmem:[%s5459_s3 + $0x130] sm:$0xff]  ;;  %v403_v16 = vld [vmem:[%s5459_s3 + $0x108] sm:$0xff]  ;;  %v401_v17 = vld [vmem:[%s5459_s3 + $0xf8] sm:$0xff] }
  0x19   : > { %439 = vmatprep.subr.mxu0 %v410_v7  ;;  %3237 = vmatpush3.msra.mxu1 %v414_v10  ;;  %v405_v18 = vld [vmem:[%s5459_s3 + $0x118] sm:$0xff]  ;;  %v400_v19 = vld [vmem:[%s5459_s3 + $0xf0] sm:$0xff]  ;;  %v398_v20 = vld [vmem:[%s5459_s3 + $0xe0] sm:$0xff] }
  0x1a   : > { %440 = vmatpush1.msra.mxu0 %v409_v9  ;;  %3238 = vmatprep.subr.mxu1 %v411_v12  ;;  %v402_v21 = vld [vmem:[%s5459_s3 + $0x100] sm:$0xff]  ;;  %v397_v22 = vld [vmem:[%s5459_s3 + $0xd8] sm:$0xff]  ;;  %v395_v23 = vld [vmem:[%s5459_s3 + $0xc8] sm:$0xff] }
  0x1b   : > { %441 = vmatprep.subr.mxu0 %v407_v11  ;;  %3239 = vmatpush3.msra.mxu1 %v411_v12  ;;  %v399_v24 = vld [vmem:[%s5459_s3 + $0xe8] sm:$0xff]  ;;  %v394_v25 = vld [vmem:[%s5459_s3 + $0xc0] sm:$0xff]  ;;  %v392_v26 = vld [vmem:[%s5459_s3 + $0xb0] sm:$0xff] }
  0x1c   : > { %442 = vmatpush1.msra.mxu0 %v406_v13  ;;  %3240 = vmatprep.subr.mxu1 %v408_v15  ;;  %v396_v27 = vld [vmem:[%s5459_s3 + $0xd0] sm:$0xff]  ;;  %v391_v28 = vld [vmem:[%s5459_s3 + $0xa8] sm:$0xff]  ;;  %v389_v29 = vld [vmem:[%s5459_s3 + $0x98] sm:$0xff] }
  0x1d   : > { %443 = vmatprep.subr.mxu0 %v404_v14  ;;  %3241 = vmatpush3.msra.mxu1 %v408_v15  ;;  %v393_v30 = vld [vmem:[%s5459_s3 + $0xb8] sm:$0xff]  ;;  %v388_v31 = vld [vmem:[%s5459_s3 + $0x90] sm:$0xff]  ;;  %v386_v32 = vld [vmem:[%s5459_s3 + $0x80] sm:$0xff] }
  0x1e   : > { %444 = vmatpush1.msra.mxu0 %v403_v16  ;;  %3242 = vmatprep.subr.mxu1 %v405_v18  ;;  %v390_v33 = vld [vmem:[%s5459_s3 + $0xa0] sm:$0xff]  ;;  %v385_v34 = vld [vmem:[%s5459_s3 + $0x78] sm:$0xff]  ;;  %v383_v35 = vld [vmem:[%s5459_s3 + $0x68] sm:$0xff] }
  0x1f   : > { %445 = vmatprep.subr.mxu0 %v401_v17  ;;  %3243 = vmatpush3.msra.mxu1 %v405_v18  ;;  %v387_v36 = vld [vmem:[%s5459_s3 + $0x88] sm:$0xff]  ;;  %v382_v37 = vld [vmem:[%s5459_s3 + $0x60] sm:$0xff]  ;;  %v380_v38 = vld [vmem:[%s5459_s3 + $0x50] sm:$0xff] }
  0x20   : > { %446 = vmatpush1.msra.mxu0 %v400_v19  ;;  %3244 = vmatprep.subr.mxu1 %v402_v21  ;;  %v384_v39 = vld [vmem:[%s5459_s3 + $0x70] sm:$0xff]  ;;  %v379_v40 = vld [vmem:[%s5459_s3 + $0x48] sm:$0xff]  ;;  %v377_v41 = vld [vmem:[%s5459_s3 + $0x38] sm:$0xff] }
  0x21   : > { %447 = vmatprep.subr.mxu0 %v398_v20  ;;  %3245 = vmatpush3.msra.mxu1 %v402_v21  ;;  %v381_v42 = vld [vmem:[%s5459_s3 + $0x58] sm:$0xff]  ;;  %v376_v43 = vld [vmem:[%s5459_s3 + $0x30] sm:$0xff]  ;;  %v374_v44 = vld [vmem:[%s5459_s3 + $0x20] sm:$0xff] }
  0x22   : > { %448 = vmatpush1.msra.mxu0 %v397_v22  ;;  %3246 = vmatprep.subr.mxu1 %v399_v24  ;;  %v378_v45 = vld [vmem:[%s5459_s3 + $0x40] sm:$0xff]  ;;  %v373_v46 = vld [vmem:[%s5459_s3 + $0x18] sm:$0xff]  ;;  %v371_v47 = vld [vmem:[%s5459_s3 + $0x8] sm:$0xff] }
  0x23   : > { %449 = vmatprep.subr.mxu0 %v395_v23  ;;  %3247 = vmatpush3.msra.mxu1 %v399_v24  ;;  %v375_v48 = vld [vmem:[%s5459_s3 + $0x28] sm:$0xff]  ;;  %v370_v49 = vld [vmem:[%s5459_s3] sm:$0xff]  ;;  %v2832_v51 = vld [vmem:[%s5459_s3 + $0x2f0] sm:$0xff] }
  0x24   : > { %450 = vmatpush1.msra.mxu0 %v394_v25  ;;  %3248 = vmatprep.subr.mxu1 %v396_v27  ;;  %v366_v50 = vld [vmem:[%s3784_s15] sm:$0xff]  ;;  %v2831_v52 = vld [vmem:[%s5459_s3 + $0x2e8] sm:$0xff]  ;;  %v372_v53 = vld [vmem:[%s5459_s3 + $0x10] sm:$0xff] }
  0x25   : > { %451 = vmatprep.subr.mxu0 %v392_v26  ;;  %3249 = vmatpush3.msra.mxu1 %v396_v27  ;;  %v2829_v54 = vld [vmem:[%s5459_s3 + $0x2d8] sm:$0xff]  ;;  %v2828_v55 = vld [vmem:[%s5459_s3 + $0x2d0] sm:$0xff]  ;;  %v2826_v56 = vld [vmem:[%s5459_s3 + $0x2c0] sm:$0xff] }
  0x26   : > { %452 = vmatpush1.msra.mxu0 %v391_v28  ;;  %3250 = vmatprep.subr.mxu1 %v393_v30  ;;  %v2833_v57 = vld [vmem:[%s5459_s3 + $0x2f8] sm:$0xff]  ;;  %v367_v59 = vld [vmem:[%s3784_s15 + $0x8] sm:$0xff]  ;;  %v2822_v61 = vld [vmem:[%s5459_s3 + $0x2a0] sm:$0xff] }
  0x27   : > { %453 = vmatprep.subr.mxu0 %v389_v29  ;;  %3251 = vmatpush3.msra.mxu1 %v393_v30  ;;  %v2825_v58 = vld [vmem:[%s5459_s3 + $0x2b8] sm:$0xff]  ;;  %v2823_v60 = vld [vmem:[%s5459_s3 + $0x2a8] sm:$0xff]  ;;  %v2830_v62 = vld [vmem:[%s5459_s3 + $0x2e0] sm:$0xff] }
  0x28   : > { %454 = vmatpush1.msra.mxu0 %v388_v31  ;;  %3252 = vmatprep.subr.mxu1 %v390_v33  ;;  %v2820_v63 = vld [vmem:[%s5459_s3 + $0x290] sm:$0xff]  ;;  %v2819_v0 = vld [vmem:[%s5459_s3 + $0x288] sm:$0xff]  ;;  %v2817_v2 = vld [vmem:[%s5459_s3 + $0x278] sm:$0xff] }
  0x29   : > { %455 = vmatprep.subr.mxu0 %v386_v32  ;;  %3253 = vmatpush3.msra.mxu1 %v390_v33  ;;  %v2827_v1 = vld [vmem:[%s5459_s3 + $0x2c8] sm:$0xff]  ;;  %v2816_v3 = vld [vmem:[%s5459_s3 + $0x270] sm:$0xff]  ;;  %v2814_v5 = vld [vmem:[%s5459_s3 + $0x260] sm:$0xff] }
  0x2a   : > { %456 = vmatpush1.msra.mxu0 %v385_v34  ;;  %3254 = vmatprep.subr.mxu1 %v387_v36  ;;  %v2824_v4 = vld [vmem:[%s5459_s3 + $0x2b0] sm:$0xff]  ;;  %v2813_v7 = vld [vmem:[%s5459_s3 + $0x258] sm:$0xff]  ;;  %v2811_v9 = vld [vmem:[%s5459_s3 + $0x248] sm:$0xff] }
  0x2b   : > { %457 = vmatprep.subr.mxu0 %v383_v35  ;;  %3255 = vmatpush3.msra.mxu1 %v387_v36  ;;  %v2821_v8 = vld [vmem:[%s5459_s3 + $0x298] sm:$0xff]  ;;  %v2810_v10 = vld [vmem:[%s5459_s3 + $0x240] sm:$0xff]  ;;  %v2808_v12 = vld [vmem:[%s5459_s3 + $0x230] sm:$0xff] }
  0x2c   : > { %458 = vmatpush1.msra.mxu0 %v382_v37  ;;  %3256 = vmatprep.subr.mxu1 %v384_v39  ;;  %v2818_v11 = vld [vmem:[%s5459_s3 + $0x280] sm:$0xff]  ;;  %v2807_v13 = vld [vmem:[%s5459_s3 + $0x228] sm:$0xff]  ;;  %v2805_v14 = vld [vmem:[%s5459_s3 + $0x218] sm:$0xff] }
  0x2d   : > { %459 = vmatprep.subr.mxu0 %v380_v38  ;;  %3257 = vmatpush3.msra.mxu1 %v384_v39  ;;  %v2815_v15 = vld [vmem:[%s5459_s3 + $0x268] sm:$0xff]  ;;  %v2804_v16 = vld [vmem:[%s5459_s3 + $0x210] sm:$0xff]  ;;  %v2802_v17 = vld [vmem:[%s5459_s3 + $0x200] sm:$0xff] }
  0x2e   : > { %460 = vmatpush1.msra.mxu0 %v379_v40  ;;  %3258 = vmatprep.subr.mxu1 %v381_v42  ;;  %v2812_v18 = vld [vmem:[%s5459_s3 + $0x250] sm:$0xff]  ;;  %v2801_v19 = vld [vmem:[%s5459_s3 + $0x1f8] sm:$0xff]  ;;  %v2799_v21 = vld [vmem:[%s5459_s3 + $0x1e8] sm:$0xff] }
  0x2f   : > { %461 = vmatprep.subr.mxu0 %v377_v41  ;;  %3259 = vmatpush3.msra.mxu1 %v381_v42  ;;  %v368_v20 = vld [vmem:[%s3784_s15 + $0x10] sm:$0xff]  ;;  %v2809_v22 = vld [vmem:[%s5459_s3 + $0x238] sm:$0xff]  ;;  %v2798_v23 = vld [vmem:[%s5459_s3 + $0x1e0] sm:$0xff] }
  0x30   : > { %462 = vmatpush1.msra.mxu0 %v376_v43  ;;  %3260 = vmatprep.subr.mxu1 %v378_v45  ;;  %v2796_v24 = vld [vmem:[%s5459_s3 + $0x1d0] sm:$0xff]  ;;  %v2806_v25 = vld [vmem:[%s5459_s3 + $0x220] sm:$0xff]  ;;  %v2795_v26 = vld [vmem:[%s5459_s3 + $0x1c8] sm:$0xff] }
  0x31   : > { %463 = vmatprep.subr.mxu0 %v374_v44  ;;  %3261 = vmatpush3.msra.mxu1 %v378_v45  ;;  %v369_v27 = vld [vmem:[%s3784_s15 + $0x18] sm:$0xff]  ;;  %v2803_v29 = vld [vmem:[%s5459_s3 + $0x208] sm:$0xff]  ;;  %v2792_v30 = vld [vmem:[%s5459_s3 + $0x1b0] sm:$0xff] }
  0x32   : > { %464 = vmatpush1.msra.mxu0 %v373_v46  ;;  %3262 = vmatprep.subr.mxu1 %v375_v48  ;;  %v2793_v28 = vld [vmem:[%s5459_s3 + $0x1b8] sm:$0xff]  ;;  %v2790_v31 = vld [vmem:[%s5459_s3 + $0x1a0] sm:$0xff]  ;;  %v2800_v32 = vld [vmem:[%s5459_s3 + $0x1f0] sm:$0xff]  ;;  %v420_v46 = vlaneseq }
  0x33   : > { %465 = vmatprep.subr.mxu0 %v371_v47  ;;  %3263 = vmatpush3.msra.mxu1 %v375_v48  ;;  %v2789_v33 = vld [vmem:[%s5459_s3 + $0x198] sm:$0xff]  ;;  %v2787_v34 = vld [vmem:[%s5459_s3 + $0x188] sm:$0xff]  ;;  %v2786_v36 = vld [vmem:[%s5459_s3 + $0x180] sm:$0xff] }
  0x34   : > { %466 = vmatpush1.msra.mxu0 %v370_v49  ;;  %3264 = vmatprep.subr.mxu1 %v372_v53  ;;  %v2797_v35 = vld [vmem:[%s5459_s3 + $0x1d8] sm:$0xff]  ;;  %v621_v37 = vld [vmem:[%s3789_s19] sm:$0xff]  ;;  %v2791_v39 = vld [vmem:[%s5459_s3 + $0x1a8] sm:$0xff]  ;;  %v421_v47 = vshrl.u32 %v420_v46, 7 }
  0x35   : > { %500 = vmatmul.mubr.f32.vlgmr.msra.gmra.mxu0 %v366_v50  ;;  %692 = vmatprep.subr.mxu0 %v2832_v51  ;;  %v2794_v38 = vld [vmem:[%s5459_s3 + $0x1c0] sm:$0xff]  ;;  %v622_v40 = vld [vmem:[%s3789_s19 + $0x8] sm:$0xff]  ;;  %v2788_v41 = vld [vmem:[%s5459_s3 + $0x190] sm:$0xff] }
  0x36   : > { %693 = vmatpush1.msra.mxu0 %v2831_v52  ;;  %3265 = vmatpush3.msra.mxu1 %v372_v53  ;;  %v623_v42 = vld [vmem:[%s3789_s19 + $0x10] sm:$0xff]  ;;  %v624_v43 = vld [vmem:[%s3789_s19 + $0x18] sm:$0xff]  ;;  %v4114_v44 = vld [vmem:[%s5462_s6] ss:$0 sm:$0xff]  ;;  %v422_v48 = vsub.s32 0, %v421_v47  ;;  %v426_v49 = vsub.s32 1, %v421_v47 }
  0x37   : > { %694 = vmatprep.subr.mxu0 %v2829_v54  ;;  %3266 = vmatprep.mubr.f32.mxu1 %v366_v50  ;;  %v4119_v45 = vld [vmem:[%s5462_s6 + $0x1] ss:$0 sm:$0xff]  ;;  %v430_v51 = vsub.s32 2, %v421_v47 }
  0x38   : > { %695 = vmatpush1.msra.mxu0 %v2828_v55  ;;  %3272 = vmatprep.subr.mxu1 %v2833_v57 }
  0x39   : > { %696 = vmatprep.subr.mxu0 %v2826_v56  ;;  %3267 = vmatmul.mubr.f32.vlgmr.msra.gmra.mxu1 %v367_v59 }
  0x3a   : > { %697 = vmatpush1.msra.mxu0 %v2825_v58  ;;  %3273 = vmatpush3.msra.mxu1 %v2833_v57 }
  0x3b   : > { %698 = vmatprep.subr.mxu0 %v2823_v60  ;;  %3274 = vmatprep.subr.mxu1 %v2830_v62 }
  0x3c   : > { %699 = vmatpush1.msra.mxu0 %v2822_v61  ;;  %3275 = vmatpush3.msra.mxu1 %v2830_v62 }
  0x3d   : > { %700 = vmatprep.subr.mxu0 %v2820_v63  ;;  %3276 = vmatprep.subr.mxu1 %v2827_v1 }
  0x3e   : > { %701 = vmatpush1.msra.mxu0 %v2819_v0  ;;  %3277 = vmatpush3.msra.mxu1 %v2827_v1 }
  0x3f   : > { %702 = vmatprep.subr.mxu0 %v2817_v2  ;;  %3278 = vmatprep.subr.mxu1 %v2824_v4 }
  0x40   : > { %703 = vmatpush1.msra.mxu0 %v2816_v3  ;;  %3279 = vmatpush3.msra.mxu1 %v2824_v4 }
  0x41   : > { %704 = vmatprep.subr.mxu0 %v2814_v5  ;;  %3280 = vmatprep.subr.mxu1 %v2821_v8 }
  0x42   : > { %705 = vmatpush1.msra.mxu0 %v2813_v7  ;;  %3281 = vmatpush3.msra.mxu1 %v2821_v8 }
  0x43   : > { %706 = vmatprep.subr.mxu0 %v2811_v9  ;;  %3282 = vmatprep.subr.mxu1 %v2818_v11  ;;  %v2834_v9 = vld [vmem:[%s5460_s4 + $0x3] sm:$0x7] }
  0x44   : > { %707 = vmatpush1.msra.mxu0 %v2810_v10  ;;  %505 = vmatprep.mubr.f32.mxu0 %v3703_v6 }
  0x45   : > { %708 = vmatprep.subr.mxu0 %v2808_v12  ;;  %3283 = vmatpush3.msra.mxu1 %v2818_v11  ;;  %v680_v12 = vrot.slane %v2834_v9, %v422_v48 }
  0x46   : > { %709 = vmatpush1.msra.mxu0 %v2807_v13  ;;  %3284 = vmatprep.subr.mxu1 %v2815_v15  ;;  %v684_v13 = vrot.slane %v2834_v9, %v426_v49 }
  0x47   : > { %506 = vmatmul.mubr.f32.gmra.mxu0 %v367_v59  ;;  %710 = vmatprep.subr.mxu0 %v2805_v14 }
  0x48   : > { %711 = vmatpush1.msra.mxu0 %v2804_v16  ;;  %3285 = vmatpush3.msra.mxu1 %v2815_v15 }
  0x49   : > { %712 = vmatprep.subr.mxu0 %v2802_v17  ;;  %3286 = vmatprep.subr.mxu1 %v2812_v18 }
  0x4a   : > { %511 = vmatprep.mubr.f32.mxu0 %v3703_v6  ;;  %713 = vmatpush1.msra.mxu0 %v2801_v19 }
  0x4b   : > { %3287 = vmatpush3.msra.mxu1 %v2812_v18  ;;  %512 = vmatmul.mubr.f32.gmra.mxu0 %v368_v20 }
  0x4c   : > { %714 = vmatprep.subr.mxu0 %v2799_v21  ;;  %3288 = vmatprep.subr.mxu1 %v2809_v22 }
  0x4d   : > { %715 = vmatpush1.msra.mxu0 %v2798_v23  ;;  %3289 = vmatpush3.msra.mxu1 %v2809_v22 }
  0x4e   : > { %716 = vmatprep.subr.mxu0 %v2796_v24  ;;  %3290 = vmatprep.subr.mxu1 %v2806_v25 }
  0x4f   : > { %517 = vmatprep.mubr.f32.mxu0 %v3703_v6  ;;  %717 = vmatpush1.msra.mxu0 %v2795_v26 }
  0x50   : > { %3291 = vmatpush3.msra.mxu1 %v2806_v25  ;;  %518 = vmatmul.mubr.f32.gmra.mxu0 %v369_v27 }
  0x51   : > { %718 = vmatprep.subr.mxu0 %v2793_v28  ;;  %3292 = vmatprep.subr.mxu1 %v2803_v29 }
  0x52   : > { %719 = vmatpush1.msra.mxu0 %v2792_v30  ;;  %3293 = vmatpush3.msra.mxu1 %v2803_v29 }
  0x53   : > { %720 = vmatprep.subr.mxu0 %v2790_v31  ;;  %3294 = vmatprep.subr.mxu1 %v2800_v32 }
  0x54   : > { %721 = vmatpush1.msra.mxu0 %v2789_v33  ;;  %3295 = vmatpush3.msra.mxu1 %v2800_v32 }
  0x55   : > { %722 = vmatprep.subr.mxu0 %v2787_v34  ;;  %3296 = vmatprep.subr.mxu1 %v2797_v35 }
  0x56   : > { %723 = vmatpush1.msra.mxu0 %v2786_v36  ;;  %756 = vmatprep.mubr.f32.mxu0 %v3703_v6 }
  0x57   : > { %3297 = vmatpush3.msra.mxu1 %v2797_v35  ;;  %757 = vmatmul.mubr.f32.vlgmr.msra.gmra.mxu0 %v621_v37 }
  0x58   : > { %3298 = vmatprep.subr.mxu1 %v2794_v38  ;;  %3269 = vmatprep.mubr.f32.mxu1 %v368_v20  ;;  %v688_v20 = vrot.slane %v2834_v9, %v430_v51 }
  0x59   : > { %3299 = vmatpush3.msra.mxu1 %v2794_v38  ;;  %762 = vmatprep.mubr.f32.mxu0 %v3703_v6 }
  0x5a   : > { %3270 = vmatmul.mubr.f32.gmra.mxu1 %v369_v27  ;;  %3300 = vmatprep.subr.mxu1 %v2791_v39 }
  0x5b   : > { %3301 = vmatpush3.msra.mxu1 %v2791_v39  ;;  %763 = vmatmul.mubr.f32.gmra.mxu0 %v622_v40 }
  0x5c   : > { %3302 = vmatprep.subr.mxu1 %v2788_v41  ;;  %3304 = vmatprep.mubr.f32.mxu1 %v621_v37 }
  0x5d   : > { %3303 = vmatpush3.msra.mxu1 %v2788_v41  ;;  %768 = vmatprep.mubr.f32.mxu0 %v3703_v6 }
  0x5e   : > { %3305 = vmatmul.mubr.f32.vlgmr.msra.gmra.mxu1 %v622_v40 }
  0x5f   : > { %3307 = vmatprep.mubr.f32.mxu1 %v623_v42  ;;  %769 = vmatmul.mubr.f32.gmra.mxu0 %v623_v42 }
  0x60   : > { %774 = vmatprep.mubr.f32.mxu0 %v3703_v6  ;;  %v418_v6 = vld [vmem:[%s5460_s4] sm:$0x7] }
  0x61   : > { %v423_v50 = vrot.slane %v418_v6, %v422_v48  ;;  %v427_v52 = vrot.slane %v418_v6, %v426_v49  ;;  %v431_v56 = vrot.slane %v418_v6, %v430_v51 }
  0x62   : > { %3308 = vmatmul.mubr.f32.gmra.mxu1 %v624_v43 }
  0x63   : > { %775 = vmatmul.mubr.f32.gmra.mxu0 %v624_v43 }
  0xf5   : > { %v501_v53 = vpop.f32.mrf.mxu0 }
  0xf6   : > { %v502_v54 = vadd.f32 %v501_v53, %v423_v50 }
  0xf7   : > { %v503_v55 = vpop.f32.mrf.mxu0 }
  0xf8   : > { %609 = vst [vmem:[#allocation2 + $0x30] sm:$0xff] %v502_v54  ;;  %v504_v57 = vadd.f32 %v503_v55, %v427_v52 }
  0xf9   : > { %v3268_v58 = vpop.f32.mrf.mxu1 }
  0xfa   : > { %610 = vst [vmem:[#allocation2] sm:$0xff] %v504_v57  ;;  %v596_v59 = vadd.f32 %v3268_v58, %v431_v56 }
  0xfb   : > { %v590_v60 = vpop.f32.mrf.mxu1 }
  0xfc   : > { %614 = vst [vmem:[#allocation2 + $0x20] sm:$0xff] %v596_v59  ;;  %v591_v61 = vadd.f32 %v590_v60, %v431_v56 }
  0xfe   : > { %611 = vst [vmem:[#allocation2 + $0x58] sm:$0xff] %v591_v61 }
 0x107   : > { %v507_v62 = vpop.f32.mrf.mxu0 }
 0x108   : > { %v508_v63 = vadd.f32 %v507_v62, %v423_v50 }
 0x109   : > { %v509_v0 = vpop.f32.mrf.mxu0 }
 0x10a   : > { %612 = vst [vmem:[#allocation2 + $0x18] sm:$0xff] %v508_v63  ;;  %v510_v1 = vadd.f32 %v509_v0, %v427_v52 }
 0x10b   : > { %v513_v2 = vpop.f32.mrf.mxu0 }
 0x10c   : > { %613 = vst [vmem:[#allocation2 + $0x50] sm:$0xff] %v510_v1  ;;  %v514_v3 = vadd.f32 %v513_v2, %v423_v50 }
 0x10d   : > { %v515_v4 = vpop.f32.mrf.mxu0 }
 0x10e   : > { %615 = vst [vmem:[#allocation2 + $0x8] sm:$0xff] %v514_v3  ;;  %v516_v5 = vadd.f32 %v515_v4, %v427_v52 }
 0x110   : > { %616 = vst [vmem:[#allocation2 + $0x38] sm:$0xff] %v516_v5  ;;  %v519_v7 = vpop.f32.mrf.mxu0 }
 0x111   : > { %v520_v8 = vadd.f32 %v519_v7, %v423_v50 }
 0x112   : > { %v521_v10 = vpop.f32.mrf.mxu0 }
 0x113   : > { %618 = vst [vmem:[#allocation2 + $0x48] sm:$0xff] %v520_v8  ;;  %v522_v11 = vadd.f32 %v521_v10, %v427_v52 }
 0x115   : > { %619 = vst [vmem:[#allocation2 + $0x10] sm:$0xff] %v522_v11 }
 0x117   : > { %v758_v14 = vpop.f32.mrf.mxu0 }
 0x118   : > { %v759_v15 = vadd.f32 %v758_v14, %v680_v12 }
 0x119   : > { %v760_v17 = vpop.f32.mrf.mxu0 }
 0x11a   : > { %v3271_v16 = vpop.f32.mrf.mxu1  ;;  %866 = vst [vmem:[#allocation3 + $0x48] sm:$0xff] %v759_v15  ;;  %v761_v19 = vadd.f32 %v760_v17, %v684_v13 }
 0x11b   : > { %v606_v18 = vadd.f32 %v3271_v16, %v431_v56  ;;  %v764_v22 = vpop.f32.mrf.mxu0 }
 0x11c   : > { %v600_v21 = vpop.f32.mrf.mxu1  ;;  %867 = vst [vmem:[#allocation3] sm:$0xff] %v761_v19  ;;  %v765_v24 = vadd.f32 %v764_v22, %v680_v12 }
 0x11d   : > { %620 = vst [vmem:[#allocation2 + $0x40] sm:$0xff] %v606_v18  ;;  %v601_v23 = vadd.f32 %v600_v21, %v431_v56  ;;  %v766_v25 = vpop.f32.mrf.mxu0 }
 0x11e   : > { %v3306_v26 = vpop.f32.mrf.mxu1  ;;  %869 = vst [vmem:[#allocation3 + $0x30] sm:$0xff] %v765_v24  ;;  %v767_v27 = vadd.f32 %v766_v25, %v684_v13 }
 0x11f   : > { %617 = vst [vmem:[#allocation2 + $0x28] sm:$0xff] %v601_v23  ;;  %v853_v28 = vadd.f32 %v3306_v26, %v688_v20  ;;  %v770_v29 = vpop.f32.mrf.mxu0 }
 0x120   : > { %v847_v30 = vpop.f32.mrf.mxu1  ;;  %870 = vst [vmem:[#allocation3 + $0x8] sm:$0xff] %v767_v27  ;;  %v771_v31 = vadd.f32 %v770_v29, %v680_v12 }
 0x121   : > { %871 = vst [vmem:[#allocation3 + $0x20] sm:$0xff] %v853_v28  ;;  %v848_v32 = vadd.f32 %v847_v30, %v688_v20  ;;  %v772_v33 = vpop.f32.mrf.mxu0 }
 0x122   : > { %v3309_v34 = vpop.f32.mrf.mxu1  ;;  %872 = vst [vmem:[#allocation3 + $0x18] sm:$0xff] %v771_v31  ;;  %v773_v35 = vadd.f32 %v772_v33, %v684_v13 }
 0x123   : > { %868 = vst [vmem:[#allocation3 + $0x50] sm:$0xff] %v848_v32  ;;  %v863_v36 = vadd.f32 %v3309_v34, %v688_v20  ;;  %v776_v37 = vpop.f32.mrf.mxu0 }
 0x124   : > { %v857_v38 = vpop.f32.mrf.mxu1  ;;  %873 = vst [vmem:[#allocation3 + $0x40] sm:$0xff] %v773_v35  ;;  %v777_v39 = vadd.f32 %v776_v37, %v680_v12  ;;  %900 = sbr.rel (%p2840_p6) target bundleno = 582 (0x246), region = 56 }
 0x125   : > { %877 = vst [vmem:[#allocation3 + $0x10] sm:$0xff] %v863_v36  ;;  %v858_v40 = vadd.f32 %v857_v38, %v688_v20  ;;  %v778_v41 = vpop.f32.mrf.mxu0 }
 0x126   : > { %875 = vst [vmem:[#allocation3 + $0x28] sm:$0xff] %v777_v39  ;;  %v779_v42 = vadd.f32 %v778_v41, %v684_v13 }
 0x127   : > { %874 = vst [vmem:[#allocation3 + $0x38] sm:$0xff] %v858_v40 }
 0x128   : > { %876 = vst [vmem:[#allocation3 + $0x58] sm:$0xff] %v779_v42 }
 0x129   : > { %v951_v43 = vld [vmem:[%s5461_s5 + $0x170] sm:$0xff]  ;;  %v950_v46 = vld [vmem:[%s5461_s5 + $0x168] sm:$0xff]  ;;  %v948_v47 = vld [vmem:[%s5461_s5 + $0x158] sm:$0xff]  ;;  %v3704_v6 = vmov 0.0   ;;  %vm3705_vm0 = vmmov 0  }
 0x12a   : > { %953 = vmatprep.subr.mxu0 %v951_v43  ;;  %v947_v48 = vld [vmem:[%s5461_s5 + $0x150] sm:$0xff]  ;;  %3310 = vmatprep.subr.mxu1 %v3704_v6  ;;  %v945_v49 = vld [vmem:[%s5461_s5 + $0x140] sm:$0xff]  ;;  %v944_v50 = vld [vmem:[%s5461_s5 + $0x138] sm:$0xff] }
 0x12b   : > { %954 = vmatpush1.msra.mxu0 %v950_v46  ;;  %1017 = vmatprep.mubr.f32.mxu0 %v3704_v6  ;;  %v942_v51 = vld [vmem:[%s5461_s5 + $0x128] sm:$0xff]  ;;  %v941_v52 = vld [vmem:[%s5461_s5 + $0x120] sm:$0xff]  ;;  %v939_v53 = vld [vmem:[%s5461_s5 + $0x110] sm:$0xff] }
 0x12c   : > { %955 = vmatprep.subr.mxu0 %v948_v47  ;;  %3342 = vmatprep.mubr.msk.f32.mxu1 %vm3705_vm0, %v3704_v6  ;;  %v938_v54 = vld [vmem:[%s5461_s5 + $0x108] sm:$0xff]  ;;  %v936_v55 = vld [vmem:[%s5461_s5 + $0xf8] sm:$0xff]  ;;  %v935_v56 = vld [vmem:[%s5461_s5 + $0xf0] sm:$0xff] }
 0x12d   : > { %956 = vmatpush1.msra.mxu0 %v947_v48  ;;  %v933_v57 = vld [vmem:[%s5461_s5 + $0xe0] sm:$0xff]  ;;  %v952_v58 = vld [vmem:[%s5461_s5 + $0x178] sm:$0xff]  ;;  %v930_v61 = vld [vmem:[%s5461_s5 + $0xc8] sm:$0xff] }
 0x12e   : > { %957 = vmatprep.subr.mxu0 %v945_v49  ;;  %v932_v59 = vld [vmem:[%s5461_s5 + $0xd8] sm:$0xff]  ;;  %3311 = vmatpush3.msra.mxu1 %v952_v58  ;;  %v949_v60 = vld [vmem:[%s5461_s5 + $0x160] sm:$0xff]  ;;  %v946_v62 = vld [vmem:[%s5461_s5 + $0x148] sm:$0xff] }
 0x12f   : > { %958 = vmatpush1.msra.mxu0 %v944_v50  ;;  %3312 = vmatprep.subr.mxu1 %v3704_v6  ;;  %v929_v63 = vld [vmem:[%s5461_s5 + $0xc0] sm:$0xff]  ;;  %v927_v0 = vld [vmem:[%s5461_s5 + $0xb0] sm:$0xff]  ;;  %v926_v2 = vld [vmem:[%s5461_s5 + $0xa8] sm:$0xff] }
 0x130   : > { %959 = vmatprep.subr.mxu0 %v942_v51  ;;  %3313 = vmatpush3.msra.mxu1 %v949_v60  ;;  %v943_v1 = vld [vmem:[%s5461_s5 + $0x130] sm:$0xff]  ;;  %v924_v3 = vld [vmem:[%s5461_s5 + $0x98] sm:$0xff]  ;;  %v921_v7 = vld [vmem:[%s5461_s5 + $0x80] sm:$0xff] }
 0x131   : > { %960 = vmatpush1.msra.mxu0 %v941_v52  ;;  %3314 = vmatprep.subr.mxu1 %v3704_v6  ;;  %v940_v4 = vld [vmem:[%s5461_s5 + $0x118] sm:$0xff]  ;;  %v923_v5 = vld [vmem:[%s5461_s5 + $0x90] sm:$0xff]  ;;  %v937_v8 = vld [vmem:[%s5461_s5 + $0x100] sm:$0xff] }
 0x132   : > { %961 = vmatprep.subr.mxu0 %v939_v53  ;;  %3315 = vmatpush3.msra.mxu1 %v946_v62  ;;  %v920_v9 = vld [vmem:[%s5461_s5 + $0x78] sm:$0xff]  ;;  %v918_v10 = vld [vmem:[%s5461_s5 + $0x68] sm:$0xff]  ;;  %v917_v12 = vld [vmem:[%s5461_s5 + $0x60] sm:$0xff] }
 0x133   : > { %962 = vmatpush1.msra.mxu0 %v938_v54  ;;  %3316 = vmatprep.subr.mxu1 %v3704_v6  ;;  %v934_v11 = vld [vmem:[%s5461_s5 + $0xe8] sm:$0xff]  ;;  %v915_v13 = vld [vmem:[%s5461_s5 + $0x50] sm:$0xff]  ;;  %v912_v16 = vld [vmem:[%s5461_s5 + $0x38] sm:$0xff] }
 0x134   : > { %963 = vmatprep.subr.mxu0 %v936_v55  ;;  %3317 = vmatpush3.msra.mxu1 %v943_v1  ;;  %v931_v14 = vld [vmem:[%s5461_s5 + $0xd0] sm:$0xff]  ;;  %v914_v15 = vld [vmem:[%s5461_s5 + $0x48] sm:$0xff]  ;;  %v928_v17 = vld [vmem:[%s5461_s5 + $0xb8] sm:$0xff] }
 0x135   : > { %964 = vmatpush1.msra.mxu0 %v935_v56  ;;  %3318 = vmatprep.subr.mxu1 %v3704_v6  ;;  %v911_v18 = vld [vmem:[%s5461_s5 + $0x30] sm:$0xff]  ;;  %v909_v19 = vld [vmem:[%s5461_s5 + $0x20] sm:$0xff]  ;;  %v908_v21 = vld [vmem:[%s5461_s5 + $0x18] sm:$0xff] }
 0x136   : > { %965 = vmatprep.subr.mxu0 %v933_v57  ;;  %3319 = vmatpush3.msra.mxu1 %v940_v4  ;;  %v925_v20 = vld [vmem:[%s5461_s5 + $0xa0] sm:$0xff]  ;;  %v906_v22 = vld [vmem:[%s5461_s5 + $0x8] sm:$0xff]  ;;  %v919_v26 = vld [vmem:[%s5461_s5 + $0x70] sm:$0xff] }
 0x137   : > { %966 = vmatpush1.msra.mxu0 %v932_v59  ;;  %3320 = vmatprep.subr.mxu1 %v3704_v6  ;;  %v922_v23 = vld [vmem:[%s5461_s5 + $0x88] sm:$0xff]  ;;  %v905_v24 = vld [vmem:[%s5461_s5] sm:$0xff]  ;;  %v916_v27 = vld [vmem:[%s5461_s5 + $0x58] sm:$0xff] }
 0x138   : > { %967 = vmatprep.subr.mxu0 %v930_v61  ;;  %3321 = vmatpush3.msra.mxu1 %v937_v8  ;;  %v904_v25 = vld [vmem:[#allocation4] sm:$0xff]  ;;  %v910_v29 = vld [vmem:[%s5461_s5 + $0x28] sm:$0xff]  ;;  %v907_v30 = vld [vmem:[%s5461_s5 + $0x10] sm:$0xff] }
 0x139   : > { %968 = vmatpush1.msra.mxu0 %v929_v63  ;;  %3322 = vmatprep.subr.mxu1 %v3704_v6  ;;  %v913_v28 = vld [vmem:[%s5461_s5 + $0x40] sm:$0xff]  ;;  %v901_v31 = vld [vmem:[#allocation2 + $0x30] sm:$0xff]  ;;  %v903_v48 = vld [vmem:[#allocation2 + $0x58] sm:$0xff] }
 0x13a   : > { %969 = vmatprep.subr.mxu0 %v927_v0  ;;  %3323 = vmatpush3.msra.mxu1 %v934_v11  ;;  %v902_v35 = vld [vmem:[#allocation2] sm:$0xff] }
 0x13b   : > { %970 = vmatpush1.msra.mxu0 %v926_v2  ;;  %3324 = vmatprep.subr.mxu1 %v3704_v6 }
 0x13c   : > { %971 = vmatprep.subr.mxu0 %v924_v3  ;;  %3325 = vmatpush3.msra.mxu1 %v931_v14 }
 0x13d   : > { %972 = vmatpush1.msra.mxu0 %v923_v5  ;;  %3326 = vmatprep.subr.mxu1 %v3704_v6 }
 0x13e   : > { %973 = vmatprep.subr.mxu0 %v921_v7  ;;  %3327 = vmatpush3.msra.mxu1 %v928_v17 }
 0x13f   : > { %974 = vmatpush1.msra.mxu0 %v920_v9  ;;  %3328 = vmatprep.subr.mxu1 %v3704_v6 }
 0x140   : > { %975 = vmatprep.subr.mxu0 %v918_v10  ;;  %3329 = vmatpush3.msra.mxu1 %v925_v20 }
 0x141   : > { %976 = vmatpush1.msra.mxu0 %v917_v12  ;;  %3330 = vmatprep.subr.mxu1 %v3704_v6 }
 0x142   : > { %977 = vmatprep.subr.mxu0 %v915_v13  ;;  %3331 = vmatpush3.msra.mxu1 %v922_v23 }
 0x143   : > { %978 = vmatpush1.msra.mxu0 %v914_v15  ;;  %3332 = vmatprep.subr.mxu1 %v3704_v6 }
 0x144   : > { %979 = vmatprep.subr.mxu0 %v912_v16  ;;  %3333 = vmatpush3.msra.mxu1 %v919_v26 }
 0x145   : > { %980 = vmatpush1.msra.mxu0 %v911_v18  ;;  %3334 = vmatprep.subr.mxu1 %v3704_v6 }
 0x146   : > { %981 = vmatprep.subr.mxu0 %v909_v19  ;;  %3335 = vmatpush3.msra.mxu1 %v916_v27 }
 0x147   : > { %982 = vmatpush1.msra.mxu0 %v908_v21  ;;  %3336 = vmatprep.subr.mxu1 %v3704_v6 }
 0x148   : > { %983 = vmatprep.subr.mxu0 %v906_v22  ;;  %3337 = vmatpush3.msra.mxu1 %v913_v28 }
 0x149   : > { %984 = vmatpush1.msra.mxu0 %v905_v24  ;;  %3338 = vmatprep.subr.mxu1 %v3704_v6 }
 0x14a   : > { %1018 = vmatmul.mubr.f32.vlgmr.msra.gmra.mxu0 %v904_v25  ;;  %3339 = vmatpush3.msra.mxu1 %v910_v29 }
 0x14b   : > { %3340 = vmatprep.subr.mxu1 %v3704_v6 }
 0x14c   : > { %3341 = vmatpush3.msra.mxu1 %v907_v30 }
 0x14d   : > { %3343 = vmatmul.mubr.f32.vlgmr.msra.gmra.mxu1 %v904_v25 }
 0x20a   : > { %v1019_v32 = vpop.f32.mrf.mxu0 }
 0x20b   : > { %v1094_v33 = vadd.f32 %v1019_v32, %v901_v31 }
 0x20c   : > { %v1021_v36 = vpop.f32.mrf.mxu0 }
 0x20d   : > { %v2841_v34 = vmul.f32 -1.442695, %v1094_v33  ;;  %v1090_v37 = vpop.f32.mrf.mxu1  ;;  %v1101_v39 = vadd.f32 %v1021_v36, %v902_v35 }
 0x20e   : > { %v1108_v43 = vadd.f32 %v4114_v44, %v1090_v37 }
 0x20f   : > { %3615 = vpow2.f32 %v2841_v34  ;;  %v3344_v38 = vpop.f32.mrf.mxu1  ;;  %v2842_v40 = vmul.f32 -1.442695, %v1101_v39 }
 0x211   : > { %3617 = vpow2.f32 %v2842_v40 }
 0x21c   : > { %v3616_v41 = vpop.eup %3615 }
 0x21d   : > { %v1098_v42 = vadd.f32 1.0, %v3616_v41 }
 0x21e   : > { %v3618_v46 = vpop.eup %3617 }
 0x21f   : > { %3619 = vrcp.f32 %v1098_v42  ;;  %v1105_v49 = vadd.f32 1.0, %v3618_v46 }
 0x22c   : > { %v3620_v47 = vpop.eup %3619 }
 0x22d   : > { %v1109_v6 = vmul.f32 %v3620_v47, %v1108_v43 }
 0x22f   : > { %v1110_v50 = vadd.f32 %v1109_v6, %v903_v48 }
 0x231   : > { %3621 = vtanh.f32 %v1110_v50 }
 0x232   : > { %3623 = vrcp.f32 %v1105_v49 }
 0x23e   : > { %v3622_v51 = vpop.eup %3621 }
 0x23f   : > { %v1112_v52 = vsub.f32 %v904_v25, %v3622_v51  ;;  %v3624_v53 = vpop.eup %3623 }
 0x241   : > { %v1113_v54 = vmul.f32 %v3624_v53, %v1112_v52 }
 0x243   : > { %v1114_v55 = vadd.f32 %v3622_v51, %v1113_v54 }
 0x245   : > { %1115 = vst [vmem:[#allocation4] sm:$0xff] %v1114_v55  ;;  %1116 = vst [vmem:[%s3794_s22] sm:$0xff] %v1114_v55 }
 0x246 PF: > { %p2843_p7 = scmp.ge.s32.totalorder %s896_s11, 7 }
 0x248   : > { %1120 = sbr.rel (%p2843_p7) target bundleno = 874 (0x36a), region = 60 }
 0x24d   : > { %v2890_v56 = vld [vmem:[%s5461_s5 + $0x2f0] sm:$0xff]  ;;  %v2889_v57 = vld [vmem:[%s5461_s5 + $0x2e8] sm:$0xff]  ;;  %v2887_v58 = vld [vmem:[%s5461_s5 + $0x2d8] sm:$0xff]  ;;  %v3706_v60 = vmov 0.0   ;;  %vm3707_vm1 = vmmov 0  }
 0x24e   : > { %1174 = vmatprep.subr.mxu0 %v2890_v56  ;;  %v2886_v59 = vld [vmem:[%s5461_s5 + $0x2d0] sm:$0xff]  ;;  %3345 = vmatprep.subr.mxu1 %v3706_v60  ;;  %v2884_v61 = vld [vmem:[%s5461_s5 + $0x2c0] sm:$0xff]  ;;  %v2883_v62 = vld [vmem:[%s5461_s5 + $0x2b8] sm:$0xff] }
 0x24f   : > { %1175 = vmatpush1.msra.mxu0 %v2889_v57  ;;  %1238 = vmatprep.mubr.f32.mxu0 %v3706_v60  ;;  %v2881_v63 = vld [vmem:[%s5461_s5 + $0x2a8] sm:$0xff]  ;;  %v2880_v0 = vld [vmem:[%s5461_s5 + $0x2a0] sm:$0xff]  ;;  %v2878_v1 = vld [vmem:[%s5461_s5 + $0x290] sm:$0xff] }
 0x250   : > { %1176 = vmatprep.subr.mxu0 %v2887_v58  ;;  %3377 = vmatprep.mubr.msk.f32.mxu1 %vm3707_vm1, %v3706_v60  ;;  %v2877_v2 = vld [vmem:[%s5461_s5 + $0x288] sm:$0xff]  ;;  %v2875_v3 = vld [vmem:[%s5461_s5 + $0x278] sm:$0xff]  ;;  %v2874_v4 = vld [vmem:[%s5461_s5 + $0x270] sm:$0xff] }
 0x251   : > { %1177 = vmatpush1.msra.mxu0 %v2886_v59  ;;  %v2872_v5 = vld [vmem:[%s5461_s5 + $0x260] sm:$0xff]  ;;  %v2891_v7 = vld [vmem:[%s5461_s5 + $0x2f8] sm:$0xff]  ;;  %v2869_v10 = vld [vmem:[%s5461_s5 + $0x248] sm:$0xff] }
 0x252   : > { %1178 = vmatprep.subr.mxu0 %v2884_v61  ;;  %v2871_v8 = vld [vmem:[%s5461_s5 + $0x258] sm:$0xff]  ;;  %3346 = vmatpush3.msra.mxu1 %v2891_v7  ;;  %v2888_v9 = vld [vmem:[%s5461_s5 + $0x2e0] sm:$0xff]  ;;  %v2885_v11 = vld [vmem:[%s5461_s5 + $0x2c8] sm:$0xff] }
 0x253   : > { %1179 = vmatpush1.msra.mxu0 %v2883_v62  ;;  %3347 = vmatprep.subr.mxu1 %v3706_v60  ;;  %v2868_v12 = vld [vmem:[%s5461_s5 + $0x240] sm:$0xff]  ;;  %v2866_v13 = vld [vmem:[%s5461_s5 + $0x230] sm:$0xff]  ;;  %v2865_v15 = vld [vmem:[%s5461_s5 + $0x228] sm:$0xff] }
 0x254   : > { %1180 = vmatprep.subr.mxu0 %v2881_v63  ;;  %3348 = vmatpush3.msra.mxu1 %v2888_v9  ;;  %v2882_v14 = vld [vmem:[%s5461_s5 + $0x2b0] sm:$0xff]  ;;  %v2863_v16 = vld [vmem:[%s5461_s5 + $0x218] sm:$0xff]  ;;  %v2860_v19 = vld [vmem:[%s5461_s5 + $0x200] sm:$0xff] }
 0x255   : > { %1181 = vmatpush1.msra.mxu0 %v2880_v0  ;;  %3349 = vmatprep.subr.mxu1 %v3706_v60  ;;  %v2879_v17 = vld [vmem:[%s5461_s5 + $0x298] sm:$0xff]  ;;  %v2862_v18 = vld [vmem:[%s5461_s5 + $0x210] sm:$0xff]  ;;  %v2876_v20 = vld [vmem:[%s5461_s5 + $0x280] sm:$0xff] }
 0x256   : > { %1182 = vmatprep.subr.mxu0 %v2878_v1  ;;  %3350 = vmatpush3.msra.mxu1 %v2885_v11  ;;  %v2859_v21 = vld [vmem:[%s5461_s5 + $0x1f8] sm:$0xff]  ;;  %v2857_v22 = vld [vmem:[%s5461_s5 + $0x1e8] sm:$0xff]  ;;  %v2856_v24 = vld [vmem:[%s5461_s5 + $0x1e0] sm:$0xff] }
 0x257   : > { %1183 = vmatpush1.msra.mxu0 %v2877_v2  ;;  %3351 = vmatprep.subr.mxu1 %v3706_v60  ;;  %v2873_v23 = vld [vmem:[%s5461_s5 + $0x268] sm:$0xff]  ;;  %v2854_v25 = vld [vmem:[%s5461_s5 + $0x1d0] sm:$0xff]  ;;  %v2851_v28 = vld [vmem:[%s5461_s5 + $0x1b8] sm:$0xff] }
 0x258   : > { %1184 = vmatprep.subr.mxu0 %v2875_v3  ;;  %3352 = vmatpush3.msra.mxu1 %v2882_v14  ;;  %v2870_v26 = vld [vmem:[%s5461_s5 + $0x250] sm:$0xff]  ;;  %v2853_v27 = vld [vmem:[%s5461_s5 + $0x1c8] sm:$0xff]  ;;  %v2867_v29 = vld [vmem:[%s5461_s5 + $0x238] sm:$0xff] }
 0x259   : > { %1185 = vmatpush1.msra.mxu0 %v2874_v4  ;;  %3353 = vmatprep.subr.mxu1 %v3706_v60  ;;  %v2850_v30 = vld [vmem:[%s5461_s5 + $0x1b0] sm:$0xff]  ;;  %v2848_v31 = vld [vmem:[%s5461_s5 + $0x1a0] sm:$0xff]  ;;  %v2847_v33 = vld [vmem:[%s5461_s5 + $0x198] sm:$0xff] }
 0x25a   : > { %1186 = vmatprep.subr.mxu0 %v2872_v5  ;;  %3354 = vmatpush3.msra.mxu1 %v2879_v17  ;;  %v2864_v32 = vld [vmem:[%s5461_s5 + $0x220] sm:$0xff]  ;;  %v2845_v34 = vld [vmem:[%s5461_s5 + $0x188] sm:$0xff]  ;;  %v2858_v38 = vld [vmem:[%s5461_s5 + $0x1f0] sm:$0xff] }
 0x25b   : > { %1187 = vmatpush1.msra.mxu0 %v2871_v8  ;;  %3355 = vmatprep.subr.mxu1 %v3706_v60  ;;  %v2861_v35 = vld [vmem:[%s5461_s5 + $0x208] sm:$0xff]  ;;  %v2844_v36 = vld [vmem:[%s5461_s5 + $0x180] sm:$0xff]  ;;  %v2855_v39 = vld [vmem:[%s5461_s5 + $0x1d8] sm:$0xff] }
 0x25c   : > { %1188 = vmatprep.subr.mxu0 %v2869_v10  ;;  %3356 = vmatpush3.msra.mxu1 %v2876_v20  ;;  %v1124_v37 = vld [vmem:[#allocation5] sm:$0xff]  ;;  %v2852_v40 = vld [vmem:[%s5461_s5 + $0x1c0] sm:$0xff]  ;;  %v2846_v42 = vld [vmem:[%s5461_s5 + $0x190] sm:$0xff] }
 0x25d   : > { %1189 = vmatpush1.msra.mxu0 %v2868_v12  ;;  %3357 = vmatprep.subr.mxu1 %v3706_v60  ;;  %v2849_v41 = vld [vmem:[%s5461_s5 + $0x1a8] sm:$0xff]  ;;  %v1122_v6 = vld [vmem:[#allocation3 + $0x58] sm:$0xff]  ;;  %v1123_v59 = vld [vmem:[#allocation3 + $0x10] sm:$0xff] }
 0x25e   : > { %1190 = vmatprep.subr.mxu0 %v2866_v13  ;;  %3358 = vmatpush3.msra.mxu1 %v2873_v23  ;;  %v1121_v43 = vld [vmem:[#allocation3 + $0x28] sm:$0xff] }
 0x25f   : > { %1191 = vmatpush1.msra.mxu0 %v2865_v15  ;;  %3359 = vmatprep.subr.mxu1 %v3706_v60 }
 0x260   : > { %1192 = vmatprep.subr.mxu0 %v2863_v16  ;;  %3360 = vmatpush3.msra.mxu1 %v2870_v26 }
 0x261   : > { %1193 = vmatpush1.msra.mxu0 %v2862_v18  ;;  %3361 = vmatprep.subr.mxu1 %v3706_v60 }
 0x262   : > { %1194 = vmatprep.subr.mxu0 %v2860_v19  ;;  %3362 = vmatpush3.msra.mxu1 %v2867_v29 }
 0x263   : > { %1195 = vmatpush1.msra.mxu0 %v2859_v21  ;;  %3363 = vmatprep.subr.mxu1 %v3706_v60 }
 0x264   : > { %1196 = vmatprep.subr.mxu0 %v2857_v22  ;;  %3364 = vmatpush3.msra.mxu1 %v2864_v32 }
 0x265   : > { %1197 = vmatpush1.msra.mxu0 %v2856_v24  ;;  %3365 = vmatprep.subr.mxu1 %v3706_v60 }
 0x266   : > { %1198 = vmatprep.subr.mxu0 %v2854_v25  ;;  %3366 = vmatpush3.msra.mxu1 %v2861_v35 }
 0x267   : > { %1199 = vmatpush1.msra.mxu0 %v2853_v27  ;;  %3367 = vmatprep.subr.mxu1 %v3706_v60 }
 0x268   : > { %1200 = vmatprep.subr.mxu0 %v2851_v28  ;;  %3368 = vmatpush3.msra.mxu1 %v2858_v38 }
 0x269   : > { %1201 = vmatpush1.msra.mxu0 %v2850_v30  ;;  %3369 = vmatprep.subr.mxu1 %v3706_v60 }
 0x26a   : > { %1202 = vmatprep.subr.mxu0 %v2848_v31  ;;  %3370 = vmatpush3.msra.mxu1 %v2855_v39 }
 0x26b   : > { %1203 = vmatpush1.msra.mxu0 %v2847_v33  ;;  %3371 = vmatprep.subr.mxu1 %v3706_v60 }
 0x26c   : > { %1204 = vmatprep.subr.mxu0 %v2845_v34  ;;  %3372 = vmatpush3.msra.mxu1 %v2852_v40 }
 0x26d   : > { %1205 = vmatpush1.msra.mxu0 %v2844_v36  ;;  %3373 = vmatprep.subr.mxu1 %v3706_v60 }
 0x26e   : > { %1239 = vmatmul.mubr.f32.vlgmr.msra.gmra.mxu0 %v1124_v37  ;;  %3374 = vmatpush3.msra.mxu1 %v2849_v41 }
 0x26f   : > { %3375 = vmatprep.subr.mxu1 %v3706_v60 }
 0x270   : > { %3376 = vmatpush3.msra.mxu1 %v2846_v42 }
 0x271   : > { %3378 = vmatmul.mubr.f32.vlgmr.msra.gmra.mxu1 %v1124_v37 }
 0x32e   : > { %v1240_v46 = vpop.f32.mrf.mxu0 }
 0x32f   : > { %v1315_v47 = vadd.f32 %v1240_v46, %v1121_v43 }
 0x330   : > { %v1242_v49 = vpop.f32.mrf.mxu0 }
 0x331   : > { %v2892_v48 = vmul.f32 -1.442695, %v1315_v47  ;;  %v1311_v50 = vpop.f32.mrf.mxu1  ;;  %v1322_v52 = vadd.f32 %v1242_v49, %v1122_v6 }
 0x332   : > { %v1329_v56 = vadd.f32 %v4119_v45, %v1311_v50 }
 0x333   : > { %3625 = vpow2.f32 %v2892_v48  ;;  %v3379_v51 = vpop.f32.mrf.mxu1  ;;  %v2893_v53 = vmul.f32 -1.442695, %v1322_v52 }
 0x335   : > { %3627 = vpow2.f32 %v2893_v53 }
 0x340   : > { %v3626_v54 = vpop.eup %3625 }
 0x341   : > { %v1319_v55 = vadd.f32 1.0, %v3626_v54 }
 0x342   : > { %v3628_v57 = vpop.eup %3627 }
 0x343   : > { %3629 = vrcp.f32 %v1319_v55  ;;  %v1326_v61 = vadd.f32 1.0, %v3628_v57 }
 0x350   : > { %v3630_v58 = vpop.eup %3629 }
 0x351   : > { %v1330_v60 = vmul.f32 %v3630_v58, %v1329_v56 }
 0x353   : > { %v1331_v62 = vadd.f32 %v1330_v60, %v1123_v59 }
 0x355   : > { %3631 = vtanh.f32 %v1331_v62 }
 0x356   : > { %3633 = vrcp.f32 %v1326_v61 }
 0x362   : > { %v3632_v63 = vpop.eup %3631 }
 0x363   : > { %v1333_v0 = vsub.f32 %v1124_v37, %v3632_v63  ;;  %v3634_v1 = vpop.eup %3633 }
 0x365   : > { %v1334_v2 = vmul.f32 %v3634_v1, %v1333_v0 }
 0x367   : > { %v1335_v3 = vadd.f32 %v3632_v63, %v1334_v2 }
 0x369   : > { %1336 = vst [vmem:[#allocation5] sm:$0xff] %v1335_v3  ;;  %1337 = vst [vmem:[%s3799_s25 + $0x18] sm:$0xff] %v1335_v3 }
 0x36a PF: > { %s1338_s30 = sadd.s32 1, %s3773_s29  ;;  %s1339_s10 = sadd.s32 2, %s3776_s9 }
 0x36b   : > { %p2894_p8 = scmp.ge.s32.totalorder %s1338_s30, 7 }
 0x36d   : > { %1343 = sbr.rel (%p2894_p8) target bundleno = 1167 (0x48f), region = 64 }
 0x372   : > { %v1394_v4 = vld [vmem:[%s5461_s5 + $0x170] sm:$0xff]  ;;  %v1393_v5 = vld [vmem:[%s5461_s5 + $0x168] sm:$0xff]  ;;  %v1391_v7 = vld [vmem:[%s5461_s5 + $0x158] sm:$0xff]  ;;  %v3708_v9 = vmov 0.0   ;;  %vm3709_vm2 = vmmov 0  }
 0x373   : > { %1396 = vmatprep.subr.mxu0 %v1394_v4  ;;  %v1390_v8 = vld [vmem:[%s5461_s5 + $0x150] sm:$0xff]  ;;  %3380 = vmatprep.subr.mxu1 %v3708_v9  ;;  %v1388_v10 = vld [vmem:[%s5461_s5 + $0x140] sm:$0xff]  ;;  %v1387_v11 = vld [vmem:[%s5461_s5 + $0x138] sm:$0xff] }
 0x374   : > { %1397 = vmatpush1.msra.mxu0 %v1393_v5  ;;  %1460 = vmatprep.mubr.f32.mxu0 %v3708_v9  ;;  %v1385_v12 = vld [vmem:[%s5461_s5 + $0x128] sm:$0xff]  ;;  %v1384_v13 = vld [vmem:[%s5461_s5 + $0x120] sm:$0xff]  ;;  %v1382_v14 = vld [vmem:[%s5461_s5 + $0x110] sm:$0xff] }
 0x375   : > { %1398 = vmatprep.subr.mxu0 %v1391_v7  ;;  %3412 = vmatprep.mubr.msk.f32.mxu1 %vm3709_vm2, %v3708_v9  ;;  %v1381_v15 = vld [vmem:[%s5461_s5 + $0x108] sm:$0xff]  ;;  %v1379_v16 = vld [vmem:[%s5461_s5 + $0xf8] sm:$0xff]  ;;  %v1378_v17 = vld [vmem:[%s5461_s5 + $0xf0] sm:$0xff] }
 0x376   : > { %1399 = vmatpush1.msra.mxu0 %v1390_v8  ;;  %v1376_v18 = vld [vmem:[%s5461_s5 + $0xe0] sm:$0xff]  ;;  %v1395_v19 = vld [vmem:[%s5461_s5 + $0x178] sm:$0xff]  ;;  %v1373_v22 = vld [vmem:[%s5461_s5 + $0xc8] sm:$0xff] }
 0x377   : > { %1400 = vmatprep.subr.mxu0 %v1388_v10  ;;  %v1375_v20 = vld [vmem:[%s5461_s5 + $0xd8] sm:$0xff]  ;;  %3381 = vmatpush3.msra.mxu1 %v1395_v19  ;;  %v1392_v21 = vld [vmem:[%s5461_s5 + $0x160] sm:$0xff]  ;;  %v1389_v23 = vld [vmem:[%s5461_s5 + $0x148] sm:$0xff] }
 0x378   : > { %1401 = vmatpush1.msra.mxu0 %v1387_v11  ;;  %3382 = vmatprep.subr.mxu1 %v3708_v9  ;;  %v1372_v24 = vld [vmem:[%s5461_s5 + $0xc0] sm:$0xff]  ;;  %v1370_v25 = vld [vmem:[%s5461_s5 + $0xb0] sm:$0xff]  ;;  %v1369_v27 = vld [vmem:[%s5461_s5 + $0xa8] sm:$0xff] }
 0x379   : > { %1402 = vmatprep.subr.mxu0 %v1385_v12  ;;  %3383 = vmatpush3.msra.mxu1 %v1392_v21  ;;  %v1386_v26 = vld [vmem:[%s5461_s5 + $0x130] sm:$0xff]  ;;  %v1367_v28 = vld [vmem:[%s5461_s5 + $0x98] sm:$0xff]  ;;  %v1364_v31 = vld [vmem:[%s5461_s5 + $0x80] sm:$0xff] }
 0x37a   : > { %1403 = vmatpush1.msra.mxu0 %v1384_v13  ;;  %3384 = vmatprep.subr.mxu1 %v3708_v9  ;;  %v1383_v29 = vld [vmem:[%s5461_s5 + $0x118] sm:$0xff]  ;;  %v1366_v30 = vld [vmem:[%s5461_s5 + $0x90] sm:$0xff]  ;;  %v1380_v32 = vld [vmem:[%s5461_s5 + $0x100] sm:$0xff] }
 0x37b   : > { %1404 = vmatprep.subr.mxu0 %v1382_v14  ;;  %3385 = vmatpush3.msra.mxu1 %v1389_v23  ;;  %v1363_v33 = vld [vmem:[%s5461_s5 + $0x78] sm:$0xff]  ;;  %v1361_v34 = vld [vmem:[%s5461_s5 + $0x68] sm:$0xff]  ;;  %v1360_v36 = vld [vmem:[%s5461_s5 + $0x60] sm:$0xff] }
 0x37c   : > { %1405 = vmatpush1.msra.mxu0 %v1381_v15  ;;  %3386 = vmatprep.subr.mxu1 %v3708_v9  ;;  %v1377_v35 = vld [vmem:[%s5461_s5 + $0xe8] sm:$0xff]  ;;  %v1358_v37 = vld [vmem:[%s5461_s5 + $0x50] sm:$0xff]  ;;  %v1355_v40 = vld [vmem:[%s5461_s5 + $0x38] sm:$0xff] }
 0x37d   : > { %1406 = vmatprep.subr.mxu0 %v1379_v16  ;;  %3387 = vmatpush3.msra.mxu1 %v1386_v26  ;;  %v1374_v38 = vld [vmem:[%s5461_s5 + $0xd0] sm:$0xff]  ;;  %v1357_v39 = vld [vmem:[%s5461_s5 + $0x48] sm:$0xff]  ;;  %v1371_v41 = vld [vmem:[%s5461_s5 + $0xb8] sm:$0xff] }
 0x37e   : > { %1407 = vmatpush1.msra.mxu0 %v1378_v17  ;;  %3388 = vmatprep.subr.mxu1 %v3708_v9  ;;  %v1354_v42 = vld [vmem:[%s5461_s5 + $0x30] sm:$0xff]  ;;  %v1352_v43 = vld [vmem:[%s5461_s5 + $0x20] sm:$0xff]  ;;  %v1351_v47 = vld [vmem:[%s5461_s5 + $0x18] sm:$0xff] }
 0x37f   : > { %1408 = vmatprep.subr.mxu0 %v1376_v18  ;;  %3389 = vmatpush3.msra.mxu1 %v1383_v29  ;;  %v1368_v46 = vld [vmem:[%s5461_s5 + $0xa0] sm:$0xff]  ;;  %v1349_v48 = vld [vmem:[%s5461_s5 + $0x8] sm:$0xff]  ;;  %v1362_v51 = vld [vmem:[%s5461_s5 + $0x70] sm:$0xff] }
 0x380   : > { %1409 = vmatpush1.msra.mxu0 %v1375_v20  ;;  %3390 = vmatprep.subr.mxu1 %v3708_v9  ;;  %v1365_v6 = vld [vmem:[%s5461_s5 + $0x88] sm:$0xff]  ;;  %v1348_v49 = vld [vmem:[%s5461_s5] sm:$0xff]  ;;  %v1359_v52 = vld [vmem:[%s5461_s5 + $0x58] sm:$0xff] }
 0x381   : > { %1410 = vmatprep.subr.mxu0 %v1373_v22  ;;  %3391 = vmatpush3.msra.mxu1 %v1380_v32  ;;  %v1347_v50 = vld [vmem:[#allocation4] sm:$0xff]  ;;  %v1353_v54 = vld [vmem:[%s5461_s5 + $0x28] sm:$0xff]  ;;  %v1350_v55 = vld [vmem:[%s5461_s5 + $0x10] sm:$0xff] }
 0x382   : > { %1411 = vmatpush1.msra.mxu0 %v1372_v24  ;;  %3392 = vmatprep.subr.mxu1 %v3708_v9  ;;  %v1356_v53 = vld [vmem:[%s5461_s5 + $0x40] sm:$0xff]  ;;  %v1344_v56 = vld [vmem:[#allocation2 + $0x18] sm:$0xff]  ;;  %v1345_v60 = vld [vmem:[#allocation2 + $0x50] sm:$0xff] }
 0x383   : > { %1412 = vmatprep.subr.mxu0 %v1370_v25  ;;  %3393 = vmatpush3.msra.mxu1 %v1377_v35  ;;  %v1346_v8 = vld [vmem:[#allocation2 + $0x20] sm:$0xff] }
 0x384   : > { %1413 = vmatpush1.msra.mxu0 %v1369_v27  ;;  %3394 = vmatprep.subr.mxu1 %v3708_v9 }
 0x385   : > { %1414 = vmatprep.subr.mxu0 %v1367_v28  ;;  %3395 = vmatpush3.msra.mxu1 %v1374_v38 }
 0x386   : > { %1415 = vmatpush1.msra.mxu0 %v1366_v30  ;;  %3396 = vmatprep.subr.mxu1 %v3708_v9 }
 0x387   : > { %1416 = vmatprep.subr.mxu0 %v1364_v31  ;;  %3397 = vmatpush3.msra.mxu1 %v1371_v41 }
 0x388   : > { %1417 = vmatpush1.msra.mxu0 %v1363_v33  ;;  %3398 = vmatprep.subr.mxu1 %v3708_v9 }
 0x389   : > { %1418 = vmatprep.subr.mxu0 %v1361_v34  ;;  %3399 = vmatpush3.msra.mxu1 %v1368_v46 }
 0x38a   : > { %1419 = vmatpush1.msra.mxu0 %v1360_v36  ;;  %3400 = vmatprep.subr.mxu1 %v3708_v9 }
 0x38b   : > { %1420 = vmatprep.subr.mxu0 %v1358_v37  ;;  %3401 = vmatpush3.msra.mxu1 %v1365_v6 }
 0x38c   : > { %1421 = vmatpush1.msra.mxu0 %v1357_v39  ;;  %3402 = vmatprep.subr.mxu1 %v3708_v9 }
 0x38d   : > { %1422 = vmatprep.subr.mxu0 %v1355_v40  ;;  %3403 = vmatpush3.msra.mxu1 %v1362_v51 }
 0x38e   : > { %1423 = vmatpush1.msra.mxu0 %v1354_v42  ;;  %3404 = vmatprep.subr.mxu1 %v3708_v9 }
 0x38f   : > { %1424 = vmatprep.subr.mxu0 %v1352_v43  ;;  %3405 = vmatpush3.msra.mxu1 %v1359_v52 }
 0x390   : > { %1425 = vmatpush1.msra.mxu0 %v1351_v47  ;;  %3406 = vmatprep.subr.mxu1 %v3708_v9 }
 0x391   : > { %1426 = vmatprep.subr.mxu0 %v1349_v48  ;;  %3407 = vmatpush3.msra.mxu1 %v1356_v53 }
 0x392   : > { %1427 = vmatpush1.msra.mxu0 %v1348_v49  ;;  %3408 = vmatprep.subr.mxu1 %v3708_v9 }
 0x393   : > { %1461 = vmatmul.mubr.f32.vlgmr.msra.gmra.mxu0 %v1347_v50  ;;  %3409 = vmatpush3.msra.mxu1 %v1353_v54 }
 0x394   : > { %3410 = vmatprep.subr.mxu1 %v3708_v9 }
 0x395   : > { %3411 = vmatpush3.msra.mxu1 %v1350_v55 }
 0x396   : > { %3413 = vmatmul.mubr.f32.vlgmr.msra.gmra.mxu1 %v1347_v50 }
 0x453   : > { %v1462_v57 = vpop.f32.mrf.mxu0 }
 0x454   : > { %v1537_v58 = vadd.f32 %v1462_v57, %v1344_v56 }
 0x455   : > { %v1464_v61 = vpop.f32.mrf.mxu0 }
 0x456   : > { %v2895_v59 = vmul.f32 -1.442695, %v1537_v58  ;;  %v1533_v62 = vpop.f32.mrf.mxu1  ;;  %v1544_v0 = vadd.f32 %v1464_v61, %v1345_v60 }
 0x457   : > { %v1551_v4 = vadd.f32 %v4114_v44, %v1533_v62 }
 0x458   : > { %3635 = vpow2.f32 %v2895_v59  ;;  %v3414_v63 = vpop.f32.mrf.mxu1  ;;  %v2896_v1 = vmul.f32 -1.442695, %v1544_v0 }
 0x45a   : > { %3637 = vpow2.f32 %v2896_v1 }
 0x465   : > { %v3636_v2 = vpop.eup %3635 }
 0x466   : > { %v1541_v3 = vadd.f32 1.0, %v3636_v2 }
 0x467   : > { %v3638_v5 = vpop.eup %3637 }
 0x468   : > { %3639 = vrcp.f32 %v1541_v3  ;;  %v1548_v10 = vadd.f32 1.0, %v3638_v5 }
 0x475   : > { %v3640_v7 = vpop.eup %3639 }
 0x476   : > { %v1552_v9 = vmul.f32 %v3640_v7, %v1551_v4 }
 0x478   : > { %v1553_v11 = vadd.f32 %v1552_v9, %v1346_v8 }
 0x47a   : > { %3641 = vtanh.f32 %v1553_v11 }
 0x47b   : > { %3643 = vrcp.f32 %v1548_v10 }
 0x487   : > { %v3642_v12 = vpop.eup %3641 }
 0x488   : > { %v1555_v13 = vsub.f32 %v1347_v50, %v3642_v12  ;;  %v3644_v14 = vpop.eup %3643 }
 0x48a   : > { %v1556_v15 = vmul.f32 %v3644_v14, %v1555_v13 }
 0x48c   : > { %v1557_v16 = vadd.f32 %v3642_v12, %v1556_v15 }
 0x48e   : > { %1558 = vst [vmem:[#allocation4] sm:$0xff] %v1557_v16  ;;  %1559 = vst [vmem:[%s3794_s22 + $0x8] sm:$0xff] %v1557_v16 }
 0x48f PF: > { %p2897_p9 = scmp.ge.s32.totalorder %s1339_s10, 7 }
 0x491   : > { %1563 = sbr.rel (%p2897_p9) target bundleno = 1459 (0x5b3), region = 68 }
 0x496   : > { %v2944_v17 = vld [vmem:[%s5461_s5 + $0x2f0] sm:$0xff]  ;;  %v2943_v18 = vld [vmem:[%s5461_s5 + $0x2e8] sm:$0xff]  ;;  %v2941_v19 = vld [vmem:[%s5461_s5 + $0x2d8] sm:$0xff]  ;;  %v3710_v21 = vmov 0.0   ;;  %vm3711_vm3 = vmmov 0  }
 0x497   : > { %1617 = vmatprep.subr.mxu0 %v2944_v17  ;;  %v2940_v20 = vld [vmem:[%s5461_s5 + $0x2d0] sm:$0xff]  ;;  %3415 = vmatprep.subr.mxu1 %v3710_v21  ;;  %v2938_v22 = vld [vmem:[%s5461_s5 + $0x2c0] sm:$0xff]  ;;  %v2937_v23 = vld [vmem:[%s5461_s5 + $0x2b8] sm:$0xff] }
 0x498   : > { %1618 = vmatpush1.msra.mxu0 %v2943_v18  ;;  %1681 = vmatprep.mubr.f32.mxu0 %v3710_v21  ;;  %v2935_v24 = vld [vmem:[%s5461_s5 + $0x2a8] sm:$0xff]  ;;  %v2934_v25 = vld [vmem:[%s5461_s5 + $0x2a0] sm:$0xff]  ;;  %v2932_v26 = vld [vmem:[%s5461_s5 + $0x290] sm:$0xff] }
 0x499   : > { %1619 = vmatprep.subr.mxu0 %v2941_v19  ;;  %3447 = vmatprep.mubr.msk.f32.mxu1 %vm3711_vm3, %v3710_v21  ;;  %v2931_v27 = vld [vmem:[%s5461_s5 + $0x288] sm:$0xff]  ;;  %v2929_v28 = vld [vmem:[%s5461_s5 + $0x278] sm:$0xff]  ;;  %v2928_v29 = vld [vmem:[%s5461_s5 + $0x270] sm:$0xff] }
 0x49a   : > { %1620 = vmatpush1.msra.mxu0 %v2940_v20  ;;  %v2926_v30 = vld [vmem:[%s5461_s5 + $0x260] sm:$0xff]  ;;  %v2945_v31 = vld [vmem:[%s5461_s5 + $0x2f8] sm:$0xff]  ;;  %v2923_v34 = vld [vmem:[%s5461_s5 + $0x248] sm:$0xff] }
 0x49b   : > { %1621 = vmatprep.subr.mxu0 %v2938_v22  ;;  %v2925_v32 = vld [vmem:[%s5461_s5 + $0x258] sm:$0xff]  ;;  %3416 = vmatpush3.msra.mxu1 %v2945_v31  ;;  %v2942_v33 = vld [vmem:[%s5461_s5 + $0x2e0] sm:$0xff]  ;;  %v2939_v35 = vld [vmem:[%s5461_s5 + $0x2c8] sm:$0xff] }
 0x49c   : > { %1622 = vmatpush1.msra.mxu0 %v2937_v23  ;;  %3417 = vmatprep.subr.mxu1 %v3710_v21  ;;  %v2922_v36 = vld [vmem:[%s5461_s5 + $0x240] sm:$0xff]  ;;  %v2920_v37 = vld [vmem:[%s5461_s5 + $0x230] sm:$0xff]  ;;  %v2919_v39 = vld [vmem:[%s5461_s5 + $0x228] sm:$0xff] }
 0x49d   : > { %1623 = vmatprep.subr.mxu0 %v2935_v24  ;;  %3418 = vmatpush3.msra.mxu1 %v2942_v33  ;;  %v2936_v38 = vld [vmem:[%s5461_s5 + $0x2b0] sm:$0xff]  ;;  %v2917_v40 = vld [vmem:[%s5461_s5 + $0x218] sm:$0xff]  ;;  %v2914_v43 = vld [vmem:[%s5461_s5 + $0x200] sm:$0xff] }
 0x49e   : > { %1624 = vmatpush1.msra.mxu0 %v2934_v25  ;;  %3419 = vmatprep.subr.mxu1 %v3710_v21  ;;  %v2933_v41 = vld [vmem:[%s5461_s5 + $0x298] sm:$0xff]  ;;  %v2916_v42 = vld [vmem:[%s5461_s5 + $0x210] sm:$0xff]  ;;  %v2930_v46 = vld [vmem:[%s5461_s5 + $0x280] sm:$0xff] }
 0x49f   : > { %1625 = vmatprep.subr.mxu0 %v2932_v26  ;;  %3420 = vmatpush3.msra.mxu1 %v2939_v35  ;;  %v2913_v47 = vld [vmem:[%s5461_s5 + $0x1f8] sm:$0xff]  ;;  %v2911_v48 = vld [vmem:[%s5461_s5 + $0x1e8] sm:$0xff]  ;;  %v2910_v49 = vld [vmem:[%s5461_s5 + $0x1e0] sm:$0xff] }
 0x4a0   : > { %1626 = vmatpush1.msra.mxu0 %v2931_v27  ;;  %3421 = vmatprep.subr.mxu1 %v3710_v21  ;;  %v2927_v6 = vld [vmem:[%s5461_s5 + $0x268] sm:$0xff]  ;;  %v2908_v50 = vld [vmem:[%s5461_s5 + $0x1d0] sm:$0xff]  ;;  %v2905_v53 = vld [vmem:[%s5461_s5 + $0x1b8] sm:$0xff] }
 0x4a1   : > { %1627 = vmatprep.subr.mxu0 %v2929_v28  ;;  %3422 = vmatpush3.msra.mxu1 %v2936_v38  ;;  %v2924_v51 = vld [vmem:[%s5461_s5 + $0x250] sm:$0xff]  ;;  %v2907_v52 = vld [vmem:[%s5461_s5 + $0x1c8] sm:$0xff]  ;;  %v2921_v54 = vld [vmem:[%s5461_s5 + $0x238] sm:$0xff] }
 0x4a2   : > { %1628 = vmatpush1.msra.mxu0 %v2928_v29  ;;  %3423 = vmatprep.subr.mxu1 %v3710_v21  ;;  %v2904_v55 = vld [vmem:[%s5461_s5 + $0x1b0] sm:$0xff]  ;;  %v2902_v56 = vld [vmem:[%s5461_s5 + $0x1a0] sm:$0xff]  ;;  %v2901_v58 = vld [vmem:[%s5461_s5 + $0x198] sm:$0xff] }
 0x4a3   : > { %1629 = vmatprep.subr.mxu0 %v2926_v30  ;;  %3424 = vmatpush3.msra.mxu1 %v2933_v41  ;;  %v2918_v57 = vld [vmem:[%s5461_s5 + $0x220] sm:$0xff]  ;;  %v2899_v59 = vld [vmem:[%s5461_s5 + $0x188] sm:$0xff]  ;;  %v2912_v63 = vld [vmem:[%s5461_s5 + $0x1f0] sm:$0xff] }
 0x4a4   : > { %1630 = vmatpush1.msra.mxu0 %v2925_v32  ;;  %3425 = vmatprep.subr.mxu1 %v3710_v21  ;;  %v2915_v60 = vld [vmem:[%s5461_s5 + $0x208] sm:$0xff]  ;;  %v2898_v61 = vld [vmem:[%s5461_s5 + $0x180] sm:$0xff]  ;;  %v2909_v0 = vld [vmem:[%s5461_s5 + $0x1d8] sm:$0xff] }
 0x4a5   : > { %1631 = vmatprep.subr.mxu0 %v2923_v34  ;;  %3426 = vmatpush3.msra.mxu1 %v2930_v46  ;;  %v1567_v62 = vld [vmem:[#allocation5] sm:$0xff]  ;;  %v2906_v1 = vld [vmem:[%s5461_s5 + $0x1c0] sm:$0xff]  ;;  %v2900_v3 = vld [vmem:[%s5461_s5 + $0x190] sm:$0xff] }
 0x4a6   : > { %1632 = vmatpush1.msra.mxu0 %v2922_v36  ;;  %3427 = vmatprep.subr.mxu1 %v3710_v21  ;;  %v2903_v2 = vld [vmem:[%s5461_s5 + $0x1a8] sm:$0xff]  ;;  %v1564_v4 = vld [vmem:[#allocation3 + $0x18] sm:$0xff]  ;;  %v1565_v9 = vld [vmem:[#allocation3 + $0x40] sm:$0xff] }
 0x4a7   : > { %1633 = vmatprep.subr.mxu0 %v2920_v37  ;;  %3428 = vmatpush3.msra.mxu1 %v2927_v6  ;;  %v1566_v20 = vld [vmem:[#allocation3 + $0x38] sm:$0xff] }
 0x4a8   : > { %1634 = vmatpush1.msra.mxu0 %v2919_v39  ;;  %3429 = vmatprep.subr.mxu1 %v3710_v21 }
 0x4a9   : > { %1635 = vmatprep.subr.mxu0 %v2917_v40  ;;  %3430 = vmatpush3.msra.mxu1 %v2924_v51 }
 0x4aa   : > { %1636 = vmatpush1.msra.mxu0 %v2916_v42  ;;  %3431 = vmatprep.subr.mxu1 %v3710_v21 }
 0x4ab   : > { %1637 = vmatprep.subr.mxu0 %v2914_v43  ;;  %3432 = vmatpush3.msra.mxu1 %v2921_v54 }
 0x4ac   : > { %1638 = vmatpush1.msra.mxu0 %v2913_v47  ;;  %3433 = vmatprep.subr.mxu1 %v3710_v21 }
 0x4ad   : > { %1639 = vmatprep.subr.mxu0 %v2911_v48  ;;  %3434 = vmatpush3.msra.mxu1 %v2918_v57 }
 0x4ae   : > { %1640 = vmatpush1.msra.mxu0 %v2910_v49  ;;  %3435 = vmatprep.subr.mxu1 %v3710_v21 }
 0x4af   : > { %1641 = vmatprep.subr.mxu0 %v2908_v50  ;;  %3436 = vmatpush3.msra.mxu1 %v2915_v60 }
 0x4b0   : > { %1642 = vmatpush1.msra.mxu0 %v2907_v52  ;;  %3437 = vmatprep.subr.mxu1 %v3710_v21 }
 0x4b1   : > { %1643 = vmatprep.subr.mxu0 %v2905_v53  ;;  %3438 = vmatpush3.msra.mxu1 %v2912_v63 }
 0x4b2   : > { %1644 = vmatpush1.msra.mxu0 %v2904_v55  ;;  %3439 = vmatprep.subr.mxu1 %v3710_v21 }
 0x4b3   : > { %1645 = vmatprep.subr.mxu0 %v2902_v56  ;;  %3440 = vmatpush3.msra.mxu1 %v2909_v0 }
 0x4b4   : > { %1646 = vmatpush1.msra.mxu0 %v2901_v58  ;;  %3441 = vmatprep.subr.mxu1 %v3710_v21 }
 0x4b5   : > { %1647 = vmatprep.subr.mxu0 %v2899_v59  ;;  %3442 = vmatpush3.msra.mxu1 %v2906_v1 }
 0x4b6   : > { %1648 = vmatpush1.msra.mxu0 %v2898_v61  ;;  %3443 = vmatprep.subr.mxu1 %v3710_v21 }
 0x4b7   : > { %1682 = vmatmul.mubr.f32.vlgmr.msra.gmra.mxu0 %v1567_v62  ;;  %3444 = vmatpush3.msra.mxu1 %v2903_v2 }
 0x4b8   : > { %3445 = vmatprep.subr.mxu1 %v3710_v21 }
 0x4b9   : > { %3446 = vmatpush3.msra.mxu1 %v2900_v3 }
 0x4ba   : > { %3448 = vmatmul.mubr.f32.vlgmr.msra.gmra.mxu1 %v1567_v62 }
 0x577   : > { %v1683_v5 = vpop.f32.mrf.mxu0 }
 0x578   : > { %v1758_v7 = vadd.f32 %v1683_v5, %v1564_v4 }
 0x579   : > { %v1685_v10 = vpop.f32.mrf.mxu0 }
 0x57a   : > { %v2946_v8 = vmul.f32 -1.442695, %v1758_v7  ;;  %v1754_v11 = vpop.f32.mrf.mxu1  ;;  %v1765_v13 = vadd.f32 %v1685_v10, %v1565_v9 }
 0x57b   : > { %v1772_v17 = vadd.f32 %v4119_v45, %v1754_v11 }
 0x57c   : > { %3645 = vpow2.f32 %v2946_v8  ;;  %v3449_v12 = vpop.f32.mrf.mxu1  ;;  %v2947_v14 = vmul.f32 -1.442695, %v1765_v13 }
 0x57e   : > { %3647 = vpow2.f32 %v2947_v14 }
 0x589   : > { %v3646_v15 = vpop.eup %3645 }
 0x58a   : > { %v1762_v16 = vadd.f32 1.0, %v3646_v15 }
 0x58b   : > { %v3648_v18 = vpop.eup %3647 }
 0x58c   : > { %3649 = vrcp.f32 %v1762_v16  ;;  %v1769_v22 = vadd.f32 1.0, %v3648_v18 }
 0x599   : > { %v3650_v19 = vpop.eup %3649 }
 0x59a   : > { %v1773_v21 = vmul.f32 %v3650_v19, %v1772_v17 }
 0x59c   : > { %v1774_v23 = vadd.f32 %v1773_v21, %v1566_v20 }
 0x59e   : > { %3651 = vtanh.f32 %v1774_v23 }
 0x59f   : > { %3653 = vrcp.f32 %v1769_v22 }
 0x5ab   : > { %v3652_v24 = vpop.eup %3651 }
 0x5ac   : > { %v1776_v25 = vsub.f32 %v1567_v62, %v3652_v24  ;;  %v3654_v26 = vpop.eup %3653 }
 0x5ae   : > { %v1777_v27 = vmul.f32 %v3654_v26, %v1776_v25 }
 0x5b0   : > { %v1778_v28 = vadd.f32 %v3652_v24, %v1777_v27 }
 0x5b2   : > { %1779 = vst [vmem:[#allocation5] sm:$0xff] %v1778_v28  ;;  %1780 = vst [vmem:[%s3799_s25 + $0x10] sm:$0xff] %v1778_v28 }
 0x5b3 PF: > { %s1781_s23 = sadd.s32 2, %s3773_s29  ;;  %s1782_s24 = sadd.s32 1, %s3776_s9 }
 0x5b4   : > { %p2948_p10 = scmp.ge.s32.totalorder %s1781_s23, 7 }
 0x5b6   : > { %1786 = sbr.rel (%p2948_p10) target bundleno = 1752 (0x6d8), region = 72 }
 0x5bb   : > { %v1837_v29 = vld [vmem:[%s5461_s5 + $0x170] sm:$0xff]  ;;  %v1836_v30 = vld [vmem:[%s5461_s5 + $0x168] sm:$0xff]  ;;  %v1834_v31 = vld [vmem:[%s5461_s5 + $0x158] sm:$0xff]  ;;  %v3712_v33 = vmov 0.0   ;;  %vm3713_vm4 = vmmov 0  }
 0x5bc   : > { %1839 = vmatprep.subr.mxu0 %v1837_v29  ;;  %v1833_v32 = vld [vmem:[%s5461_s5 + $0x150] sm:$0xff]  ;;  %3450 = vmatprep.subr.mxu1 %v3712_v33  ;;  %v1831_v34 = vld [vmem:[%s5461_s5 + $0x140] sm:$0xff]  ;;  %v1830_v35 = vld [vmem:[%s5461_s5 + $0x138] sm:$0xff] }
 0x5bd   : > { %1840 = vmatpush1.msra.mxu0 %v1836_v30  ;;  %1903 = vmatprep.mubr.f32.mxu0 %v3712_v33  ;;  %v1828_v36 = vld [vmem:[%s5461_s5 + $0x128] sm:$0xff]  ;;  %v1827_v37 = vld [vmem:[%s5461_s5 + $0x120] sm:$0xff]  ;;  %v1825_v38 = vld [vmem:[%s5461_s5 + $0x110] sm:$0xff] }
 0x5be   : > { %1841 = vmatprep.subr.mxu0 %v1834_v31  ;;  %3482 = vmatprep.mubr.msk.f32.mxu1 %vm3713_vm4, %v3712_v33  ;;  %v1824_v39 = vld [vmem:[%s5461_s5 + $0x108] sm:$0xff]  ;;  %v1822_v40 = vld [vmem:[%s5461_s5 + $0xf8] sm:$0xff]  ;;  %v1821_v41 = vld [vmem:[%s5461_s5 + $0xf0] sm:$0xff] }
 0x5bf   : > { %1842 = vmatpush1.msra.mxu0 %v1833_v32  ;;  %v1819_v42 = vld [vmem:[%s5461_s5 + $0xe0] sm:$0xff]  ;;  %v1838_v43 = vld [vmem:[%s5461_s5 + $0x178] sm:$0xff]  ;;  %v1816_v48 = vld [vmem:[%s5461_s5 + $0xc8] sm:$0xff] }
 0x5c0   : > { %1843 = vmatprep.subr.mxu0 %v1831_v34  ;;  %v1818_v46 = vld [vmem:[%s5461_s5 + $0xd8] sm:$0xff]  ;;  %3451 = vmatpush3.msra.mxu1 %v1838_v43  ;;  %v1835_v47 = vld [vmem:[%s5461_s5 + $0x160] sm:$0xff]  ;;  %v1832_v6 = vld [vmem:[%s5461_s5 + $0x148] sm:$0xff] }
 0x5c1   : > { %1844 = vmatpush1.msra.mxu0 %v1830_v35  ;;  %3452 = vmatprep.subr.mxu1 %v3712_v33  ;;  %v1815_v49 = vld [vmem:[%s5461_s5 + $0xc0] sm:$0xff]  ;;  %v1813_v50 = vld [vmem:[%s5461_s5 + $0xb0] sm:$0xff]  ;;  %v1812_v52 = vld [vmem:[%s5461_s5 + $0xa8] sm:$0xff] }
 0x5c2   : > { %1845 = vmatprep.subr.mxu0 %v1828_v36  ;;  %3453 = vmatpush3.msra.mxu1 %v1835_v47  ;;  %v1829_v51 = vld [vmem:[%s5461_s5 + $0x130] sm:$0xff]  ;;  %v1810_v53 = vld [vmem:[%s5461_s5 + $0x98] sm:$0xff]  ;;  %v1807_v56 = vld [vmem:[%s5461_s5 + $0x80] sm:$0xff] }
 0x5c3   : > { %1846 = vmatpush1.msra.mxu0 %v1827_v37  ;;  %3454 = vmatprep.subr.mxu1 %v3712_v33  ;;  %v1826_v54 = vld [vmem:[%s5461_s5 + $0x118] sm:$0xff]  ;;  %v1809_v55 = vld [vmem:[%s5461_s5 + $0x90] sm:$0xff]  ;;  %v1823_v57 = vld [vmem:[%s5461_s5 + $0x100] sm:$0xff] }
 0x5c4   : > { %1847 = vmatprep.subr.mxu0 %v1825_v38  ;;  %3455 = vmatpush3.msra.mxu1 %v1832_v6  ;;  %v1806_v58 = vld [vmem:[%s5461_s5 + $0x78] sm:$0xff]  ;;  %v1804_v59 = vld [vmem:[%s5461_s5 + $0x68] sm:$0xff]  ;;  %v1803_v61 = vld [vmem:[%s5461_s5 + $0x60] sm:$0xff] }
 0x5c5   : > { %1848 = vmatpush1.msra.mxu0 %v1824_v39  ;;  %3456 = vmatprep.subr.mxu1 %v3712_v33  ;;  %v1820_v60 = vld [vmem:[%s5461_s5 + $0xe8] sm:$0xff]  ;;  %v1801_v62 = vld [vmem:[%s5461_s5 + $0x50] sm:$0xff]  ;;  %v1798_v1 = vld [vmem:[%s5461_s5 + $0x38] sm:$0xff] }
 0x5c6   : > { %1849 = vmatprep.subr.mxu0 %v1822_v40  ;;  %3457 = vmatpush3.msra.mxu1 %v1829_v51  ;;  %v1817_v63 = vld [vmem:[%s5461_s5 + $0xd0] sm:$0xff]  ;;  %v1800_v0 = vld [vmem:[%s5461_s5 + $0x48] sm:$0xff]  ;;  %v1814_v2 = vld [vmem:[%s5461_s5 + $0xb8] sm:$0xff] }
 0x5c7   : > { %1850 = vmatpush1.msra.mxu0 %v1821_v41  ;;  %3458 = vmatprep.subr.mxu1 %v3712_v33  ;;  %v1797_v3 = vld [vmem:[%s5461_s5 + $0x30] sm:$0xff]  ;;  %v1795_v4 = vld [vmem:[%s5461_s5 + $0x20] sm:$0xff]  ;;  %v1794_v7 = vld [vmem:[%s5461_s5 + $0x18] sm:$0xff] }
 0x5c8   : > { %1851 = vmatprep.subr.mxu0 %v1819_v42  ;;  %3459 = vmatpush3.msra.mxu1 %v1826_v54  ;;  %v1811_v5 = vld [vmem:[%s5461_s5 + $0xa0] sm:$0xff]  ;;  %v1792_v8 = vld [vmem:[%s5461_s5 + $0x8] sm:$0xff]  ;;  %v1805_v12 = vld [vmem:[%s5461_s5 + $0x70] sm:$0xff] }
 0x5c9   : > { %1852 = vmatpush1.msra.mxu0 %v1818_v46  ;;  %3460 = vmatprep.subr.mxu1 %v3712_v33  ;;  %v1808_v9 = vld [vmem:[%s5461_s5 + $0x88] sm:$0xff]  ;;  %v1791_v10 = vld [vmem:[%s5461_s5] sm:$0xff]  ;;  %v1802_v13 = vld [vmem:[%s5461_s5 + $0x58] sm:$0xff] }
 0x5ca   : > { %1853 = vmatprep.subr.mxu0 %v1816_v48  ;;  %3461 = vmatpush3.msra.mxu1 %v1823_v57  ;;  %v1790_v11 = vld [vmem:[#allocation4] sm:$0xff]  ;;  %v1796_v15 = vld [vmem:[%s5461_s5 + $0x28] sm:$0xff]  ;;  %v1793_v16 = vld [vmem:[%s5461_s5 + $0x10] sm:$0xff] }
 0x5cb   : > { %1854 = vmatpush1.msra.mxu0 %v1815_v49  ;;  %3462 = vmatprep.subr.mxu1 %v3712_v33  ;;  %v1799_v14 = vld [vmem:[%s5461_s5 + $0x40] sm:$0xff]  ;;  %v1787_v17 = vld [vmem:[#allocation2 + $0x8] sm:$0xff]  ;;  %v1788_v21 = vld [vmem:[#allocation2 + $0x38] sm:$0xff] }
 0x5cc   : > { %1855 = vmatprep.subr.mxu0 %v1813_v50  ;;  %3463 = vmatpush3.msra.mxu1 %v1820_v60  ;;  %v1789_v32 = vld [vmem:[#allocation2 + $0x28] sm:$0xff] }
 0x5cd   : > { %1856 = vmatpush1.msra.mxu0 %v1812_v52  ;;  %3464 = vmatprep.subr.mxu1 %v3712_v33 }
 0x5ce   : > { %1857 = vmatprep.subr.mxu0 %v1810_v53  ;;  %3465 = vmatpush3.msra.mxu1 %v1817_v63 }
 0x5cf   : > { %1858 = vmatpush1.msra.mxu0 %v1809_v55  ;;  %3466 = vmatprep.subr.mxu1 %v3712_v33 }
 0x5d0   : > { %1859 = vmatprep.subr.mxu0 %v1807_v56  ;;  %3467 = vmatpush3.msra.mxu1 %v1814_v2 }
 0x5d1   : > { %1860 = vmatpush1.msra.mxu0 %v1806_v58  ;;  %3468 = vmatprep.subr.mxu1 %v3712_v33 }
 0x5d2   : > { %1861 = vmatprep.subr.mxu0 %v1804_v59  ;;  %3469 = vmatpush3.msra.mxu1 %v1811_v5 }
 0x5d3   : > { %1862 = vmatpush1.msra.mxu0 %v1803_v61  ;;  %3470 = vmatprep.subr.mxu1 %v3712_v33 }
 0x5d4   : > { %1863 = vmatprep.subr.mxu0 %v1801_v62  ;;  %3471 = vmatpush3.msra.mxu1 %v1808_v9 }
 0x5d5   : > { %1864 = vmatpush1.msra.mxu0 %v1800_v0  ;;  %3472 = vmatprep.subr.mxu1 %v3712_v33 }
 0x5d6   : > { %1865 = vmatprep.subr.mxu0 %v1798_v1  ;;  %3473 = vmatpush3.msra.mxu1 %v1805_v12 }
 0x5d7   : > { %1866 = vmatpush1.msra.mxu0 %v1797_v3  ;;  %3474 = vmatprep.subr.mxu1 %v3712_v33 }
 0x5d8   : > { %1867 = vmatprep.subr.mxu0 %v1795_v4  ;;  %3475 = vmatpush3.msra.mxu1 %v1802_v13 }
 0x5d9   : > { %1868 = vmatpush1.msra.mxu0 %v1794_v7  ;;  %3476 = vmatprep.subr.mxu1 %v3712_v33 }
 0x5da   : > { %1869 = vmatprep.subr.mxu0 %v1792_v8  ;;  %3477 = vmatpush3.msra.mxu1 %v1799_v14 }
 0x5db   : > { %1870 = vmatpush1.msra.mxu0 %v1791_v10  ;;  %3478 = vmatprep.subr.mxu1 %v3712_v33 }
 0x5dc   : > { %1904 = vmatmul.mubr.f32.vlgmr.msra.gmra.mxu0 %v1790_v11  ;;  %3479 = vmatpush3.msra.mxu1 %v1796_v15 }
 0x5dd   : > { %3480 = vmatprep.subr.mxu1 %v3712_v33 }
 0x5de   : > { %3481 = vmatpush3.msra.mxu1 %v1793_v16 }
 0x5df   : > { %3483 = vmatmul.mubr.f32.vlgmr.msra.gmra.mxu1 %v1790_v11 }
 0x69c   : > { %v1905_v18 = vpop.f32.mrf.mxu0 }
 0x69d   : > { %v1980_v19 = vadd.f32 %v1905_v18, %v1787_v17 }
 0x69e   : > { %v1907_v22 = vpop.f32.mrf.mxu0 }
 0x69f   : > { %v2949_v20 = vmul.f32 -1.442695, %v1980_v19  ;;  %v1976_v23 = vpop.f32.mrf.mxu1  ;;  %v1987_v25 = vadd.f32 %v1907_v22, %v1788_v21 }
 0x6a0   : > { %v1994_v29 = vadd.f32 %v4114_v44, %v1976_v23 }
 0x6a1   : > { %3655 = vpow2.f32 %v2949_v20  ;;  %v3484_v24 = vpop.f32.mrf.mxu1  ;;  %v2950_v26 = vmul.f32 -1.442695, %v1987_v25 }
 0x6a3   : > { %3657 = vpow2.f32 %v2950_v26 }
 0x6ae   : > { %v3656_v27 = vpop.eup %3655 }
 0x6af   : > { %v1984_v28 = vadd.f32 1.0, %v3656_v27 }
 0x6b0   : > { %v3658_v30 = vpop.eup %3657 }
 0x6b1   : > { %3659 = vrcp.f32 %v1984_v28  ;;  %v1991_v34 = vadd.f32 1.0, %v3658_v30 }
 0x6be   : > { %v3660_v31 = vpop.eup %3659 }
 0x6bf   : > { %v1995_v33 = vmul.f32 %v3660_v31, %v1994_v29 }
 0x6c1   : > { %v1996_v35 = vadd.f32 %v1995_v33, %v1789_v32 }
 0x6c3   : > { %3661 = vtanh.f32 %v1996_v35 }
 0x6c4   : > { %3663 = vrcp.f32 %v1991_v34 }
 0x6d0   : > { %v3662_v36 = vpop.eup %3661 }
 0x6d1   : > { %v1998_v37 = vsub.f32 %v1790_v11, %v3662_v36  ;;  %v3664_v38 = vpop.eup %3663 }
 0x6d3   : > { %v1999_v39 = vmul.f32 %v3664_v38, %v1998_v37 }
 0x6d5   : > { %v2000_v40 = vadd.f32 %v3662_v36, %v1999_v39 }
 0x6d7   : > { %2001 = vst [vmem:[#allocation4] sm:$0xff] %v2000_v40  ;;  %2002 = vst [vmem:[%s3794_s22 + $0x10] sm:$0xff] %v2000_v40 }
 0x6d8 PF: > { %p2951_p11 = scmp.ge.s32.totalorder %s1782_s24, 7 }
 0x6da   : > { %2006 = sbr.rel (%p2951_p11) target bundleno = 2044 (0x7fc), region = 76 }
 0x6df   : > { %v2998_v41 = vld [vmem:[%s5461_s5 + $0x2f0] sm:$0xff]  ;;  %v2997_v42 = vld [vmem:[%s5461_s5 + $0x2e8] sm:$0xff]  ;;  %v2995_v43 = vld [vmem:[%s5461_s5 + $0x2d8] sm:$0xff]  ;;  %v3714_v47 = vmov 0.0   ;;  %vm3715_vm5 = vmmov 0  }
 0x6e0   : > { %2060 = vmatprep.subr.mxu0 %v2998_v41  ;;  %v2994_v46 = vld [vmem:[%s5461_s5 + $0x2d0] sm:$0xff]  ;;  %3485 = vmatprep.subr.mxu1 %v3714_v47  ;;  %v2992_v48 = vld [vmem:[%s5461_s5 + $0x2c0] sm:$0xff]  ;;  %v2991_v6 = vld [vmem:[%s5461_s5 + $0x2b8] sm:$0xff] }
 0x6e1   : > { %2061 = vmatpush1.msra.mxu0 %v2997_v42  ;;  %2124 = vmatprep.mubr.f32.mxu0 %v3714_v47  ;;  %v2989_v49 = vld [vmem:[%s5461_s5 + $0x2a8] sm:$0xff]  ;;  %v2988_v50 = vld [vmem:[%s5461_s5 + $0x2a0] sm:$0xff]  ;;  %v2986_v51 = vld [vmem:[%s5461_s5 + $0x290] sm:$0xff] }
 0x6e2   : > { %2062 = vmatprep.subr.mxu0 %v2995_v43  ;;  %3517 = vmatprep.mubr.msk.f32.mxu1 %vm3715_vm5, %v3714_v47  ;;  %v2985_v52 = vld [vmem:[%s5461_s5 + $0x288] sm:$0xff]  ;;  %v2983_v53 = vld [vmem:[%s5461_s5 + $0x278] sm:$0xff]  ;;  %v2982_v54 = vld [vmem:[%s5461_s5 + $0x270] sm:$0xff] }
 0x6e3   : > { %2063 = vmatpush1.msra.mxu0 %v2994_v46  ;;  %v2980_v55 = vld [vmem:[%s5461_s5 + $0x260] sm:$0xff]  ;;  %v2999_v56 = vld [vmem:[%s5461_s5 + $0x2f8] sm:$0xff]  ;;  %v2977_v59 = vld [vmem:[%s5461_s5 + $0x248] sm:$0xff] }
 0x6e4   : > { %2064 = vmatprep.subr.mxu0 %v2992_v48  ;;  %v2979_v57 = vld [vmem:[%s5461_s5 + $0x258] sm:$0xff]  ;;  %3486 = vmatpush3.msra.mxu1 %v2999_v56  ;;  %v2996_v58 = vld [vmem:[%s5461_s5 + $0x2e0] sm:$0xff]  ;;  %v2993_v60 = vld [vmem:[%s5461_s5 + $0x2c8] sm:$0xff] }
 0x6e5   : > { %2065 = vmatpush1.msra.mxu0 %v2991_v6  ;;  %3487 = vmatprep.subr.mxu1 %v3714_v47  ;;  %v2976_v61 = vld [vmem:[%s5461_s5 + $0x240] sm:$0xff]  ;;  %v2974_v62 = vld [vmem:[%s5461_s5 + $0x230] sm:$0xff]  ;;  %v2973_v0 = vld [vmem:[%s5461_s5 + $0x228] sm:$0xff] }
 0x6e6   : > { %2066 = vmatprep.subr.mxu0 %v2989_v49  ;;  %3488 = vmatpush3.msra.mxu1 %v2996_v58  ;;  %v2990_v63 = vld [vmem:[%s5461_s5 + $0x2b0] sm:$0xff]  ;;  %v2971_v1 = vld [vmem:[%s5461_s5 + $0x218] sm:$0xff]  ;;  %v2968_v4 = vld [vmem:[%s5461_s5 + $0x200] sm:$0xff] }
 0x6e7   : > { %2067 = vmatpush1.msra.mxu0 %v2988_v50  ;;  %3489 = vmatprep.subr.mxu1 %v3714_v47  ;;  %v2987_v2 = vld [vmem:[%s5461_s5 + $0x298] sm:$0xff]  ;;  %v2970_v3 = vld [vmem:[%s5461_s5 + $0x210] sm:$0xff]  ;;  %v2984_v5 = vld [vmem:[%s5461_s5 + $0x280] sm:$0xff] }
 0x6e8   : > { %2068 = vmatprep.subr.mxu0 %v2986_v51  ;;  %3490 = vmatpush3.msra.mxu1 %v2993_v60  ;;  %v2967_v7 = vld [vmem:[%s5461_s5 + $0x1f8] sm:$0xff]  ;;  %v2965_v8 = vld [vmem:[%s5461_s5 + $0x1e8] sm:$0xff]  ;;  %v2964_v10 = vld [vmem:[%s5461_s5 + $0x1e0] sm:$0xff] }
 0x6e9   : > { %2069 = vmatpush1.msra.mxu0 %v2985_v52  ;;  %3491 = vmatprep.subr.mxu1 %v3714_v47  ;;  %v2981_v9 = vld [vmem:[%s5461_s5 + $0x268] sm:$0xff]  ;;  %v2962_v11 = vld [vmem:[%s5461_s5 + $0x1d0] sm:$0xff]  ;;  %v2959_v14 = vld [vmem:[%s5461_s5 + $0x1b8] sm:$0xff] }
 0x6ea   : > { %2070 = vmatprep.subr.mxu0 %v2983_v53  ;;  %3492 = vmatpush3.msra.mxu1 %v2990_v63  ;;  %v2978_v12 = vld [vmem:[%s5461_s5 + $0x250] sm:$0xff]  ;;  %v2961_v13 = vld [vmem:[%s5461_s5 + $0x1c8] sm:$0xff]  ;;  %v2975_v15 = vld [vmem:[%s5461_s5 + $0x238] sm:$0xff] }
 0x6eb   : > { %2071 = vmatpush1.msra.mxu0 %v2982_v54  ;;  %3493 = vmatprep.subr.mxu1 %v3714_v47  ;;  %v2958_v16 = vld [vmem:[%s5461_s5 + $0x1b0] sm:$0xff]  ;;  %v2956_v17 = vld [vmem:[%s5461_s5 + $0x1a0] sm:$0xff]  ;;  %v2955_v19 = vld [vmem:[%s5461_s5 + $0x198] sm:$0xff] }
 0x6ec   : > { %2072 = vmatprep.subr.mxu0 %v2980_v55  ;;  %3494 = vmatpush3.msra.mxu1 %v2987_v2  ;;  %v2972_v18 = vld [vmem:[%s5461_s5 + $0x220] sm:$0xff]  ;;  %v2953_v20 = vld [vmem:[%s5461_s5 + $0x188] sm:$0xff]  ;;  %v2966_v24 = vld [vmem:[%s5461_s5 + $0x1f0] sm:$0xff] }
 0x6ed   : > { %2073 = vmatpush1.msra.mxu0 %v2979_v57  ;;  %3495 = vmatprep.subr.mxu1 %v3714_v47  ;;  %v2969_v21 = vld [vmem:[%s5461_s5 + $0x208] sm:$0xff]  ;;  %v2952_v22 = vld [vmem:[%s5461_s5 + $0x180] sm:$0xff]  ;;  %v2963_v25 = vld [vmem:[%s5461_s5 + $0x1d8] sm:$0xff] }
 0x6ee   : > { %2074 = vmatprep.subr.mxu0 %v2977_v59  ;;  %3496 = vmatpush3.msra.mxu1 %v2984_v5  ;;  %v2010_v23 = vld [vmem:[#allocation5] sm:$0xff]  ;;  %v2960_v26 = vld [vmem:[%s5461_s5 + $0x1c0] sm:$0xff]  ;;  %v2954_v28 = vld [vmem:[%s5461_s5 + $0x190] sm:$0xff] }
 0x6ef   : > { %2075 = vmatpush1.msra.mxu0 %v2976_v61  ;;  %3497 = vmatprep.subr.mxu1 %v3714_v47  ;;  %v2957_v27 = vld [vmem:[%s5461_s5 + $0x1a8] sm:$0xff]  ;;  %v2007_v29 = vld [vmem:[#allocation3 + $0x30] sm:$0xff]  ;;  %v2009_v46 = vld [vmem:[#allocation3 + $0x20] sm:$0xff] }
 0x6f0   : > { %2076 = vmatprep.subr.mxu0 %v2974_v62  ;;  %3498 = vmatpush3.msra.mxu1 %v2981_v9  ;;  %v2008_v33 = vld [vmem:[#allocation3 + $0x8] sm:$0xff] }
 0x6f1   : > { %2077 = vmatpush1.msra.mxu0 %v2973_v0  ;;  %3499 = vmatprep.subr.mxu1 %v3714_v47 }
 0x6f2   : > { %2078 = vmatprep.subr.mxu0 %v2971_v1  ;;  %3500 = vmatpush3.msra.mxu1 %v2978_v12 }
 0x6f3   : > { %2079 = vmatpush1.msra.mxu0 %v2970_v3  ;;  %3501 = vmatprep.subr.mxu1 %v3714_v47 }
 0x6f4   : > { %2080 = vmatprep.subr.mxu0 %v2968_v4  ;;  %3502 = vmatpush3.msra.mxu1 %v2975_v15 }
 0x6f5   : > { %2081 = vmatpush1.msra.mxu0 %v2967_v7  ;;  %3503 = vmatprep.subr.mxu1 %v3714_v47 }
 0x6f6   : > { %2082 = vmatprep.subr.mxu0 %v2965_v8  ;;  %3504 = vmatpush3.msra.mxu1 %v2972_v18 }
 0x6f7   : > { %2083 = vmatpush1.msra.mxu0 %v2964_v10  ;;  %3505 = vmatprep.subr.mxu1 %v3714_v47 }
 0x6f8   : > { %2084 = vmatprep.subr.mxu0 %v2962_v11  ;;  %3506 = vmatpush3.msra.mxu1 %v2969_v21 }
 0x6f9   : > { %2085 = vmatpush1.msra.mxu0 %v2961_v13  ;;  %3507 = vmatprep.subr.mxu1 %v3714_v47 }
 0x6fa   : > { %2086 = vmatprep.subr.mxu0 %v2959_v14  ;;  %3508 = vmatpush3.msra.mxu1 %v2966_v24 }
 0x6fb   : > { %2087 = vmatpush1.msra.mxu0 %v2958_v16  ;;  %3509 = vmatprep.subr.mxu1 %v3714_v47 }
 0x6fc   : > { %2088 = vmatprep.subr.mxu0 %v2956_v17  ;;  %3510 = vmatpush3.msra.mxu1 %v2963_v25 }
 0x6fd   : > { %2089 = vmatpush1.msra.mxu0 %v2955_v19  ;;  %3511 = vmatprep.subr.mxu1 %v3714_v47 }
 0x6fe   : > { %2090 = vmatprep.subr.mxu0 %v2953_v20  ;;  %3512 = vmatpush3.msra.mxu1 %v2960_v26 }
 0x6ff   : > { %2091 = vmatpush1.msra.mxu0 %v2952_v22  ;;  %3513 = vmatprep.subr.mxu1 %v3714_v47 }
 0x700   : > { %2125 = vmatmul.mubr.f32.vlgmr.msra.gmra.mxu0 %v2010_v23  ;;  %3514 = vmatpush3.msra.mxu1 %v2957_v27 }
 0x701   : > { %3515 = vmatprep.subr.mxu1 %v3714_v47 }
 0x702   : > { %3516 = vmatpush3.msra.mxu1 %v2954_v28 }
 0x703   : > { %3518 = vmatmul.mubr.f32.vlgmr.msra.gmra.mxu1 %v2010_v23 }
 0x7c0   : > { %v2126_v30 = vpop.f32.mrf.mxu0 }
 0x7c1   : > { %v2201_v31 = vadd.f32 %v2126_v30, %v2007_v29 }
 0x7c2   : > { %v2128_v34 = vpop.f32.mrf.mxu0 }
 0x7c3   : > { %v3000_v32 = vmul.f32 -1.442695, %v2201_v31  ;;  %v2197_v35 = vpop.f32.mrf.mxu1  ;;  %v2208_v37 = vadd.f32 %v2128_v34, %v2008_v33 }
 0x7c4   : > { %v2215_v41 = vadd.f32 %v4119_v45, %v2197_v35 }
 0x7c5   : > { %3665 = vpow2.f32 %v3000_v32  ;;  %v3519_v36 = vpop.f32.mrf.mxu1  ;;  %v3001_v38 = vmul.f32 -1.442695, %v2208_v37 }
 0x7c7   : > { %3667 = vpow2.f32 %v3001_v38 }
 0x7d2   : > { %v3666_v39 = vpop.eup %3665 }
 0x7d3   : > { %v2205_v40 = vadd.f32 1.0, %v3666_v39 }
 0x7d4   : > { %v3668_v42 = vpop.eup %3667 }
 0x7d5   : > { %3669 = vrcp.f32 %v2205_v40  ;;  %v2212_v48 = vadd.f32 1.0, %v3668_v42 }
 0x7e2   : > { %v3670_v43 = vpop.eup %3669 }
 0x7e3   : > { %v2216_v47 = vmul.f32 %v3670_v43, %v2215_v41 }
 0x7e5   : > { %v2217_v6 = vadd.f32 %v2216_v47, %v2009_v46 }
 0x7e7   : > { %3671 = vtanh.f32 %v2217_v6 }
 0x7e8   : > { %3673 = vrcp.f32 %v2212_v48 }
 0x7f4   : > { %v3672_v49 = vpop.eup %3671 }
 0x7f5   : > { %v2219_v50 = vsub.f32 %v2010_v23, %v3672_v49  ;;  %v3674_v51 = vpop.eup %3673 }
 0x7f7   : > { %v2220_v52 = vmul.f32 %v3674_v51, %v2219_v50 }
 0x7f9   : > { %v2221_v53 = vadd.f32 %v3672_v49, %v2220_v52 }
 0x7fb   : > { %2222 = vst [vmem:[#allocation5] sm:$0xff] %v2221_v53  ;;  %2223 = vst [vmem:[%s3799_s25 + $0x8] sm:$0xff] %v2221_v53 }
 0x7fc PF: > { %s2224_s17 = sadd.s32 3, %s3773_s29 }
 0x7fd   : > { %p3002_p12 = scmp.ge.s32.totalorder %s2224_s17, 7 }
 0x7ff   : > { %2228 = sbr.rel (%p3002_p12) target bundleno = 2337 (0x921), region = 80 }
 0x804   : > { %v2279_v54 = vld [vmem:[%s5461_s5 + $0x170] sm:$0xff]  ;;  %v2278_v55 = vld [vmem:[%s5461_s5 + $0x168] sm:$0xff]  ;;  %v2276_v56 = vld [vmem:[%s5461_s5 + $0x158] sm:$0xff]  ;;  %v3716_v58 = vmov 0.0   ;;  %vm3717_vm6 = vmmov 0  }
 0x805   : > { %2281 = vmatprep.subr.mxu0 %v2279_v54  ;;  %v2275_v57 = vld [vmem:[%s5461_s5 + $0x150] sm:$0xff]  ;;  %3520 = vmatprep.subr.mxu1 %v3716_v58  ;;  %v2273_v59 = vld [vmem:[%s5461_s5 + $0x140] sm:$0xff]  ;;  %v2272_v60 = vld [vmem:[%s5461_s5 + $0x138] sm:$0xff] }
 0x806   : > { %2282 = vmatpush1.msra.mxu0 %v2278_v55  ;;  %2345 = vmatprep.mubr.f32.mxu0 %v3716_v58  ;;  %v2270_v61 = vld [vmem:[%s5461_s5 + $0x128] sm:$0xff]  ;;  %v2269_v62 = vld [vmem:[%s5461_s5 + $0x120] sm:$0xff]  ;;  %v2267_v63 = vld [vmem:[%s5461_s5 + $0x110] sm:$0xff] }
 0x807   : > { %2283 = vmatprep.subr.mxu0 %v2276_v56  ;;  %3552 = vmatprep.mubr.msk.f32.mxu1 %vm3717_vm6, %v3716_v58  ;;  %v2266_v0 = vld [vmem:[%s5461_s5 + $0x108] sm:$0xff]  ;;  %v2264_v1 = vld [vmem:[%s5461_s5 + $0xf8] sm:$0xff]  ;;  %v2263_v2 = vld [vmem:[%s5461_s5 + $0xf0] sm:$0xff] }
 0x808   : > { %2284 = vmatpush1.msra.mxu0 %v2275_v57  ;;  %v2261_v3 = vld [vmem:[%s5461_s5 + $0xe0] sm:$0xff]  ;;  %v2280_v4 = vld [vmem:[%s5461_s5 + $0x178] sm:$0xff]  ;;  %v2258_v8 = vld [vmem:[%s5461_s5 + $0xc8] sm:$0xff] }
 0x809   : > { %2285 = vmatprep.subr.mxu0 %v2273_v59  ;;  %v2260_v5 = vld [vmem:[%s5461_s5 + $0xd8] sm:$0xff]  ;;  %3521 = vmatpush3.msra.mxu1 %v2280_v4  ;;  %v2277_v7 = vld [vmem:[%s5461_s5 + $0x160] sm:$0xff]  ;;  %v2274_v9 = vld [vmem:[%s5461_s5 + $0x148] sm:$0xff] }
 0x80a   : > { %2286 = vmatpush1.msra.mxu0 %v2272_v60  ;;  %3522 = vmatprep.subr.mxu1 %v3716_v58  ;;  %v2257_v10 = vld [vmem:[%s5461_s5 + $0xc0] sm:$0xff]  ;;  %v2255_v11 = vld [vmem:[%s5461_s5 + $0xb0] sm:$0xff]  ;;  %v2254_v13 = vld [vmem:[%s5461_s5 + $0xa8] sm:$0xff] }
 0x80b   : > { %2287 = vmatprep.subr.mxu0 %v2270_v61  ;;  %3523 = vmatpush3.msra.mxu1 %v2277_v7  ;;  %v2271_v12 = vld [vmem:[%s5461_s5 + $0x130] sm:$0xff]  ;;  %v2252_v14 = vld [vmem:[%s5461_s5 + $0x98] sm:$0xff]  ;;  %v2249_v17 = vld [vmem:[%s5461_s5 + $0x80] sm:$0xff] }
 0x80c   : > { %2288 = vmatpush1.msra.mxu0 %v2269_v62  ;;  %3524 = vmatprep.subr.mxu1 %v3716_v58  ;;  %v2268_v15 = vld [vmem:[%s5461_s5 + $0x118] sm:$0xff]  ;;  %v2251_v16 = vld [vmem:[%s5461_s5 + $0x90] sm:$0xff]  ;;  %v2265_v18 = vld [vmem:[%s5461_s5 + $0x100] sm:$0xff] }
 0x80d   : > { %2289 = vmatprep.subr.mxu0 %v2267_v63  ;;  %3525 = vmatpush3.msra.mxu1 %v2274_v9  ;;  %v2248_v19 = vld [vmem:[%s5461_s5 + $0x78] sm:$0xff]  ;;  %v2246_v20 = vld [vmem:[%s5461_s5 + $0x68] sm:$0xff]  ;;  %v2245_v22 = vld [vmem:[%s5461_s5 + $0x60] sm:$0xff] }
 0x80e   : > { %2290 = vmatpush1.msra.mxu0 %v2266_v0  ;;  %3526 = vmatprep.subr.mxu1 %v3716_v58  ;;  %v2262_v21 = vld [vmem:[%s5461_s5 + $0xe8] sm:$0xff]  ;;  %v2243_v23 = vld [vmem:[%s5461_s5 + $0x50] sm:$0xff]  ;;  %v2240_v26 = vld [vmem:[%s5461_s5 + $0x38] sm:$0xff] }
 0x80f   : > { %2291 = vmatprep.subr.mxu0 %v2264_v1  ;;  %3527 = vmatpush3.msra.mxu1 %v2271_v12  ;;  %v2259_v24 = vld [vmem:[%s5461_s5 + $0xd0] sm:$0xff]  ;;  %v2242_v25 = vld [vmem:[%s5461_s5 + $0x48] sm:$0xff]  ;;  %v2256_v27 = vld [vmem:[%s5461_s5 + $0xb8] sm:$0xff] }
 0x810   : > { %2292 = vmatpush1.msra.mxu0 %v2263_v2  ;;  %3528 = vmatprep.subr.mxu1 %v3716_v58  ;;  %v2239_v28 = vld [vmem:[%s5461_s5 + $0x30] sm:$0xff]  ;;  %v2237_v29 = vld [vmem:[%s5461_s5 + $0x20] sm:$0xff]  ;;  %v2236_v31 = vld [vmem:[%s5461_s5 + $0x18] sm:$0xff] }
 0x811   : > { %2293 = vmatprep.subr.mxu0 %v2261_v3  ;;  %3529 = vmatpush3.msra.mxu1 %v2268_v15  ;;  %v2253_v30 = vld [vmem:[%s5461_s5 + $0xa0] sm:$0xff]  ;;  %v2234_v32 = vld [vmem:[%s5461_s5 + $0x8] sm:$0xff]  ;;  %v2247_v36 = vld [vmem:[%s5461_s5 + $0x70] sm:$0xff] }
 0x812   : > { %2294 = vmatpush1.msra.mxu0 %v2260_v5  ;;  %3530 = vmatprep.subr.mxu1 %v3716_v58  ;;  %v2250_v33 = vld [vmem:[%s5461_s5 + $0x88] sm:$0xff]  ;;  %v2233_v34 = vld [vmem:[%s5461_s5] sm:$0xff]  ;;  %v2244_v37 = vld [vmem:[%s5461_s5 + $0x58] sm:$0xff] }
 0x813   : > { %2295 = vmatprep.subr.mxu0 %v2258_v8  ;;  %3531 = vmatpush3.msra.mxu1 %v2265_v18  ;;  %v2232_v35 = vld [vmem:[#allocation4] sm:$0xff]  ;;  %v2238_v39 = vld [vmem:[%s5461_s5 + $0x28] sm:$0xff]  ;;  %v2235_v40 = vld [vmem:[%s5461_s5 + $0x10] sm:$0xff] }
 0x814   : > { %2296 = vmatpush1.msra.mxu0 %v2257_v10  ;;  %3532 = vmatprep.subr.mxu1 %v3716_v58  ;;  %v2241_v38 = vld [vmem:[%s5461_s5 + $0x40] sm:$0xff]  ;;  %v2229_v41 = vld [vmem:[#allocation2 + $0x48] sm:$0xff]  ;;  %v2230_v47 = vld [vmem:[#allocation2 + $0x10] sm:$0xff] }
 0x815   : > { %2297 = vmatprep.subr.mxu0 %v2255_v11  ;;  %3533 = vmatpush3.msra.mxu1 %v2262_v21  ;;  %v2231_v57 = vld [vmem:[#allocation2 + $0x40] sm:$0xff] }
 0x816   : > { %2298 = vmatpush1.msra.mxu0 %v2254_v13  ;;  %3534 = vmatprep.subr.mxu1 %v3716_v58 }
 0x817   : > { %2299 = vmatprep.subr.mxu0 %v2252_v14  ;;  %3535 = vmatpush3.msra.mxu1 %v2259_v24 }
 0x818   : > { %2300 = vmatpush1.msra.mxu0 %v2251_v16  ;;  %3536 = vmatprep.subr.mxu1 %v3716_v58 }
 0x819   : > { %2301 = vmatprep.subr.mxu0 %v2249_v17  ;;  %3537 = vmatpush3.msra.mxu1 %v2256_v27 }
 0x81a   : > { %2302 = vmatpush1.msra.mxu0 %v2248_v19  ;;  %3538 = vmatprep.subr.mxu1 %v3716_v58 }
 0x81b   : > { %2303 = vmatprep.subr.mxu0 %v2246_v20  ;;  %3539 = vmatpush3.msra.mxu1 %v2253_v30 }
 0x81c   : > { %2304 = vmatpush1.msra.mxu0 %v2245_v22  ;;  %3540 = vmatprep.subr.mxu1 %v3716_v58 }
 0x81d   : > { %2305 = vmatprep.subr.mxu0 %v2243_v23  ;;  %3541 = vmatpush3.msra.mxu1 %v2250_v33 }
 0x81e   : > { %2306 = vmatpush1.msra.mxu0 %v2242_v25  ;;  %3542 = vmatprep.subr.mxu1 %v3716_v58 }
 0x81f   : > { %2307 = vmatprep.subr.mxu0 %v2240_v26  ;;  %3543 = vmatpush3.msra.mxu1 %v2247_v36 }
 0x820   : > { %2308 = vmatpush1.msra.mxu0 %v2239_v28  ;;  %3544 = vmatprep.subr.mxu1 %v3716_v58 }
 0x821   : > { %2309 = vmatprep.subr.mxu0 %v2237_v29  ;;  %3545 = vmatpush3.msra.mxu1 %v2244_v37 }
 0x822   : > { %2310 = vmatpush1.msra.mxu0 %v2236_v31  ;;  %3546 = vmatprep.subr.mxu1 %v3716_v58 }
 0x823   : > { %2311 = vmatprep.subr.mxu0 %v2234_v32  ;;  %3547 = vmatpush3.msra.mxu1 %v2241_v38 }
 0x824   : > { %2312 = vmatpush1.msra.mxu0 %v2233_v34  ;;  %3548 = vmatprep.subr.mxu1 %v3716_v58 }
 0x825   : > { %2346 = vmatmul.mubr.f32.vlgmr.msra.gmra.mxu0 %v2232_v35  ;;  %3549 = vmatpush3.msra.mxu1 %v2238_v39 }
 0x826   : > { %3550 = vmatprep.subr.mxu1 %v3716_v58 }
 0x827   : > { %3551 = vmatpush3.msra.mxu1 %v2235_v40 }
 0x828   : > { %3553 = vmatmul.mubr.f32.vlgmr.msra.gmra.mxu1 %v2232_v35 }
 0x8e5   : > { %v2347_v42 = vpop.f32.mrf.mxu0 }
 0x8e6   : > { %v2422_v43 = vadd.f32 %v2347_v42, %v2229_v41 }
 0x8e7   : > { %v2349_v48 = vpop.f32.mrf.mxu0 }
 0x8e8   : > { %v3003_v46 = vmul.f32 -1.442695, %v2422_v43  ;;  %v2418_v6 = vpop.f32.mrf.mxu1  ;;  %v2429_v50 = vadd.f32 %v2349_v48, %v2230_v47 }
 0x8e9   : > { %v2436_v54 = vadd.f32 %v4114_v44, %v2418_v6 }
 0x8ea   : > { %3675 = vpow2.f32 %v3003_v46  ;;  %v3554_v49 = vpop.f32.mrf.mxu1  ;;  %v3004_v51 = vmul.f32 -1.442695, %v2429_v50 }
 0x8ec   : > { %3677 = vpow2.f32 %v3004_v51 }
 0x8f7   : > { %v3676_v52 = vpop.eup %3675 }
 0x8f8   : > { %v2426_v53 = vadd.f32 1.0, %v3676_v52 }
 0x8f9   : > { %v3678_v55 = vpop.eup %3677 }
 0x8fa   : > { %3679 = vrcp.f32 %v2426_v53  ;;  %v2433_v59 = vadd.f32 1.0, %v3678_v55 }
 0x907   : > { %v3680_v56 = vpop.eup %3679 }
 0x908   : > { %v2437_v58 = vmul.f32 %v3680_v56, %v2436_v54 }
 0x90a   : > { %v2438_v60 = vadd.f32 %v2437_v58, %v2231_v57 }
 0x90c   : > { %3681 = vtanh.f32 %v2438_v60 }
 0x90d   : > { %3683 = vrcp.f32 %v2433_v59 }
 0x919   : > { %v3682_v61 = vpop.eup %3681 }
 0x91a   : > { %v2440_v62 = vsub.f32 %v2232_v35, %v3682_v61  ;;  %v3684_v63 = vpop.eup %3683 }
 0x91c   : > { %v2441_v0 = vmul.f32 %v3684_v63, %v2440_v62 }
 0x91e   : > { %v2442_v1 = vadd.f32 %v3682_v61, %v2441_v0 }
 0x920   : > { %2443 = vst [vmem:[#allocation4] sm:$0xff] %v2442_v1  ;;  %2444 = vst [vmem:[%s3794_s22 + $0x18] sm:$0xff] %v2442_v1 }
 0x921 PF: > { %p3005_p13 = scmp.ge.s32.totalorder %s3776_s9, 7 }
 0x923   : > { %2448 = sbr.rel (%p3005_p13) target bundleno = 2629 (0xa45), region = 84 }
 0x928   : > { %v3052_v44 = vld [vmem:[%s5461_s5 + $0x2f0] sm:$0xff]  ;;  %v3051_v2 = vld [vmem:[%s5461_s5 + $0x2e8] sm:$0xff]  ;;  %v3049_v3 = vld [vmem:[%s5461_s5 + $0x2d8] sm:$0xff]  ;;  %v3718_v5 = vmov 0.0   ;;  %vm3719_vm7 = vmmov 0  }
 0x929   : > { %2502 = vmatprep.subr.mxu0 %v3052_v44  ;;  %v3048_v4 = vld [vmem:[%s5461_s5 + $0x2d0] sm:$0xff]  ;;  %3555 = vmatprep.subr.mxu1 %v3718_v5  ;;  %v3046_v7 = vld [vmem:[%s5461_s5 + $0x2c0] sm:$0xff]  ;;  %v3045_v8 = vld [vmem:[%s5461_s5 + $0x2b8] sm:$0xff] }
 0x92a   : > { %2503 = vmatpush1.msra.mxu0 %v3051_v2  ;;  %2566 = vmatprep.mubr.f32.mxu0 %v3718_v5  ;;  %v3043_v9 = vld [vmem:[%s5461_s5 + $0x2a8] sm:$0xff]  ;;  %v3042_v10 = vld [vmem:[%s5461_s5 + $0x2a0] sm:$0xff]  ;;  %v3040_v11 = vld [vmem:[%s5461_s5 + $0x290] sm:$0xff] }
 0x92b   : > { %2504 = vmatprep.subr.mxu0 %v3049_v3  ;;  %3587 = vmatprep.mubr.msk.f32.mxu1 %vm3719_vm7, %v3718_v5  ;;  %v3039_v12 = vld [vmem:[%s5461_s5 + $0x288] sm:$0xff]  ;;  %v3037_v13 = vld [vmem:[%s5461_s5 + $0x278] sm:$0xff]  ;;  %v3036_v14 = vld [vmem:[%s5461_s5 + $0x270] sm:$0xff] }
 0x92c   : > { %2505 = vmatpush1.msra.mxu0 %v3048_v4  ;;  %v3034_v15 = vld [vmem:[%s5461_s5 + $0x260] sm:$0xff]  ;;  %v3053_v16 = vld [vmem:[%s5461_s5 + $0x2f8] sm:$0xff]  ;;  %v3031_v19 = vld [vmem:[%s5461_s5 + $0x248] sm:$0xff] }
 0x92d   : > { %2506 = vmatprep.subr.mxu0 %v3046_v7  ;;  %v3033_v17 = vld [vmem:[%s5461_s5 + $0x258] sm:$0xff]  ;;  %3556 = vmatpush3.msra.mxu1 %v3053_v16  ;;  %v3050_v18 = vld [vmem:[%s5461_s5 + $0x2e0] sm:$0xff]  ;;  %v3047_v20 = vld [vmem:[%s5461_s5 + $0x2c8] sm:$0xff] }
 0x92e   : > { %2507 = vmatpush1.msra.mxu0 %v3045_v8  ;;  %3557 = vmatprep.subr.mxu1 %v3718_v5  ;;  %v3030_v21 = vld [vmem:[%s5461_s5 + $0x240] sm:$0xff]  ;;  %v3028_v22 = vld [vmem:[%s5461_s5 + $0x230] sm:$0xff]  ;;  %v3027_v24 = vld [vmem:[%s5461_s5 + $0x228] sm:$0xff] }
 0x92f   : > { %2508 = vmatprep.subr.mxu0 %v3043_v9  ;;  %3558 = vmatpush3.msra.mxu1 %v3050_v18  ;;  %v3044_v23 = vld [vmem:[%s5461_s5 + $0x2b0] sm:$0xff]  ;;  %v3025_v25 = vld [vmem:[%s5461_s5 + $0x218] sm:$0xff]  ;;  %v3022_v28 = vld [vmem:[%s5461_s5 + $0x200] sm:$0xff] }
 0x930   : > { %2509 = vmatpush1.msra.mxu0 %v3042_v10  ;;  %3559 = vmatprep.subr.mxu1 %v3718_v5  ;;  %v3041_v26 = vld [vmem:[%s5461_s5 + $0x298] sm:$0xff]  ;;  %v3024_v27 = vld [vmem:[%s5461_s5 + $0x210] sm:$0xff]  ;;  %v3038_v29 = vld [vmem:[%s5461_s5 + $0x280] sm:$0xff] }
 0x931   : > { %2510 = vmatprep.subr.mxu0 %v3040_v11  ;;  %3560 = vmatpush3.msra.mxu1 %v3047_v20  ;;  %v3021_v30 = vld [vmem:[%s5461_s5 + $0x1f8] sm:$0xff]  ;;  %v3019_v31 = vld [vmem:[%s5461_s5 + $0x1e8] sm:$0xff]  ;;  %v3018_v33 = vld [vmem:[%s5461_s5 + $0x1e0] sm:$0xff] }
 0x932   : > { %2511 = vmatpush1.msra.mxu0 %v3039_v12  ;;  %3561 = vmatprep.subr.mxu1 %v3718_v5  ;;  %v3035_v32 = vld [vmem:[%s5461_s5 + $0x268] sm:$0xff]  ;;  %v3016_v34 = vld [vmem:[%s5461_s5 + $0x1d0] sm:$0xff]  ;;  %v3013_v37 = vld [vmem:[%s5461_s5 + $0x1b8] sm:$0xff] }
 0x933   : > { %2512 = vmatprep.subr.mxu0 %v3037_v13  ;;  %3562 = vmatpush3.msra.mxu1 %v3044_v23  ;;  %v3032_v35 = vld [vmem:[%s5461_s5 + $0x250] sm:$0xff]  ;;  %v3015_v36 = vld [vmem:[%s5461_s5 + $0x1c8] sm:$0xff]  ;;  %v3029_v38 = vld [vmem:[%s5461_s5 + $0x238] sm:$0xff] }
 0x934   : > { %2513 = vmatpush1.msra.mxu0 %v3036_v14  ;;  %3563 = vmatprep.subr.mxu1 %v3718_v5  ;;  %v3012_v39 = vld [vmem:[%s5461_s5 + $0x1b0] sm:$0xff]  ;;  %v3010_v40 = vld [vmem:[%s5461_s5 + $0x1a0] sm:$0xff]  ;;  %v3009_v42 = vld [vmem:[%s5461_s5 + $0x198] sm:$0xff] }
 0x935   : > { %2514 = vmatprep.subr.mxu0 %v3034_v15  ;;  %3564 = vmatpush3.msra.mxu1 %v3041_v26  ;;  %v3026_v41 = vld [vmem:[%s5461_s5 + $0x220] sm:$0xff]  ;;  %v3007_v43 = vld [vmem:[%s5461_s5 + $0x188] sm:$0xff]  ;;  %v3020_v6 = vld [vmem:[%s5461_s5 + $0x1f0] sm:$0xff] }
 0x936   : > { %2515 = vmatpush1.msra.mxu0 %v3033_v17  ;;  %3565 = vmatprep.subr.mxu1 %v3718_v5  ;;  %v3023_v46 = vld [vmem:[%s5461_s5 + $0x208] sm:$0xff]  ;;  %v3006_v47 = vld [vmem:[%s5461_s5 + $0x180] sm:$0xff]  ;;  %v3017_v49 = vld [vmem:[%s5461_s5 + $0x1d8] sm:$0xff] }
 0x937   : > { %2516 = vmatprep.subr.mxu0 %v3031_v19  ;;  %3566 = vmatpush3.msra.mxu1 %v3038_v29  ;;  %v2452_v48 = vld [vmem:[#allocation5] sm:$0xff]  ;;  %v3014_v50 = vld [vmem:[%s5461_s5 + $0x1c0] sm:$0xff]  ;;  %v3008_v52 = vld [vmem:[%s5461_s5 + $0x190] sm:$0xff] }
 0x938   : > { %2517 = vmatpush1.msra.mxu0 %v3030_v21  ;;  %3567 = vmatprep.subr.mxu1 %v3718_v5  ;;  %v3011_v51 = vld [vmem:[%s5461_s5 + $0x1a8] sm:$0xff]  ;;  %v2450_v57 = vld [vmem:[#allocation3] sm:$0xff]  ;;  %v2451_v3 = vld [vmem:[#allocation3 + $0x50] sm:$0xff] }
 0x939   : > { %2518 = vmatprep.subr.mxu0 %v3028_v22  ;;  %3568 = vmatpush3.msra.mxu1 %v3035_v32  ;;  %v2449_v53 = vld [vmem:[#allocation3 + $0x48] sm:$0xff] }
 0x93a   : > { %2519 = vmatpush1.msra.mxu0 %v3027_v24  ;;  %3569 = vmatprep.subr.mxu1 %v3718_v5 }
 0x93b   : > { %2520 = vmatprep.subr.mxu0 %v3025_v25  ;;  %3570 = vmatpush3.msra.mxu1 %v3032_v35 }
 0x93c   : > { %2521 = vmatpush1.msra.mxu0 %v3024_v27  ;;  %3571 = vmatprep.subr.mxu1 %v3718_v5 }
 0x93d   : > { %2522 = vmatprep.subr.mxu0 %v3022_v28  ;;  %3572 = vmatpush3.msra.mxu1 %v3029_v38 }
 0x93e   : > { %2523 = vmatpush1.msra.mxu0 %v3021_v30  ;;  %3573 = vmatprep.subr.mxu1 %v3718_v5 }
 0x93f   : > { %2524 = vmatprep.subr.mxu0 %v3019_v31  ;;  %3574 = vmatpush3.msra.mxu1 %v3026_v41 }
 0x940   : > { %2525 = vmatpush1.msra.mxu0 %v3018_v33  ;;  %3575 = vmatprep.subr.mxu1 %v3718_v5 }
 0x941   : > { %2526 = vmatprep.subr.mxu0 %v3016_v34  ;;  %3576 = vmatpush3.msra.mxu1 %v3023_v46 }
 0x942   : > { %2527 = vmatpush1.msra.mxu0 %v3015_v36  ;;  %3577 = vmatprep.subr.mxu1 %v3718_v5 }
 0x943   : > { %2528 = vmatprep.subr.mxu0 %v3013_v37  ;;  %3578 = vmatpush3.msra.mxu1 %v3020_v6 }
 0x944   : > { %2529 = vmatpush1.msra.mxu0 %v3012_v39  ;;  %3579 = vmatprep.subr.mxu1 %v3718_v5 }
 0x945   : > { %2530 = vmatprep.subr.mxu0 %v3010_v40  ;;  %3580 = vmatpush3.msra.mxu1 %v3017_v49 }
 0x946   : > { %2531 = vmatpush1.msra.mxu0 %v3009_v42  ;;  %3581 = vmatprep.subr.mxu1 %v3718_v5 }
 0x947   : > { %2532 = vmatprep.subr.mxu0 %v3007_v43  ;;  %3582 = vmatpush3.msra.mxu1 %v3014_v50 }
 0x948   : > { %2533 = vmatpush1.msra.mxu0 %v3006_v47  ;;  %3583 = vmatprep.subr.mxu1 %v3718_v5 }
 0x949   : > { %2567 = vmatmul.mubr.f32.vlgmr.msra.gmra.mxu0 %v2452_v48  ;;  %3584 = vmatpush3.msra.mxu1 %v3011_v51 }
 0x94a   : > { %3585 = vmatprep.subr.mxu1 %v3718_v5 }
 0x94b   : > { %3586 = vmatpush3.msra.mxu1 %v3008_v52 }
 0x94c   : > { %3588 = vmatmul.mubr.f32.vlgmr.msra.gmra.mxu1 %v2452_v48 }
 0xa09   : > { %v2568_v54 = vpop.f32.mrf.mxu0 }
 0xa0a   : > { %v2643_v55 = vadd.f32 %v2568_v54, %v2449_v53 }
 0xa0b   : > { %v2570_v58 = vpop.f32.mrf.mxu0 }
 0xa0c   : > { %v3054_v56 = vmul.f32 -1.442695, %v2643_v55  ;;  %v2639_v59 = vpop.f32.mrf.mxu1  ;;  %v2650_v61 = vadd.f32 %v2570_v58, %v2450_v57 }
 0xa0d   : > { %v2657_v1 = vadd.f32 %v4119_v45, %v2639_v59 }
 0xa0e   : > { %3685 = vpow2.f32 %v3054_v56  ;;  %v3589_v60 = vpop.f32.mrf.mxu1  ;;  %v3055_v62 = vmul.f32 -1.442695, %v2650_v61 }
 0xa10   : > { %3687 = vpow2.f32 %v3055_v62 }
 0xa1b   : > { %v3686_v63 = vpop.eup %3685 }
 0xa1c   : > { %v2647_v0 = vadd.f32 1.0, %v3686_v63 }
 0xa1d   : > { %v3688_v44 = vpop.eup %3687 }
 0xa1e   : > { %3689 = vrcp.f32 %v2647_v0  ;;  %v2654_v5 = vadd.f32 1.0, %v3688_v44 }
 0xa2b   : > { %v3690_v2 = vpop.eup %3689 }
 0xa2c   : > { %v2658_v4 = vmul.f32 %v3690_v2, %v2657_v1 }
 0xa2e   : > { %v2659_v7 = vadd.f32 %v2658_v4, %v2451_v3 }
 0xa30   : > { %3691 = vtanh.f32 %v2659_v7 }
 0xa31   : > { %3693 = vrcp.f32 %v2654_v5 }
 0xa3d   : > { %v3692_v8 = vpop.eup %3691 }
 0xa3e   : > { %v2661_v9 = vsub.f32 %v2452_v48, %v3692_v8  ;;  %v3694_v10 = vpop.eup %3693 }
 0xa40   : > { %v2662_v11 = vmul.f32 %v3694_v10, %v2661_v9 }
 0xa42   : > { %v2663_v12 = vadd.f32 %v3692_v8, %v2662_v11 }
 0xa44   : > { %2664 = vst [vmem:[#allocation5] sm:$0xff] %v2663_v12  ;;  %2665 = vst [vmem:[%s3799_s25] sm:$0xff] %v2663_v12 }
 0xa45 PF: > { %s19_s27 = sadd.s32 1, %s3701_s27  }
 0xa46   : > { %p16_p0 = scmp.ge.s32.totalorder %s19_s27, 4  }
 0xa48   :  { %18 = sbr.rel (!%p16_p0) target bundleno = 1 (0x1), region = 137 }

</bundles_post_ra>
